<compile_context>
chip_gen: v6e
topology: v6e:2x2x1
jax: 0.10.0
libtpu: 0.0.40
codegen_flags: <defaults>
</compile_context>

<pallas_src>
import functools

import jax
import jax.numpy as jnp
from jax import lax
from jax.experimental import pallas as pl
from jax.experimental.pallas import tpu as pltpu


# ----------------------------------------------------------------------------
# Fused kernel: up_block + concat + conv_block for one batch image.
# ----------------------------------------------------------------------------
def unet_up_kernel(x_ref, skip_ref, wup_ref, sup_ref, scat_ref,
                   w1_ref, s1_ref, w2_ref, s2_ref, o_ref, *, W, C):
    """All activations are (channels, H*W): channels on sublanes, pixels on lanes.

    x_ref:    (1, Cin, Hl*Wl) bf16    skip_ref: (1, C, M) bf16
    wup_ref:  (4C, Cin) bf16          sup_ref:  (4C, 1) f32
    scat_ref: (4, Hl*Wl, M) bf16      (0/1 pixel-shuffle scatter matrices)
    w1_ref:   (C, 9*2C) bf16          s1_ref:   (C, 1) f32
    w2_ref:   (C, 9*C) bf16           s2_ref:   (C, 1) f32
    o_ref:    (1, C, M) f32           (lane-dense store, already NCHW order)
    """
    # ---- up_block: ConvTranspose2d(k=2,s=2) + folded-BN shift + ReLU --------
    # rows of `upp` are (kh, kw, c_out); columns are low-res pixels.
    upp = jnp.dot(wup_ref[...], x_ref[0], preferred_element_type=jnp.float32)
    upp = jnp.maximum(upp + sup_ref[...], 0.0).astype(jnp.bfloat16)

    # pixel-shuffle (kh,kw,c,hl,wl) -> (c, 2hl+kh, 2wl+kw) with 4 scatter dots.
    up = jnp.dot(upp[0:C, :], scat_ref[0], preferred_element_type=jnp.float32)
    for b in range(1, 4):
        up = up + jnp.dot(upp[b * C:(b + 1) * C, :], scat_ref[b],
                          preferred_element_type=jnp.float32)
    up = up.astype(jnp.bfloat16)                               # (C, M)

    # ---- implicit concat(skip, up) along channels (sublane concat) ----------
    cat = jnp.concatenate([skip_ref[0], up], axis=0)           # (2C, M) bf16

    # ---- 9-tap im2col slab: lane-shifted, zero-filled copies ----------------
    def tap_stack(a):
        rows, m_total = a.shape
        lane = lax.broadcasted_iota(jnp.int32, a.shape, 1)
        if (W & (W - 1)) == 0:
            col = lane & (W - 1)
        else:
            col = lane % W
        zero = jnp.zeros_like(a)
        # source-space column masks per horizontal offset dw (row wrap of the
        # flattened index is what the column masks kill; image-top/bottom
        # out-of-range reads are killed by the zero-fill of the shifts below).
        src_by_dw = {
            -1: jnp.where(col == (W - 1), zero, a),
            0: a,
            1: jnp.where(col == 0, zero, a),
        }
        pieces = []
        for dh in (-1, 0, 1):
            for dw in (-1, 0, 1):
                s = dh * W + dw
                src = src_by_dw[dw]
                if s == 0:
                    pieces.append(src)
                elif s > 0:
                    pad = jnp.zeros((rows, s), a.dtype)
                    pieces.append(jnp.concatenate([src[:, s:], pad], axis=1))
                else:
                    pad = jnp.zeros((rows, -s), a.dtype)
                    pieces.append(jnp.concatenate([pad, src[:, :s]], axis=1))
        return jnp.concatenate(pieces, axis=0)                 # (9*rows, M)

    # ---- conv1: 3x3, 2C -> C, one deep-K matmul, BN shift + ReLU ------------
    im1 = tap_stack(cat)                                       # (9*2C, M)
    h1 = jnp.dot(w1_ref[...], im1, preferred_element_type=jnp.float32)
    h1 = jnp.maximum(h1 + s1_ref[...], 0.0).astype(jnp.bfloat16)

    # ---- conv2: 3x3, C -> C --------------------------------------------------
    im2 = tap_stack(h1)                                        # (9*C, M)
    h2 = jnp.dot(w2_ref[...], im2, preferred_element_type=jnp.float32)
    o_ref[0] = jnp.maximum(h2 + s2_ref[...], 0.0)              # dense 256-lane store


# ----------------------------------------------------------------------------
# Wrapper
# ----------------------------------------------------------------------------
def unet_up_forward(x_nchw, skip_nchw, prep):
    """Pallas implementation of UnetUp.forward; NCHW in, NCHW f32 out."""
    N, Cin, Hl, Wl = x_nchw.shape
    _, C, H, W = skip_nchw.shape
    M, Ml = H * W, Hl * Wl

    # NCHW -> (channels, flat-pixels): pure reshapes, staged as bf16 in HBM.
    x = x_nchw.reshape(N, Cin, Ml).astype(jnp.bfloat16)
    skip = skip_nchw.reshape(N, C, M).astype(jnp.bfloat16)

    # vmem_limit derived from actual buffer sizes (+ margin), valid on v7x too.
    bf2, f4 = 2, 4
    resident = (prep["wup"].size + prep["scat"].size + prep["w1"].size
                + prep["w2"].size) * bf2 + (prep["sup"].size + prep["s1"].size
                                            + prep["s2"].size) * f4
    per_step_io = (Cin * Ml + C * M) * bf2 + C * M * f4
    in_kernel = (9 * 2 * C * M + 9 * C * M) * bf2 * 2 + 8 * C * M * f4
    need = resident + 2 * per_step_io + in_kernel
    vmem_limit = int(min(max(2 * need, 16 * 1024 * 1024), 100 * 1024 * 1024))

    kernel = functools.partial(unet_up_kernel, W=W, C=C)

    out = pl.pallas_call(
        kernel,
        out_shape=jax.ShapeDtypeStruct((N, C, M), jnp.float32),
        grid_spec=pltpu.PrefetchScalarGridSpec(
            num_scalar_prefetch=0,
            grid=(N,),
            in_specs=[
                pl.BlockSpec((1, Cin, Ml), lambda n: (n, 0, 0)),
                pl.BlockSpec((1, C, M), lambda n: (n, 0, 0)),
                pl.BlockSpec((4 * C, Cin), lambda n: (0, 0)),
                pl.BlockSpec((4 * C, 1), lambda n: (0, 0)),
                pl.BlockSpec((4, Ml, M), lambda n: (0, 0, 0)),
                pl.BlockSpec((C, 9 * 2 * C), lambda n: (0, 0)),
                pl.BlockSpec((C, 1), lambda n: (0, 0)),
                pl.BlockSpec((C, 9 * C), lambda n: (0, 0)),
                pl.BlockSpec((C, 1), lambda n: (0, 0)),
            ],
            out_specs=pl.BlockSpec((1, C, M), lambda n: (n, 0, 0)),
        ),
        compiler_params=pltpu.CompilerParams(
            dimension_semantics=("parallel",),
            vmem_limit_bytes=vmem_limit,
        ),
    )(x, skip, prep["wup"], prep["sup"], prep["scat"],
      prep["w1"], prep["s1"], prep["w2"], prep["s2"])

    return out.reshape(N, C, H, W)          # already channel-major == NCHW


# ----------------------------------------------------------------------------
# Parameter construction (mirrors the PyTorch module) + constant folding
# ----------------------------------------------------------------------------
def make_params(key, in_channel, out_channel):
    Cin, C = in_channel, out_channel
    ks = jax.random.split(key, 12)

    def bn(kg, kb, c):
        return dict(
            gamma=1.0 + 0.1 * jax.random.normal(kg, (c,), jnp.float32),
            beta=0.1 * jax.random.normal(kb, (c,), jnp.float32),
            mean=jnp.zeros((c,), jnp.float32),      # fresh PyTorch running_mean
            var=jnp.ones((c,), jnp.float32),        # fresh PyTorch running_var
        )

    wt = jax.random.normal(ks[0], (Cin, C, 2, 2), jnp.float32) * jnp.sqrt(2.0 / (4.0 * Cin))
    bt = 0.01 * jax.random.normal(ks[1], (C,), jnp.float32)
    w1 = jax.random.normal(ks[4], (C, 2 * C, 3, 3), jnp.float32) * jnp.sqrt(2.0 / (18.0 * C))
    b1 = 0.01 * jax.random.normal(ks[5], (C,), jnp.float32)
    w2 = jax.random.normal(ks[8], (C, C, 3, 3), jnp.float32) * jnp.sqrt(2.0 / (9.0 * C))
    b2 = 0.01 * jax.random.normal(ks[9], (C,), jnp.float32)

    return dict(
        up=dict(w=wt, b=bt, **bn(ks[2], ks[3], C)),
        conv1=dict(w=w1, b=b1, **bn(ks[6], ks[7], C)),
        conv2=dict(w=w2, b=b2, **bn(ks[10], ks[11], C)),
    )


def prepare_params(params, Hl, Wl, eps=1e-5):
    """Fold BN (inference) scale into bf16 weights; pack for the fused kernel."""
    up, c1, c2 = params["up"], params["conv1"], params["conv2"]
    Cin, C = up["w"].shape[0], up["w"].shape[1]
    H, W = 2 * Hl, 2 * Wl

    def affine(p):
        scale = p["gamma"] / jnp.sqrt(p["var"] + eps)
        shift = (p["b"] - p["mean"]) * scale + p["beta"]
        return scale, shift

    # ConvTranspose2d (Cin, C, 2, 2) -> rows (kh,kw,c_out), cols c_in.
    s_up, sh_up = affine(up)
    wup = jnp.transpose(up["w"], (2, 3, 1, 0)) * s_up[None, None, :, None]
    wup = wup.reshape(4 * C, Cin).astype(jnp.bfloat16)
    sup = jnp.tile(sh_up, 4).reshape(4 * C, 1).astype(jnp.float32)

    # conv1 (C, 2C, 3, 3) -> (C, (kh*3+kw)*2C + i); conv2 (C, C, 3, 3) likewise.
    s1, sh1 = affine(c1)
    w1 = (jnp.transpose(c1["w"], (0, 2, 3, 1)) * s1[:, None, None, None])
    w1 = w1.reshape(C, 9 * 2 * C).astype(jnp.bfloat16)
    s1v = sh1.reshape(C, 1).astype(jnp.float32)

    s2, sh2 = affine(c2)
    w2 = (jnp.transpose(c2["w"], (0, 2, 3, 1)) * s2[:, None, None, None])
    w2 = w2.reshape(C, 9 * C).astype(jnp.bfloat16)
    s2v = sh2.reshape(C, 1).astype(jnp.float32)

    # Pixel-shuffle scatter matrices: S[b, ml, m] = 1 iff full-res flat pixel m
    # is the (kh,kw) = (b//2, b%2) sub-pixel of low-res pixel ml.
    ml = jnp.arange(Hl * Wl)
    h, w = ml // Wl, ml % Wl
    scat = jnp.zeros((4, Hl * Wl, H * W), jnp.float32)
    for b in range(4):
        kh, kw = b // 2, b % 2
        m = (2 * h + kh) * W + (2 * w + kw)
        scat = scat.at[b, ml, m].set(1.0)
    scat = scat.astype(jnp.bfloat16)

    return dict(wup=wup, sup=sup, scat=scat, w1=w1, s1=s1v, w2=w2, s2=s2v)


# ----------------------------------------------------------------------------
# Pure-JAX reference built from the same folded bf16 weights
# ----------------------------------------------------------------------------
def ref_forward(x_nchw, skip_nchw, prep):
    N, Cin, Hl, Wl = x_nchw.shape
    _, C, H, W = skip_nchw.shape
    x = x_nchw.astype(jnp.bfloat16)
    skip = skip_nchw.astype(jnp.bfloat16)

    wup4 = prep["wup"].reshape(2, 2, C, Cin)
    upv = jnp.einsum("abci,nihw->nchawb", wup4, x,
                     preferred_element_type=jnp.float32)
    upv = upv.reshape(N, C, H, W) + prep["sup"][:C, 0][None, :, None, None]
    upv = jnp.maximum(upv, 0.0).astype(jnp.bfloat16)

    cat = jnp.concatenate([skip, upv], axis=1)

    w1 = prep["w1"].reshape(C, 3, 3, 2 * C).transpose(0, 3, 1, 2)
    h1 = lax.conv_general_dilated(cat, w1, (1, 1), ((1, 1), (1, 1)),
                                  dimension_numbers=("NCHW", "OIHW", "NCHW"),
                                  preferred_element_type=jnp.float32)
    h1 = jnp.maximum(h1 + prep["s1"][:, 0][None, :, None, None], 0.0)
    h1 = h1.astype(jnp.bfloat16)

    w2 = prep["w2"].reshape(C, 3, 3, C).transpose(0, 3, 1, 2)
    h2 = lax.conv_general_dilated(h1, w2, (1, 1), ((1, 1), (1, 1)),
                                  dimension_numbers=("NCHW", "OIHW", "NCHW"),
                                  preferred_element_type=jnp.float32)
    return jnp.maximum(h2 + prep["s2"][:, 0][None, :, None, None], 0.0)


# ----------------------------------------------------------------------------
if __name__ == "__main__":
    key = jax.random.PRNGKey(0)
    kx, ks, kp = jax.random.split(key, 3)

    # UnetUp(in_channel=128, out_channel=64): decoder-style shapes.
    in_channel, out_channel = 128, 64
    N, Hl, Wl = 4, 8, 8
    H, W = 2 * Hl, 2 * Wl

    x = jax.random.normal(kx, (N, in_channel, Hl, Wl), jnp.float32)
    skip = jax.random.normal(ks, (N, out_channel, H, W), jnp.float32)

    params = make_params(kp, in_channel, out_channel)
    prep = prepare_params(params, Hl, Wl)

    fwd = jax.jit(lambda a, b: unet_up_forward(a, b, prep))
    out = jax.block_until_ready(fwd(x, skip))

    assert out.shape == (N, out_channel, H, W), out.shape
    assert bool(jnp.all(jnp.isfinite(out)))

    # Correctness vs a pure-JAX reference using identical folded bf16 weights
    # (bf16 MXU operands, f32 accumulation) -> tight tolerance.
    ref = jax.block_until_ready(jax.jit(lambda a, b: ref_forward(a, b, prep))(x, skip))
    rel_err = float(jnp.max(jnp.abs(out - ref)) / (jnp.max(jnp.abs(ref)) + 1e-6))
    assert rel_err < 2e-2, rel_err

    print("KERNEL_OK")
</pallas_src>

<mosaic_0001>
module attributes {stable_mosaic.version = 11 : i64} {
  func.func @unet_up_kernel(%arg0: i32, %arg1: memref<1x128x64xbf16, #tpu.memory_space<vmem>>, %arg2: memref<1x64x256xbf16, #tpu.memory_space<vmem>>, %arg3: memref<256x128xbf16, #tpu.memory_space<vmem>>, %arg4: memref<256x1xf32, #tpu.memory_space<vmem>>, %arg5: memref<4x64x256xbf16, #tpu.memory_space<vmem>>, %arg6: memref<64x1152xbf16, #tpu.memory_space<vmem>>, %arg7: memref<64x1xf32, #tpu.memory_space<vmem>>, %arg8: memref<64x576xbf16, #tpu.memory_space<vmem>>, %arg9: memref<64x1xf32, #tpu.memory_space<vmem>>, %arg10: memref<1x64x256xf32, #tpu.memory_space<vmem>>) attributes {dimension_semantics = [#tpu.dimension_semantics<parallel>], iteration_bounds = array<i64: 4>, scalar_prefetch = 0 : i64, scratch_operands = 0 : i64, tpu.core_type = #tpu.core_type<tc>, window_params = [{transform_indices = @transform_0, window_bounds = array<i64: 1, 128, 64>}, {transform_indices = @transform_1, window_bounds = array<i64: 1, 64, 256>}, {pipeline_mode = #tpu.pipeline_mode<synchronous>, transform_indices = @transform_2, window_bounds = array<i64: 256, 128>}, {pipeline_mode = #tpu.pipeline_mode<synchronous>, transform_indices = @transform_3, window_bounds = array<i64: 256, 1>}, {pipeline_mode = #tpu.pipeline_mode<synchronous>, transform_indices = @transform_4, window_bounds = array<i64: 4, 64, 256>}, {pipeline_mode = #tpu.pipeline_mode<synchronous>, transform_indices = @transform_5, window_bounds = array<i64: 64, 1152>}, {pipeline_mode = #tpu.pipeline_mode<synchronous>, transform_indices = @transform_6, window_bounds = array<i64: 64, 1>}, {pipeline_mode = #tpu.pipeline_mode<synchronous>, transform_indices = @transform_7, window_bounds = array<i64: 64, 576>}, {pipeline_mode = #tpu.pipeline_mode<synchronous>, transform_indices = @transform_8, window_bounds = array<i64: 64, 1>}, {transform_indices = @transform_9, window_bounds = array<i64: 1, 64, 256>}]} {
    %c0 = arith.constant 0 : index
    %c0_0 = arith.constant 0 : index
    %0 = vector.load %arg3[%c0, %c0_0] : memref<256x128xbf16, #tpu.memory_space<vmem>>, vector<256x128xbf16>
    %c0_1 = arith.constant 0 : index
    %c0_2 = arith.constant 0 : index
    %c0_3 = arith.constant 0 : index
    %1 = vector.load %arg1[%c0_1, %c0_2, %c0_3] : memref<1x128x64xbf16, #tpu.memory_space<vmem>>, vector<1x128x64xbf16>
    %2 = vector.shape_cast %1 : vector<1x128x64xbf16> to vector<128x64xbf16>
    %cst = arith.constant dense<0.000000e+00> : vector<256x64xf32>
    %3 = tpu.matmul %0, %2, %cst {dimension_numbers = #tpu.dot_dimension_numbers<[1], [0], [0], [1], [0, 0, 1, 1], [], []>} : vector<256x128xbf16>, vector<128x64xbf16>, vector<256x64xf32> -> vector<256x64xf32>
    %c0_4 = arith.constant 0 : index
    %c0_5 = arith.constant 0 : index
    %4 = vector.load %arg4[%c0_4, %c0_5] : memref<256x1xf32, #tpu.memory_space<vmem>>, vector<256x1xf32>
    %5 = vector.broadcast %4 : vector<256x1xf32> to vector<256x64xf32>
    %6 = arith.addf %3, %5 : vector<256x64xf32>
    %cst_6 = arith.constant 0.000000e+00 : f32
    %7 = vector.broadcast %cst_6 : f32 to vector<256x64xf32>
    %8 = arith.maximumf %6, %7 : vector<256x64xf32>
    %9 = arith.truncf %8 : vector<256x64xf32> to vector<256x64xbf16>
    %10 = vector.extract_strided_slice %9 {offsets = [0, 0], sizes = [64, 64], strides = [1, 1]} : vector<256x64xbf16> to vector<64x64xbf16>
    %c0_7 = arith.constant 0 : index
    %c0_8 = arith.constant 0 : index
    %c0_9 = arith.constant 0 : index
    %11 = vector.load %arg5[%c0_7, %c0_8, %c0_9] : memref<4x64x256xbf16, #tpu.memory_space<vmem>>, vector<1x64x256xbf16>
    %12 = vector.shape_cast %11 : vector<1x64x256xbf16> to vector<64x256xbf16>
    %cst_10 = arith.constant dense<0.000000e+00> : vector<64x256xf32>
    %13 = tpu.matmul %10, %12, %cst_10 {dimension_numbers = #tpu.dot_dimension_numbers<[1], [0], [0], [1], [0, 0, 1, 1], [], []>} : vector<64x64xbf16>, vector<64x256xbf16>, vector<64x256xf32> -> vector<64x256xf32>
    %14 = vector.extract_strided_slice %9 {offsets = [64, 0], sizes = [64, 64], strides = [1, 1]} : vector<256x64xbf16> to vector<64x64xbf16>
    %c1 = arith.constant 1 : index
    %c0_11 = arith.constant 0 : index
    %c0_12 = arith.constant 0 : index
    %15 = vector.load %arg5[%c1, %c0_11, %c0_12] : memref<4x64x256xbf16, #tpu.memory_space<vmem>>, vector<1x64x256xbf16>
    %16 = vector.shape_cast %15 : vector<1x64x256xbf16> to vector<64x256xbf16>
    %cst_13 = arith.constant dense<0.000000e+00> : vector<64x256xf32>
    %17 = tpu.matmul %14, %16, %cst_13 {dimension_numbers = #tpu.dot_dimension_numbers<[1], [0], [0], [1], [0, 0, 1, 1], [], []>} : vector<64x64xbf16>, vector<64x256xbf16>, vector<64x256xf32> -> vector<64x256xf32>
    %18 = arith.addf %13, %17 : vector<64x256xf32>
    %19 = vector.extract_strided_slice %9 {offsets = [128, 0], sizes = [64, 64], strides = [1, 1]} : vector<256x64xbf16> to vector<64x64xbf16>
    %c2 = arith.constant 2 : index
    %c0_14 = arith.constant 0 : index
    %c0_15 = arith.constant 0 : index
    %20 = vector.load %arg5[%c2, %c0_14, %c0_15] : memref<4x64x256xbf16, #tpu.memory_space<vmem>>, vector<1x64x256xbf16>
    %21 = vector.shape_cast %20 : vector<1x64x256xbf16> to vector<64x256xbf16>
    %cst_16 = arith.constant dense<0.000000e+00> : vector<64x256xf32>
    %22 = tpu.matmul %19, %21, %cst_16 {dimension_numbers = #tpu.dot_dimension_numbers<[1], [0], [0], [1], [0, 0, 1, 1], [], []>} : vector<64x64xbf16>, vector<64x256xbf16>, vector<64x256xf32> -> vector<64x256xf32>
    %23 = arith.addf %18, %22 : vector<64x256xf32>
    %24 = vector.extract_strided_slice %9 {offsets = [192, 0], sizes = [64, 64], strides = [1, 1]} : vector<256x64xbf16> to vector<64x64xbf16>
    %c3 = arith.constant 3 : index
    %c0_17 = arith.constant 0 : index
    %c0_18 = arith.constant 0 : index
    %25 = vector.load %arg5[%c3, %c0_17, %c0_18] : memref<4x64x256xbf16, #tpu.memory_space<vmem>>, vector<1x64x256xbf16>
    %26 = vector.shape_cast %25 : vector<1x64x256xbf16> to vector<64x256xbf16>
    %cst_19 = arith.constant dense<0.000000e+00> : vector<64x256xf32>
    %27 = tpu.matmul %24, %26, %cst_19 {dimension_numbers = #tpu.dot_dimension_numbers<[1], [0], [0], [1], [0, 0, 1, 1], [], []>} : vector<64x64xbf16>, vector<64x256xbf16>, vector<64x256xf32> -> vector<64x256xf32>
    %28 = arith.addf %23, %27 : vector<64x256xf32>
    %29 = arith.truncf %28 : vector<64x256xf32> to vector<64x256xbf16>
    %c0_20 = arith.constant 0 : index
    %c0_21 = arith.constant 0 : index
    %c0_22 = arith.constant 0 : index
    %30 = vector.load %arg2[%c0_20, %c0_21, %c0_22] : memref<1x64x256xbf16, #tpu.memory_space<vmem>>, vector<1x64x256xbf16>
    %31 = vector.shape_cast %30 : vector<1x64x256xbf16> to vector<64x256xbf16>
    %32 = tpu.concatenate %31, %29 in 0 : vector<64x256xbf16>, vector<64x256xbf16> -> vector<128x256xbf16>
    %33 = tpu.iota {dimensions = array<i32: 1>} : vector<128x256xi32>
    %c15_i32 = arith.constant 15 : i32
    %34 = vector.broadcast %c15_i32 : i32 to vector<128x256xi32>
    %35 = arith.andi %33, %34 : vector<128x256xi32>
    %cst_23 = arith.constant 0.000000e+00 : bf16
    %36 = vector.broadcast %cst_23 : bf16 to vector<128x256xbf16>
    %c15_i32_24 = arith.constant 15 : i32
    %37 = vector.broadcast %c15_i32_24 : i32 to vector<128x256xi32>
    %38 = arith.cmpi eq, %35, %37 : vector<128x256xi32>
    %39 = arith.select %38, %36, %32 : vector<128x256xi1>, vector<128x256xbf16>
    %c0_i32 = arith.constant 0 : i32
    %40 = vector.broadcast %c0_i32 : i32 to vector<128x256xi32>
    %41 = arith.cmpi eq, %35, %40 : vector<128x256xi32>
    %42 = arith.select %41, %36, %32 : vector<128x256xi1>, vector<128x256xbf16>
    %cst_25 = arith.constant 0.000000e+00 : bf16
    %43 = vector.broadcast %cst_25 : bf16 to vector<128x17xbf16>
    %44 = vector.extract_strided_slice %39 {offsets = [0, 0], sizes = [128, 239], strides = [1, 1]} : vector<128x256xbf16> to vector<128x239xbf16>
    %45 = tpu.concatenate %43, %44 in 1 : vector<128x17xbf16>, vector<128x239xbf16> -> vector<128x256xbf16>
    %cst_26 = arith.constant 0.000000e+00 : bf16
    %46 = vector.broadcast %cst_26 : bf16 to vector<128x16xbf16>
    %47 = vector.extract_strided_slice %32 {offsets = [0, 0], sizes = [128, 240], strides = [1, 1]} : vector<128x256xbf16> to vector<128x240xbf16>
    %48 = tpu.concatenate %46, %47 in 1 : vector<128x16xbf16>, vector<128x240xbf16> -> vector<128x256xbf16>
    %cst_27 = arith.constant 0.000000e+00 : bf16
    %49 = vector.broadcast %cst_27 : bf16 to vector<128x15xbf16>
    %50 = vector.extract_strided_slice %42 {offsets = [0, 0], sizes = [128, 241], strides = [1, 1]} : vector<128x256xbf16> to vector<128x241xbf16>
    %51 = tpu.concatenate %49, %50 in 1 : vector<128x15xbf16>, vector<128x241xbf16> -> vector<128x256xbf16>
    %cst_28 = arith.constant 0.000000e+00 : bf16
    %52 = vector.broadcast %cst_28 : bf16 to vector<128x1xbf16>
    %53 = vector.extract_strided_slice %39 {offsets = [0, 0], sizes = [128, 255], strides = [1, 1]} : vector<128x256xbf16> to vector<128x255xbf16>
    %54 = tpu.concatenate %52, %53 in 1 : vector<128x1xbf16>, vector<128x255xbf16> -> vector<128x256xbf16>
    %cst_29 = arith.constant 0.000000e+00 : bf16
    %55 = vector.broadcast %cst_29 : bf16 to vector<128x1xbf16>
    %56 = vector.extract_strided_slice %42 {offsets = [0, 1], sizes = [128, 255], strides = [1, 1]} : vector<128x256xbf16> to vector<128x255xbf16>
    %57 = tpu.concatenate %56, %55 in 1 : vector<128x255xbf16>, vector<128x1xbf16> -> vector<128x256xbf16>
    %cst_30 = arith.constant 0.000000e+00 : bf16
    %58 = vector.broadcast %cst_30 : bf16 to vector<128x15xbf16>
    %59 = vector.extract_strided_slice %39 {offsets = [0, 15], sizes = [128, 241], strides = [1, 1]} : vector<128x256xbf16> to vector<128x241xbf16>
    %60 = tpu.concatenate %59, %58 in 1 : vector<128x241xbf16>, vector<128x15xbf16> -> vector<128x256xbf16>
    %cst_31 = arith.constant 0.000000e+00 : bf16
    %61 = vector.broadcast %cst_31 : bf16 to vector<128x16xbf16>
    %62 = vector.extract_strided_slice %32 {offsets = [0, 16], sizes = [128, 240], strides = [1, 1]} : vector<128x256xbf16> to vector<128x240xbf16>
    %63 = tpu.concatenate %62, %61 in 1 : vector<128x240xbf16>, vector<128x16xbf16> -> vector<128x256xbf16>
    %cst_32 = arith.constant 0.000000e+00 : bf16
    %64 = vector.broadcast %cst_32 : bf16 to vector<128x17xbf16>
    %65 = vector.extract_strided_slice %42 {offsets = [0, 17], sizes = [128, 239], strides = [1, 1]} : vector<128x256xbf16> to vector<128x239xbf16>
    %66 = tpu.concatenate %65, %64 in 1 : vector<128x239xbf16>, vector<128x17xbf16> -> vector<128x256xbf16>
    %67 = tpu.concatenate %45, %48, %51, %54, %32, %57, %60, %63, %66 in 0 : vector<128x256xbf16>, vector<128x256xbf16>, vector<128x256xbf16>, vector<128x256xbf16>, vector<128x256xbf16>, vector<128x256xbf16>, vector<128x256xbf16>, vector<128x256xbf16>, vector<128x256xbf16> -> vector<1152x256xbf16>
    %c0_33 = arith.constant 0 : index
    %c0_34 = arith.constant 0 : index
    %68 = vector.load %arg6[%c0_33, %c0_34] : memref<64x1152xbf16, #tpu.memory_space<vmem>>, vector<64x1152xbf16>
    %cst_35 = arith.constant dense<0.000000e+00> : vector<64x256xf32>
    %69 = tpu.matmul %68, %67, %cst_35 {dimension_numbers = #tpu.dot_dimension_numbers<[1], [0], [0], [1], [0, 0, 1, 1], [], []>} : vector<64x1152xbf16>, vector<1152x256xbf16>, vector<64x256xf32> -> vector<64x256xf32>
    %c0_36 = arith.constant 0 : index
    %c0_37 = arith.constant 0 : index
    %70 = vector.load %arg7[%c0_36, %c0_37] : memref<64x1xf32, #tpu.memory_space<vmem>>, vector<64x1xf32>
    %71 = vector.broadcast %70 : vector<64x1xf32> to vector<64x256xf32>
    %72 = arith.addf %69, %71 : vector<64x256xf32>
    %cst_38 = arith.constant 0.000000e+00 : f32
    %73 = vector.broadcast %cst_38 : f32 to vector<64x256xf32>
    %74 = arith.maximumf %72, %73 : vector<64x256xf32>
    %75 = arith.truncf %74 : vector<64x256xf32> to vector<64x256xbf16>
    %76 = tpu.iota {dimensions = array<i32: 1>} : vector<64x256xi32>
    %c15_i32_39 = arith.constant 15 : i32
    %77 = vector.broadcast %c15_i32_39 : i32 to vector<64x256xi32>
    %78 = arith.andi %76, %77 : vector<64x256xi32>
    %cst_40 = arith.constant 0.000000e+00 : bf16
    %79 = vector.broadcast %cst_40 : bf16 to vector<64x256xbf16>
    %c15_i32_41 = arith.constant 15 : i32
    %80 = vector.broadcast %c15_i32_41 : i32 to vector<64x256xi32>
    %81 = arith.cmpi eq, %78, %80 : vector<64x256xi32>
    %82 = arith.select %81, %79, %75 : vector<64x256xi1>, vector<64x256xbf16>
    %c0_i32_42 = arith.constant 0 : i32
    %83 = vector.broadcast %c0_i32_42 : i32 to vector<64x256xi32>
    %84 = arith.cmpi eq, %78, %83 : vector<64x256xi32>
    %85 = arith.select %84, %79, %75 : vector<64x256xi1>, vector<64x256xbf16>
    %cst_43 = arith.constant 0.000000e+00 : bf16
    %86 = vector.broadcast %cst_43 : bf16 to vector<64x17xbf16>
    %87 = vector.extract_strided_slice %82 {offsets = [0, 0], sizes = [64, 239], strides = [1, 1]} : vector<64x256xbf16> to vector<64x239xbf16>
    %88 = tpu.concatenate %86, %87 in 1 : vector<64x17xbf16>, vector<64x239xbf16> -> vector<64x256xbf16>
    %cst_44 = arith.constant 0.000000e+00 : bf16
    %89 = vector.broadcast %cst_44 : bf16 to vector<64x16xbf16>
    %90 = vector.extract_strided_slice %75 {offsets = [0, 0], sizes = [64, 240], strides = [1, 1]} : vector<64x256xbf16> to vector<64x240xbf16>
    %91 = tpu.concatenate %89, %90 in 1 : vector<64x16xbf16>, vector<64x240xbf16> -> vector<64x256xbf16>
    %cst_45 = arith.constant 0.000000e+00 : bf16
    %92 = vector.broadcast %cst_45 : bf16 to vector<64x15xbf16>
    %93 = vector.extract_strided_slice %85 {offsets = [0, 0], sizes = [64, 241], strides = [1, 1]} : vector<64x256xbf16> to vector<64x241xbf16>
    %94 = tpu.concatenate %92, %93 in 1 : vector<64x15xbf16>, vector<64x241xbf16> -> vector<64x256xbf16>
    %cst_46 = arith.constant 0.000000e+00 : bf16
    %95 = vector.broadcast %cst_46 : bf16 to vector<64x1xbf16>
    %96 = vector.extract_strided_slice %82 {offsets = [0, 0], sizes = [64, 255], strides = [1, 1]} : vector<64x256xbf16> to vector<64x255xbf16>
    %97 = tpu.concatenate %95, %96 in 1 : vector<64x1xbf16>, vector<64x255xbf16> -> vector<64x256xbf16>
    %cst_47 = arith.constant 0.000000e+00 : bf16
    %98 = vector.broadcast %cst_47 : bf16 to vector<64x1xbf16>
    %99 = vector.extract_strided_slice %85 {offsets = [0, 1], sizes = [64, 255], strides = [1, 1]} : vector<64x256xbf16> to vector<64x255xbf16>
    %100 = tpu.concatenate %99, %98 in 1 : vector<64x255xbf16>, vector<64x1xbf16> -> vector<64x256xbf16>
    %cst_48 = arith.constant 0.000000e+00 : bf16
    %101 = vector.broadcast %cst_48 : bf16 to vector<64x15xbf16>
    %102 = vector.extract_strided_slice %82 {offsets = [0, 15], sizes = [64, 241], strides = [1, 1]} : vector<64x256xbf16> to vector<64x241xbf16>
    %103 = tpu.concatenate %102, %101 in 1 : vector<64x241xbf16>, vector<64x15xbf16> -> vector<64x256xbf16>
    %cst_49 = arith.constant 0.000000e+00 : bf16
    %104 = vector.broadcast %cst_49 : bf16 to vector<64x16xbf16>
    %105 = vector.extract_strided_slice %75 {offsets = [0, 16], sizes = [64, 240], strides = [1, 1]} : vector<64x256xbf16> to vector<64x240xbf16>
    %106 = tpu.concatenate %105, %104 in 1 : vector<64x240xbf16>, vector<64x16xbf16> -> vector<64x256xbf16>
    %cst_50 = arith.constant 0.000000e+00 : bf16
    %107 = vector.broadcast %cst_50 : bf16 to vector<64x17xbf16>
    %108 = vector.extract_strided_slice %85 {offsets = [0, 17], sizes = [64, 239], strides = [1, 1]} : vector<64x256xbf16> to vector<64x239xbf16>
    %109 = tpu.concatenate %108, %107 in 1 : vector<64x239xbf16>, vector<64x17xbf16> -> vector<64x256xbf16>
    %110 = tpu.concatenate %88, %91, %94, %97, %75, %100, %103, %106, %109 in 0 : vector<64x256xbf16>, vector<64x256xbf16>, vector<64x256xbf16>, vector<64x256xbf16>, vector<64x256xbf16>, vector<64x256xbf16>, vector<64x256xbf16>, vector<64x256xbf16>, vector<64x256xbf16> -> vector<576x256xbf16>
    %c0_51 = arith.constant 0 : index
    %c0_52 = arith.constant 0 : index
    %111 = vector.load %arg8[%c0_51, %c0_52] : memref<64x576xbf16, #tpu.memory_space<vmem>>, vector<64x576xbf16>
    %cst_53 = arith.constant dense<0.000000e+00> : vector<64x256xf32>
    %112 = tpu.matmul %111, %110, %cst_53 {dimension_numbers = #tpu.dot_dimension_numbers<[1], [0], [0], [1], [0, 0, 1, 1], [], []>} : vector<64x576xbf16>, vector<576x256xbf16>, vector<64x256xf32> -> vector<64x256xf32>
    %c0_54 = arith.constant 0 : index
    %c0_55 = arith.constant 0 : index
    %113 = vector.load %arg9[%c0_54, %c0_55] : memref<64x1xf32, #tpu.memory_space<vmem>>, vector<64x1xf32>
    %114 = vector.broadcast %113 : vector<64x1xf32> to vector<64x256xf32>
    %115 = arith.addf %112, %114 : vector<64x256xf32>
    %cst_56 = arith.constant 0.000000e+00 : f32
    %116 = vector.broadcast %cst_56 : f32 to vector<64x256xf32>
    %117 = arith.maximumf %115, %116 : vector<64x256xf32>
    %c0_57 = arith.constant 0 : index
    %c0_58 = arith.constant 0 : index
    %c0_59 = arith.constant 0 : index
    %118 = vector.load %arg10[%c0_57, %c0_58, %c0_59] : memref<1x64x256xf32, #tpu.memory_space<vmem>>, vector<1x64x256xf32>
    %119 = vector.shape_cast %118 : vector<1x64x256xf32> to vector<64x256xf32>
    %120 = vector.shape_cast %117 : vector<64x256xf32> to vector<1x64x256xf32>
    tpu.vector_store %arg10[%c0_57, %c0_58, %c0_59], %120 {strides = array<i32>} : memref<1x64x256xf32, #tpu.memory_space<vmem>>, vector<1x64x256xf32>,
    return
  }
  func.func @transform_0(%arg0: i32) -> (i32, i32, i32) {
    %c0_i32 = arith.constant 0 : i32
    %c0_i32_0 = arith.constant 0 : i32
    %c0_i32_1 = arith.constant 0 : i32
    return %arg0, %c0_i32, %c0_i32_0 : i32, i32, i32
  }
  func.func @transform_1(%arg0: i32) -> (i32, i32, i32) {
    %c0_i32 = arith.constant 0 : i32
    %c0_i32_0 = arith.constant 0 : i32
    %c0_i32_1 = arith.constant 0 : i32
    return %arg0, %c0_i32, %c0_i32_0 : i32, i32, i32
  }
  func.func @transform_2(%arg0: i32) -> (i32, i32) {
    %c0_i32 = arith.constant 0 : i32
    %c0_i32_0 = arith.constant 0 : i32
    %c0_i32_1 = arith.constant 0 : i32
    return %c0_i32, %c0_i32_0 : i32, i32
  }
  func.func @transform_3(%arg0: i32) -> (i32, i32) {
    %c0_i32 = arith.constant 0 : i32
    %c0_i32_0 = arith.constant 0 : i32
    %c0_i32_1 = arith.constant 0 : i32
    return %c0_i32, %c0_i32_0 : i32, i32
  }
  func.func @transform_4(%arg0: i32) -> (i32, i32, i32) {
    %c0_i32 = arith.constant 0 : i32
    %c0_i32_0 = arith.constant 0 : i32
    %c0_i32_1 = arith.constant 0 : i32
    %c0_i32_2 = arith.constant 0 : i32
    return %c0_i32, %c0_i32_0, %c0_i32_1 : i32, i32, i32
  }
  func.func @transform_5(%arg0: i32) -> (i32, i32) {
    %c0_i32 = arith.constant 0 : i32
    %c0_i32_0 = arith.constant 0 : i32
    %c0_i32_1 = arith.constant 0 : i32
    return %c0_i32, %c0_i32_0 : i32, i32
  }
  func.func @transform_6(%arg0: i32) -> (i32, i32) {
    %c0_i32 = arith.constant 0 : i32
    %c0_i32_0 = arith.constant 0 : i32
    %c0_i32_1 = arith.constant 0 : i32
    return %c0_i32, %c0_i32_0 : i32, i32
  }
  func.func @transform_7(%arg0: i32) -> (i32, i32) {
    %c0_i32 = arith.constant 0 : i32
    %c0_i32_0 = arith.constant 0 : i32
    %c0_i32_1 = arith.constant 0 : i32
    return %c0_i32, %c0_i32_0 : i32, i32
  }
  func.func @transform_8(%arg0: i32) -> (i32, i32) {
    %c0_i32 = arith.constant 0 : i32
    %c0_i32_0 = arith.constant 0 : i32
    %c0_i32_1 = arith.constant 0 : i32
    return %c0_i32, %c0_i32_0 : i32, i32
  }
  func.func @transform_9(%arg0: i32) -> (i32, i32, i32) {
    %c0_i32 = arith.constant 0 : i32
    %c0_i32_0 = arith.constant 0 : i32
    %c0_i32_1 = arith.constant 0 : i32
    return %arg0, %c0_i32, %c0_i32_0 : i32, i32, i32
  }
}

</mosaic_0001>

<bundles_post_ra>
// kernel: _lambda_.1
= control target key start
LH: loop header
LB: loop body
LE: loop exit
PB: predicated region body
PF: predicated region fallthrough
CT: control target
= control target key end

     0   :  { %s4424_s30 = smov 0   ;;  %s6526_s0 = inlined_call_operand.vmem [shape: bf16[4,128,64], index: 0, kind: input, shape index: {}]   ;;  %s6527_s1 = inlined_call_operand.vmem [shape: bf16[4,64,256], index: 1, kind: input, shape index: {}]   ;;  %s6528_s2 = inlined_call_operand.vmem [shape: bf16[256,128], index: 2, kind: input, shape index: {}]   ;;  %s6529_s3 = inlined_call_operand.vmem [shape: f32[256,1], index: 3, kind: input, shape index: {}]   ;;  %s6530_s4 = inlined_call_operand.vmem [shape: bf16[4,64,256], index: 4, kind: input, shape index: {}]   ;;  %s6531_s5 = inlined_call_operand.vmem [shape: bf16[64,1152], index: 5, kind: input, shape index: {}]   ;;  %s6532_s6 = inlined_call_operand.vmem [shape: f32[64,1], index: 6, kind: input, shape index: {}]   ;;  %s6533_s7 = inlined_call_operand.vmem [shape: bf16[64,576], index: 7, kind: input, shape index: {}]   ;;  %s6534_s8 = inlined_call_operand.vmem [shape: f32[64,1], index: 8, kind: input, shape index: {}]   ;;  %s6535_s9 = inlined_call_operand.vmem [shape: f32[4,64,256], index: 9, kind: output, shape index: {}]  }
   0x1 LB: > { %s3762_s10 = sadd.s32 4294967295, %s4363_s30   ;;  %p3766_p0 = scmp.ge.s32.totalorder %s4363_s30, 1  ;;  %s4363_s30 = sphi %s4424_s30, %s19_s30  }
   0x2   : > { %p297_p1 = scmp.lt.s32.totalorder %s4363_s30, 5 }
   0x4   : > { %p298_p2 = pnand %p3766_p0, %p297_p1 }
   0x6   : > { %301 = sbr.rel (%p298_p2) target bundleno = 1535 (0x5ff), region = 56 }
   0xb   : > { %p338_p3 = scmp.lt.s32.totalorder %s3762_s10, 3  ;;  %v4193_v0 = vld [vmem:[%s6528_s2] sm:$0xff]   ;;  %v6536_v1 = vmov 0   ;;  %v413_v8 = vld [vmem:[%s6529_s3 + $0x48] sm:$0xff]  ;;  %v414_v9 = vld [vmem:[%s6529_s3 + $0x50] sm:$0xff]  ;;  %vm6594_vm0 = vcmask 523264  }
   0xc   : > { %4126 = vmatprep.mubr.bf16.mxu0 %v4193_v0  ;;  %4183 = vset.pattern.permute.xlu0 %v6536_v1  ;;  %v412_v6 = vld [vmem:[%s6529_s3 + $0x40] sm:$0xff]  ;;  %v415_v10 = vld [vmem:[%s6529_s3 + $0x58] sm:$0xff]  ;;  %v417_v13 = vld [vmem:[%s6529_s3 + $0x68] sm:$0xff]  ;;  %s4367_s17 = smov 15   ;;  %s4368_s18 = smov 16   ;;  %vm1686_vm11 = vcmask 138240  }
   0xd   : > { %s6715_s10 = smov (!%p338_p3, %s3762_s10), 3  ;;  %4184 = vset.pattern.permute.xlu1 %v6536_v1  ;;  %1051 = vmatprep.mubr.bf16.mxu1 %v6536_v1  ;;  %v416_v12 = vld [vmem:[%s6529_s3 + $0x60] sm:$0xff]  ;;  %v418_v15 = vld [vmem:[%s6529_s3 + $0x70] sm:$0xff]  ;;  %v419_v16 = vld [vmem:[%s6529_s3 + $0x78] sm:$0xff]  ;;  %s4369_s19 = smov 1   ;;  %vm1769_vm13 = vcmask 130048  }
   0xe   : > { %s4083_s13 = sshll.u32 %s6715_s10, 6  ;;  %478 = vperm.xlu0 %4183, %v412_v6   ;;  %488 = vperm.xlu1 %4184, %v414_v9   ;;  %v404_v18 = vld [vmem:[%s6529_s3] sm:$0xff]  ;;  %v405_v19 = vld [vmem:[%s6529_s3 + $0x8] sm:$0xff]  ;;  %v406_v21 = vld [vmem:[%s6529_s3 + $0x10] sm:$0xff]  ;;  %s4370_s20 = smov 113   ;;  %vm1859_vm14 = vcmask 121856  }
   0xf   : > { %s4446_s16 = scalar_lea.vmem %s6526_s0, %s4083_s13  ;;  %v4194_v20 = vld [vmem:[%s6528_s2 + $0x8] sm:$0xff]   ;;  %v407_v22 = vld [vmem:[%s6529_s3 + $0x18] sm:$0xff]  ;;  %v4195_v23 = vld [vmem:[%s6528_s2 + $0x10] sm:$0xff]   ;;  %s4836_s15 = scalar_lea.vmem %s6527_s1, %s4083_s13 }
  0x10   : > { %v4185_v2 = vld [vmem:[%s4446_s16 + $0x38] sm:$0xff]   ;;  %v4186_v3 = vld [vmem:[%s4446_s16 + $0x30] sm:$0xff]   ;;  %v4187_v4 = vld [vmem:[%s4446_s16 + $0x28] sm:$0xff]   ;;  %s4366_s13 = smov 17   ;;  %s4371_s21 = smov 127  }
  0x11   : > { %4110 = vmatprep.subr.bf16.mxu0 %v4185_v2  ;;  %v4188_v5 = vld [vmem:[%s4446_s16 + $0x20] sm:$0xff]   ;;  %v4189_v7 = vld [vmem:[%s4446_s16 + $0x18] sm:$0xff]   ;;  %v4190_v11 = vld [vmem:[%s4446_s16 + $0x10] sm:$0xff]   ;;  %s4372_s25 = smov 112   ;;  %s4373_s26 = smov 111  }
  0x12   : > { %4111 = vmatpush3.bf16.msra.mxu0 %v4185_v2  ;;  %483 = vperm.xlu0 %4183, %v413_v8   ;;  %v4191_v14 = vld [vmem:[%s4446_s16 + $0x8] sm:$0xff]   ;;  %v4192_v17 = vld [vmem:[%s4446_s16] sm:$0xff]   ;;  %v410_v26 = vld [vmem:[%s6529_s3 + $0x30] sm:$0xff]  ;;  %s4085_s16 = sshll.u32 %s6715_s10, 7 }
  0x13   : > { %4112 = vmatprep.subr.bf16.mxu0 %v4186_v3  ;;  %493 = vperm.xlu1 %4184, %v415_v10   ;;  %v408_v24 = vld [vmem:[%s6529_s3 + $0x20] sm:$0xff]  ;;  %v409_v25 = vld [vmem:[%s6529_s3 + $0x28] sm:$0xff]  ;;  %v4196_v27 = vld [vmem:[%s6528_s2 + $0x18] sm:$0xff]  }
  0x14   : > { %v411_v28 = vld [vmem:[%s6529_s3 + $0x38] sm:$0xff]  ;;  %v4197_v29 = vld [vmem:[%s6528_s2 + $0x20] sm:$0xff]   ;;  %v421_v31 = vld [vmem:[%s6529_s3 + $0x88] sm:$0xff] }
  0x15   : > { %v420_v30 = vld [vmem:[%s6529_s3 + $0x80] sm:$0xff]  ;;  %v4198_v33 = vld [vmem:[%s6528_s2 + $0x28] sm:$0xff]   ;;  %v4199_v35 = vld [vmem:[%s6528_s2 + $0x30] sm:$0xff]  }
  0x16   : > { %4113 = vmatpush3.bf16.msra.mxu0 %v4186_v3  ;;  %498 = vperm.xlu0 %4183, %v416_v12   ;;  %v428_v32 = vld [vmem:[%s6529_s3 + $0xc0] sm:$0xff]  ;;  %v429_v34 = vld [vmem:[%s6529_s3 + $0xc8] sm:$0xff]  ;;  %v422_v36 = vld [vmem:[%s6529_s3 + $0x90] sm:$0xff] }
  0x17   : > { %4114 = vmatprep.subr.bf16.mxu0 %v4187_v4  ;;  %503 = vperm.xlu1 %4184, %v417_v13   ;;  %v423_v37 = vld [vmem:[%s6529_s3 + $0x98] sm:$0xff]  ;;  %v430_v38 = vld [vmem:[%s6529_s3 + $0xd0] sm:$0xff]  ;;  %v4201_v41 = vld [vmem:[%s6528_s2 + $0x40] sm:$0xff]  }
  0x18   : > { %v4200_v39 = vld [vmem:[%s6528_s2 + $0x38] sm:$0xff]   ;;  %v424_v42 = vld [vmem:[%s6529_s3 + $0xa0] sm:$0xff]  ;;  %v425_v43 = vld [vmem:[%s6529_s3 + $0xa8] sm:$0xff] }
  0x19   : > { %v431_v40 = vld [vmem:[%s6529_s3 + $0xd8] sm:$0xff]  ;;  %v432_v44 = vld [vmem:[%s6529_s3 + $0xe0] sm:$0xff]  ;;  %v4202_v45 = vld [vmem:[%s6528_s2 + $0x48] sm:$0xff]  }
  0x1a   : > { %4115 = vmatpush3.bf16.msra.mxu0 %v4187_v4  ;;  %508 = vperm.xlu0 %4183, %v418_v15   ;;  %v433_v46 = vld [vmem:[%s6529_s3 + $0xe8] sm:$0xff]  ;;  %v4203_v47 = vld [vmem:[%s6528_s2 + $0x50] sm:$0xff]   ;;  %v427_v49 = vld [vmem:[%s6529_s3 + $0xb8] sm:$0xff] }
  0x1b   : > { %4116 = vmatprep.subr.bf16.mxu0 %v4188_v5  ;;  %513 = vperm.xlu1 %4184, %v419_v16   ;;  %v426_v48 = vld [vmem:[%s6529_s3 + $0xb0] sm:$0xff]  ;;  %v4204_v51 = vld [vmem:[%s6528_s2 + $0x58] sm:$0xff]   ;;  %v4205_v53 = vld [vmem:[%s6528_s2 + $0x60] sm:$0xff]  }
  0x1c   : > { %v434_v50 = vld [vmem:[%s6529_s3 + $0xf0] sm:$0xff]  ;;  %v435_v52 = vld [vmem:[%s6529_s3 + $0xf8] sm:$0xff]  ;;  %v4206_v54 = vld [vmem:[%s6528_s2 + $0x68] sm:$0xff]  }
  0x1d   : > { %v4207_v55 = vld [vmem:[%s6528_s2 + $0x70] sm:$0xff]   ;;  %v4208_v56 = vld [vmem:[%s6528_s2 + $0x78] sm:$0xff]   ;;  %v4212_v59 = vld [vmem:[%s6530_s4 + $0x64] ss:$8 sps:$4 sm:$0xff]  }
  0x1e   : > { %4117 = vmatpush3.bf16.msra.mxu0 %v4188_v5  ;;  %438 = vperm.xlu0 %4183, %v404_v18   ;;  %v4209_v57 = vld [vmem:[%s6530_s4 + $0x74] ss:$8 sps:$4 sm:$0xff]   ;;  %v4211_v58 = vld [vmem:[%s6530_s4 + $0x70] ss:$8 sps:$4 sm:$0xff]   ;;  %v4214_v60 = vld [vmem:[%s6530_s4 + $0x60] ss:$8 sps:$4 sm:$0xff]  }
  0x1f   : > { %4118 = vmatprep.subr.bf16.mxu0 %v4189_v7  ;;  %443 = vperm.xlu1 %4184, %v405_v19   ;;  %v4215_v61 = vld [vmem:[%s6530_s4 + $0x54] ss:$8 sps:$4 sm:$0xff]   ;;  %v4217_v62 = vld [vmem:[%s6530_s4 + $0x50] ss:$8 sps:$4 sm:$0xff]   ;;  %v4218_v63 = vld [vmem:[%s6530_s4 + $0x44] ss:$8 sps:$4 sm:$0xff]  }
  0x20   : > { %1027 = vmatprep.subr.bf16.mxu1 %v4209_v57  ;;  %v4220_v0 = vld [vmem:[%s6530_s4 + $0x40] ss:$8 sps:$4 sm:$0xff]   ;;  %v4223_v2 = vld [vmem:[%s6530_s4 + $0x34] ss:$8 sps:$4 sm:$0xff]   ;;  %v4224_v4 = vld [vmem:[%s6530_s4 + $0xf0] ss:$8 sps:$4 sm:$0xff]  }
  0x21   : > { %1028 = vmatpush1.bf16.msra.mxu1 %v4211_v58  ;;  %v4226_v3 = vld [vmem:[%s6530_s4 + $0xf4] ss:$8 sps:$4 sm:$0xff]   ;;  %v4232_v5 = vld [vmem:[%s6530_s4 + $0xe4] ss:$8 sps:$4 sm:$0xff]   ;;  %v4230_v6 = vld [vmem:[%s6530_s4 + $0xe0] ss:$8 sps:$4 sm:$0xff]  }
  0x22   : > { %4119 = vmatpush3.bf16.msra.mxu0 %v4189_v7  ;;  %448 = vperm.xlu0 %4183, %v406_v21   ;;  %v4238_v7 = vld [vmem:[%s6530_s4 + $0xd4] ss:$8 sps:$4 sm:$0xff]   ;;  %v4236_v8 = vld [vmem:[%s6530_s4 + $0xd0] ss:$8 sps:$4 sm:$0xff]   ;;  %v4244_v9 = vld [vmem:[%s6530_s4 + $0xc4] ss:$8 sps:$4 sm:$0xff]  }
  0x23   : > { %4120 = vmatprep.subr.bf16.mxu0 %v4190_v11  ;;  %453 = vperm.xlu1 %4184, %v407_v22   ;;  %v4242_v10 = vld [vmem:[%s6530_s4 + $0xc0] ss:$8 sps:$4 sm:$0xff]   ;;  %v4221_v58 = vld [vmem:[%s6530_s4 + $0x30] ss:$8 sps:$4 sm:$0xff]   ;;  %vm5378_vm12 = vmneg %vm1686_vm11 }
  0x24   : > { %1029 = vmatprep.subr.bf16.mxu1 %v4212_v59  ;;  %vm5483_vm15 = vmneg %vm1769_vm13 }
  0x25   : > { %1030 = vmatpush1.bf16.msra.mxu1 %v4214_v60 }
  0x26   : > { %4121 = vmatpush3.bf16.msra.mxu0 %v4190_v11  ;;  %458 = vperm.xlu0 %4183, %v408_v24  }
  0x27   : > { %4122 = vmatprep.subr.bf16.mxu0 %v4191_v14  ;;  %463 = vperm.xlu1 %4184, %v409_v25  }
  0x28   : > { %1031 = vmatprep.subr.bf16.mxu1 %v4215_v61  ;;  %v4229_v61 = vld [vmem:[%s6530_s4 + $0x24] ss:$8 sps:$4 sm:$0xff]  }
  0x29   : > { %1032 = vmatpush1.bf16.msra.mxu1 %v4217_v62 }
  0x2a   : > { %4123 = vmatpush3.bf16.msra.mxu0 %v4191_v14  ;;  %468 = vperm.xlu0 %4183, %v410_v26  }
  0x2b   : > { %4124 = vmatprep.subr.bf16.mxu0 %v4192_v17  ;;  %473 = vperm.xlu1 %4184, %v411_v28  }
  0x2c   : > { %1033 = vmatprep.subr.bf16.mxu1 %v4218_v63 }
  0x2d   : > { %1034 = vmatpush1.bf16.msra.mxu1 %v4220_v0 }
  0x2e   : > { %4125 = vmatpush3.bf16.msra.mxu0 %v4192_v17  ;;  %518 = vperm.xlu0 %4183, %v420_v30  }
  0x2f   : > { %523 = vperm.xlu1 %4184, %v421_v31   ;;  %1152 = vmatprep.subr.bf16.mxu1 %v4223_v2 }
  0x30   : > { %1436 = vmatprep.subr.bf16.mxu0 %v4226_v3  ;;  %v4227_v3 = vld [vmem:[%s6530_s4 + $0x20] ss:$8 sps:$4 sm:$0xff]  }
  0x31   : > { %4127 = vmatmul.mubr.bf16.vlgmr.msra.gmra.mxu0 %v4194_v20 }
  0x32   : > { %4130 = vmatprep.mubr.bf16.mxu0 %v4195_v23  ;;  %558 = vperm.xlu0 %4183, %v428_v32  }
  0x33   : > { %563 = vperm.xlu1 %4184, %v429_v34   ;;  %1437 = vmatpush1.bf16.msra.mxu0 %v4224_v4 }
  0x34   : > { %1438 = vmatprep.subr.bf16.mxu0 %v4232_v5  ;;  %v4235_v5 = vld [vmem:[%s6530_s4 + $0x14] ss:$8 sps:$4 sm:$0xff]  }
  0x36   : > { %528 = vperm.xlu0 %4183, %v422_v36  }
  0x37   : > { %533 = vperm.xlu1 %4184, %v423_v37   ;;  %1439 = vmatpush1.bf16.msra.mxu0 %v4230_v6 }
  0x38   : > { %1440 = vmatprep.subr.bf16.mxu0 %v4238_v7 }
  0x39   : > { %4131 = vmatmul.mubr.bf16.gmra.mxu0 %v4196_v27 }
  0x3a   : > { %4134 = vmatprep.mubr.bf16.mxu0 %v4197_v29  ;;  %568 = vperm.xlu0 %4183, %v430_v38  }
  0x3b   : > { %573 = vperm.xlu1 %4184, %v431_v40   ;;  %1441 = vmatpush1.bf16.msra.mxu0 %v4236_v8 }
  0x3c   : > { %1442 = vmatprep.subr.bf16.mxu0 %v4244_v9 }
  0x3e   : > { %538 = vperm.xlu0 %4183, %v424_v42  }
  0x3f   : > { %543 = vperm.xlu1 %4184, %v425_v43   ;;  %1443 = vmatpush1.bf16.msra.mxu0 %v4242_v10  ;;  %v4233_v10 = vld [vmem:[%s6530_s4 + $0x10] ss:$8 sps:$4 sm:$0xff]  }
  0x41   : > { %4135 = vmatmul.mubr.bf16.gmra.mxu0 %v4198_v33 }
  0x42   : > { %4138 = vmatprep.mubr.bf16.mxu0 %v4199_v35  ;;  %578 = vperm.xlu0 %4183, %v432_v44  }
  0x43   : > { %583 = vperm.xlu1 %4184, %v433_v46  }
  0x46   : > { %548 = vperm.xlu0 %4183, %v426_v48  }
  0x47   : > { %553 = vperm.xlu1 %4184, %v427_v49  }
  0x49   : > { %4139 = vmatmul.mubr.bf16.gmra.mxu0 %v4200_v39 }
  0x4a   : > { %4142 = vmatprep.mubr.bf16.mxu0 %v4201_v41  ;;  %588 = vperm.xlu0 %4183, %v434_v50  }
  0x4b   : > { %593 = vperm.xlu1 %4184, %v435_v52  }
  0x51   : > { %4143 = vmatmul.mubr.bf16.gmra.mxu0 %v4202_v45 }
  0x52   : > { %4146 = vmatprep.mubr.bf16.mxu0 %v4203_v47 }
  0x59   : > { %4147 = vmatmul.mubr.bf16.gmra.mxu0 %v4204_v51 }
  0x5a   : > { %4150 = vmatprep.mubr.bf16.mxu0 %v4205_v53 }
  0x61   : > { %4151 = vmatmul.mubr.bf16.gmra.mxu0 %v4206_v54 }
  0x62   : > { %4154 = vmatprep.mubr.bf16.mxu0 %v4207_v55 }
  0x69   : > { %4155 = vmatmul.mubr.bf16.gmra.mxu0 %v4208_v56 }
  0x6a   : > { %1460 = vmatprep.mubr.bf16.mxu0 %v6536_v1 }
  0x89   : > { %v479_v11 = vpop.permute.xlu0 %478  ;;  %v489_v12 = vpop.permute.xlu1 %488 }
  0x8d   : > { %v484_v13 = vpop.permute.xlu0 %483 }
  0x8e   : > { %v494_v14 = vpop.permute.xlu1 %493 }
  0x91   : > { %v4649_v15 = vpop.permute.xlu0 %498 }
  0x92   : > { %v4651_v16 = vpop.permute.xlu1 %503 }
  0x95   : > { %v4653_v17 = vpop.permute.xlu0 %508 }
  0x96   : > { %v4655_v18 = vpop.permute.xlu1 %513 }
  0x99   : > { %v4657_v19 = vpop.permute.xlu0 %438 }
  0x9a   : > { %v4659_v20 = vpop.permute.xlu1 %443 }
  0x9d   : > { %v4661_v21 = vpop.permute.xlu0 %448 }
  0x9e   : > { %v4663_v22 = vpop.permute.xlu1 %453 }
  0xa1   : > { %v4665_v23 = vpop.permute.xlu0 %458 }
  0xa2   : > { %v4667_v24 = vpop.permute.xlu1 %463 }
  0xa5   : > { %v469_v25 = vpop.permute.xlu0 %468 }
  0xa6   : > { %v474_v27 = vpop.permute.xlu1 %473 }
  0xa9   : > { %v4675_v30 = vpop.permute.xlu0 %518 }
  0xaa   : > { %v4679_v32 = vpop.permute.xlu1 %523 }
  0xad   : > { %v4683_v36 = vpop.permute.xlu0 %558 }
  0xae   : > { %v4685_v39 = vpop.permute.xlu1 %563 }
  0xb1   : > { %v4691_v45 = vpop.permute.xlu0 %528 }
  0xb2   : > { %v4693_v47 = vpop.permute.xlu1 %533 }
  0xb5   : > { %v4695_v52 = vpop.permute.xlu0 %568 }
  0xb6   : > { %v4697_v56 = vpop.permute.xlu1 %573 }
  0xb9   : > { %v4706_v0 = vpop.permute.xlu0 %538 }
  0xba   : > { %v4715_v6 = vpop.permute.xlu1 %543 }
  0xf1   : > { %v4669_v26 = vpop.f32.mrf.mxu0 }
  0xf3   : > { %v4671_v28 = vpop.f32.mrf.mxu0 }
  0xf5   : > { %v4673_v29 = vpop.f32.mrf.mxu0 }
  0xf7   : > { %v4677_v31 = vpop.f32.mrf.mxu0 }
  0xf9   : > { %v4132_v33 = vpop.f32.mrf.mxu0 }
  0xfa   : > { %v799_v35 = vadd.f32 %v4132_v33, %v469_v25  ;;  %v4734_v33 = vpop.permute.xlu1 %583 }
  0xfb   : > { %v4681_v34 = vpop.f32.mrf.mxu0 }
  0xfc   : > { %v907_v41 = vmax.f32 %v799_v35, 0.0 }
  0xfd   : > { %v4133_v37 = vpop.f32.mrf.mxu0 }
  0xfe   : > { %v802_v38 = vadd.f32 %v4133_v37, %v474_v27 }
  0xff   : > { %v4687_v40 = vpop.f32.mrf.mxu0 }
 0x100   : > { %v908_v42 = vmax.f32 %v802_v38, 0.0  ;;  %v4247_v38 = vld [vmem:[%s6530_s4 + $0xb4] ss:$8 sps:$4 sm:$0xff]  }
 0x101   : > { %v4136_v43 = vpop.f32.mrf.mxu0 }
 0x102   : > { %v4689_v44 = vpack.c.bf16 %v908_v42, %v907_v41  ;;  %v815_v63 = vadd.f32 %v4136_v43, %v489_v12 }
 0x103   : > { %v806_v46 = vpop.f32.mrf.mxu0 }
 0x104   : > { %v807_v49 = vadd.f32 %v806_v46, %v479_v11  ;;  %v911_v8 = vmax.f32 %v815_v63, 0.0 }
 0x105   : > { %v4137_v48 = vpop.f32.mrf.mxu0 }
 0x106   : > { %v909_v54 = vmax.f32 %v807_v49, 0.0  ;;  %v818_v59 = vadd.f32 %v4137_v48, %v494_v14  ;;  %v4728_v14 = vpop.permute.xlu0 %578 }
 0x107   : > { %v809_v50 = vpop.f32.mrf.mxu0 }
 0x108   : > { %v810_v51 = vadd.f32 %v809_v50, %v484_v13  ;;  %v912_v4 = vmax.f32 %v818_v59, 0.0  ;;  %v4241_v13 = vld [vmem:[%s6530_s4 + $0x4] ss:$8 sps:$4 sm:$0xff]   ;;  %v554_v50 = vpop.permute.xlu1 %553 }
 0x109   : > { %v4140_v53 = vpop.f32.mrf.mxu0 }
 0x10a   : > { %v910_v55 = vmax.f32 %v810_v51, 0.0  ;;  %v938_v11 = vpack.c.bf16 %v912_v4, %v911_v8  ;;  %v549_v42 = vpop.permute.xlu0 %548 }
 0x10b   : > { %v822_v57 = vpop.f32.mrf.mxu0 }
 0x10c   : > { %v937_v60 = vpack.c.bf16 %v910_v55, %v909_v54  ;;  %v823_v27 = vadd.f32 %v822_v57, %v4649_v15  ;;  %v831_v54 = vadd.f32 %v4140_v53, %v4653_v17  ;;  %v775_v53 = vadd.f32 %v4671_v28, %v4657_v19 }
 0x10d   : > { %v4141_v62 = vpop.f32.mrf.mxu0 }
 0x10e   : > { %3813 = vmatmul.mubr.msk.bf16.vlgmr.msra.gmra.mxu1 %vm6594_vm0, %v937_v60  ;;  %v913_v41 = vmax.f32 %v823_v27, 0.0  ;;  %v834_v46 = vadd.f32 %v4141_v62, %v4655_v18  ;;  %v915_v63 = vmax.f32 %v831_v54, 0.0  ;;  %v791_v54 = vadd.f32 %v4681_v34, %v4665_v23  ;;  %v594_v34 = vpop.permute.xlu1 %593 }
 0x10f   : > { %v825_v2 = vpop.f32.mrf.mxu0  ;;  %1061 = vmatprep.mubr.bf16.mxu1 %v6536_v1  ;;  %1153 = vmatpush1.bf16.msra.mxu1 %v4221_v58 }
 0x110   : > { %1154 = vmatprep.subr.bf16.mxu1 %v4229_v61  ;;  %v826_v12 = vadd.f32 %v825_v2, %v4651_v16  ;;  %v4239_v16 = vld [vmem:[%s6530_s4] ss:$8 sps:$4 sm:$0xff]   ;;  %v916_v58 = vmax.f32 %v834_v46, 0.0  ;;  %v778_v2 = vadd.f32 %v4677_v31, %v4659_v20  ;;  %v786_v31 = vadd.f32 %v4673_v29, %v4663_v22 }
 0x111   : > { %v4717_v7 = vpop.f32.mrf.mxu0  ;;  %v794_v46 = vadd.f32 %v4687_v40, %v4667_v24 }
 0x112   : > { %v914_v37 = vmax.f32 %v826_v12, 0.0  ;;  %v902_v8 = vmax.f32 %v778_v2, 0.0  ;;  %v901_v12 = vmax.f32 %v775_v53, 0.0  ;;  %v904_v22 = vmax.f32 %v786_v31, 0.0 }
 0x113   : > { %v4719_v9 = vpop.f32.mrf.mxu0  ;;  %1155 = vmatpush1.bf16.msra.mxu1 %v4227_v3  ;;  %v940_v3 = vpack.c.bf16 %v916_v58, %v915_v63  ;;  %v906_v24 = vmax.f32 %v794_v46, 0.0  ;;  %v905_v58 = vmax.f32 %v791_v54, 0.0 }
 0x114   : > { %1156 = vmatprep.subr.bf16.mxu1 %v4235_v5  ;;  %v939_v48 = vpack.c.bf16 %v914_v37, %v913_v41  ;;  %v839_v53 = vadd.f32 %v4719_v9, %v4675_v30 }
 0x115   : > { %v4730_v25 = vpop.f32.mrf.mxu0 }
 0x116   : > { %3814 = vmatmul.mubr.msk.bf16.gmra.mxu1 %vm6594_vm0, %v938_v11 }
 0x117   : > { %v4736_v35 = vpop.f32.mrf.mxu0  ;;  %1071 = vmatprep.mubr.bf16.mxu1 %v6536_v1  ;;  %1157 = vmatpush1.bf16.msra.mxu1 %v4233_v10 }
 0x118   : > { %1158 = vmatprep.subr.bf16.mxu1 %v4241_v13 }
 0x119   : > { %v4148_v15 = vpop.f32.mrf.mxu0 }
 0x11a   : > { %v863_v49 = vadd.f32 %v4148_v15, %v549_v42 }
 0x11b   : > { %v4745_v43 = vpop.f32.mrf.mxu0  ;;  %1159 = vmatpush1.bf16.msra.mxu1 %v4239_v16  ;;  %v933_v16 = vpack.c.bf16 %v902_v8, %v901_v12  ;;  %v850_v8 = vadd.f32 %v4730_v25, %v4693_v47 }
 0x11c   : > { %1286 = vmatprep.subr.bf16.mxu1 %v4247_v38  ;;  %v923_v59 = vmax.f32 %v863_v49, 0.0  ;;  %v783_v38 = vadd.f32 %v4669_v26, %v4661_v21  ;;  %v4253_v21 = vld [vmem:[%s6530_s4 + $0x94] ss:$8 sps:$4 sm:$0xff]  }
 0x11d   : > { %v4149_v51 = vpop.f32.mrf.mxu0  ;;  %v920_v30 = vmax.f32 %v850_v8, 0.0 }
 0x11e   : > { %v866_v55 = vadd.f32 %v4149_v51, %v554_v50  ;;  %3815 = vmatmul.mubr.msk.bf16.gmra.mxu1 %vm6594_vm0, %v939_v48  ;;  %v903_v26 = vmax.f32 %v783_v38, 0.0  ;;  %v4251_v50 = vld [vmem:[%s6530_s4 + $0x90] ss:$8 sps:$4 sm:$0xff]   ;;  %v4256_v51 = vld [vmem:[%s6530_s4 + $0x84] ss:$8 sps:$4 sm:$0xff]  }
 0x11f   : > { %v4750_v57 = vpop.f32.mrf.mxu0  ;;  %1081 = vmatprep.mubr.bf16.mxu1 %v6536_v1  ;;  %v4875_v38 = vld [vmem:[%s4836_s15 + $0x24] ss:$8 sps:$4 sm:$0xff]  }
 0x120   : > { %v924_v60 = vmax.f32 %v866_v55, 0.0  ;;  %v934_v42 = vpack.c.bf16 %v904_v22, %v903_v26  ;;  %6612 = vst [vmem:[#allocation10_spill] sm:$0xff] %v4875_v38  ;;  %v4885_v22 = vld [vmem:[%s4836_s15 + $0x10] ss:$8 sps:$4 sm:$0xff]  }
 0x121   : > { %v4152_v61 = vpop.f32.mrf.mxu0  ;;  %6614 = vst [vmem:[#allocation12_spill] sm:$0xff] %v4885_v22 }
 0x122   : > { %v4753_v18 = vpack.c.bf16 %v924_v60, %v923_v59  ;;  %v879_v15 = vadd.f32 %v4152_v61, %v4695_v52  ;;  %v589_v61 = vpop.permute.xlu0 %588 }
 0x123   : > { %v870_v62 = vpop.f32.mrf.mxu0 }
 0x124   : > { %v871_v4 = vadd.f32 %v870_v62, %v4683_v36  ;;  %v4245_v36 = vld [vmem:[%s6530_s4 + $0xb0] ss:$8 sps:$4 sm:$0xff]   ;;  %v927_v52 = vmax.f32 %v879_v15, 0.0 }
 0x125   : > { %v4153_v17 = vpop.f32.mrf.mxu0 }
 0x126   : > { %3816 = vmatmul.mubr.msk.bf16.gmra.mxu1 %vm6594_vm0, %v940_v3  ;;  %v925_v13 = vmax.f32 %v871_v4, 0.0  ;;  %v882_v19 = vadd.f32 %v4153_v17, %v4697_v56  ;;  %v4248_v56 = vld [vmem:[%s6530_s4 + $0xa0] ss:$8 sps:$4 sm:$0xff]   ;;  %v842_v3 = vadd.f32 %v4736_v35, %v4679_v32  ;;  %v847_v32 = vadd.f32 %v4717_v7, %v4691_v45 }
 0x127   : > { %v873_v5 = vpop.f32.mrf.mxu0  ;;  %1176 = vmatprep.mubr.bf16.mxu1 %v6536_v1  ;;  %v858_v35 = vadd.f32 %v4750_v57, %v4715_v6  ;;  %v1573_v7 = vlaneseq }
 0x128   : > { %v874_v10 = vadd.f32 %v873_v5, %v4685_v39  ;;  %v4250_v39 = vld [vmem:[%s6530_s4 + $0xa4] ss:$8 sps:$4 sm:$0xff]   ;;  %v928_v29 = vmax.f32 %v882_v19, 0.0  ;;  %v918_v4 = vmax.f32 %v842_v3, 0.0  ;;  %v917_v5 = vmax.f32 %v839_v53, 0.0 }
 0x129   : > { %v4156_v11 = vpop.f32.mrf.mxu0  ;;  %v919_v9 = vmax.f32 %v847_v32, 0.0  ;;  %v922_v47 = vmax.f32 %v858_v35, 0.0  ;;  %v1574_v12 = vand.u32 127, %v1573_v7  ;;  %v1583_v57 = vshrl.u32 %v1573_v7, 7 }
 0x12a   : > { %v926_v27 = vmax.f32 %v874_v10, 0.0  ;;  %v946_v48 = vpack.c.bf16 %v928_v29, %v927_v52  ;;  %v895_v63 = vadd.f32 %v4156_v11, %v589_v61  ;;  %v941_v10 = vpack.c.bf16 %v918_v4, %v917_v5  ;;  %v4915_v52 = vld [vmem:[%s4836_s15 + $0x4] ss:$8 sps:$4 sm:$0xff]  }
 0x12b   : > { %v886_v20 = vpop.f32.mrf.mxu0  ;;  %v855_v11 = vadd.f32 %v4745_v43, %v4706_v0  ;;  %v1584_v0 = vsub.s32 0, %v1583_v57  ;;  %v1588_v31 = vsub.s32 4, %v1583_v57  ;;  %6620 = vst [vmem:[#allocation18_spill] sm:$0xff] %v4915_v52 }
 0x12c   : > { %v945_v28 = vpack.c.bf16 %v926_v27, %v925_v13  ;;  %v887_v55 = vadd.f32 %v886_v20, %v4728_v14  ;;  %v935_v14 = vpack.c.bf16 %v906_v24, %v905_v58  ;;  %v931_v2 = vmax.f32 %v895_v63, 0.0 }
 0x12d   : > { %v4157_v37 = vpop.f32.mrf.mxu0  ;;  %v921_v45 = vmax.f32 %v855_v11, 0.0  ;;  %v1575_v13 = vadd.s32 128, %v1574_v12  ;;  %v1576_v27 = vand.u32 15, %v1574_v12 }
 0x12e   : > { %3825 = vmatmul.mubr.msk.bf16.vlgmr.msra.gmra.mxu1 %vm6594_vm0, %v933_v16  ;;  %3865 = vmatmul.mubr.msk.bf16.vlgmr.msra.gmra.mxu0 %vm6594_vm0, %v945_v28  ;;  %v929_v23 = vmax.f32 %v887_v55, 0.0  ;;  %v898_v59 = vadd.f32 %v4157_v37, %v594_v34  ;;  %v4843_v16 = vld [vmem:[%s4836_s15 + $0x30] ss:$8 sps:$4 sm:$0xff]   ;;  %v4865_v37 = vld [vmem:[%s4836_s15 + $0x20] ss:$8 sps:$4 sm:$0xff]  }
 0x12f   : > { %1186 = vmatprep.mubr.bf16.mxu1 %v6536_v1  ;;  %1470 = vmatprep.mubr.bf16.mxu0 %v6536_v1  ;;  %v889_v41 = vpop.f32.mrf.mxu0  ;;  %v943_v25 = vpack.c.bf16 %v922_v47, %v921_v45  ;;  %v1577_v6 = vand.u32 15, %v1575_v13  ;;  %vm1578_vm1 = vcmp.eq.s32.totalorder %v1576_v27, 15  ;;  %6605 = vst [vmem:[#allocation3_spill] sm:$0xff] %v4843_v16  ;;  %6610 = vst [vmem:[#allocation8_spill] sm:$0xff] %v4865_v37  ;;  %vm1608_vm6 = vcmp.eq.s32.totalorder %v1576_v27, 0 }
 0x130   : > { %1287 = vmatpush1.bf16.msra.mxu1 %v4245_v36  ;;  %v890_v49 = vadd.f32 %v889_v41, %v4734_v33  ;;  %v4254_v33 = vld [vmem:[%s6530_s4 + $0x80] ss:$8 sps:$4 sm:$0xff]   ;;  %v932_v62 = vmax.f32 %v898_v59, 0.0  ;;  %v4854_v36 = vld [vmem:[%s4836_s15 + $0x34] ss:$8 sps:$4 sm:$0xff]  }
 0x131   : > { %1288 = vmatprep.subr.bf16.mxu1 %v4250_v39  ;;  %vm1579_vm2 = vcmp.eq.s32.totalorder %v1577_v6, 15  ;;  %6608 = vst [vmem:[#allocation6_spill] sm:$0xff] %v4854_v36  ;;  %vm1609_vm7 = vcmp.eq.s32.totalorder %v1577_v6, 0 }
 0x132   : > { %v930_v40 = vmax.f32 %v890_v49, 0.0  ;;  %v948_v17 = vpack.c.bf16 %v932_v62, %v931_v2  ;;  %vm1580_vm3 = vmpackc.low %vm1579_vm2, %vm1578_vm1  ;;  %vm1933_vm2 = vcmask 7168  }
 0x133   : > { %v1581_v43 = vsel %vm1580_vm3, 65537, %v6536_v1  ;;  %vm1610_vm8 = vmpackc.low %vm1609_vm7, %vm1608_vm6  ;;  %vm2081_vm6 = vcmask 924672   ;;  %vm2007_vm7 = vcmask 1039360  }
 0x134   : > { %1289 = vmatpush1.bf16.msra.mxu1 %v4248_v56  ;;  %v947_v60 = vpack.c.bf16 %v930_v40, %v929_v23  ;;  %v4838_v20 = vrot.slane %v1581_v43, %v1584_v0  ;;  %v4846_v19 = vrot.slane %v1581_v43, %v1588_v31  ;;  %v4895_v56 = vld [vmem:[%s4836_s15 + $0x14] ss:$8 sps:$4 sm:$0xff]   ;;  %vm5490_vm1 = vmneg %vm1859_vm14 }
 0x135   : > { %1290 = vmatprep.subr.bf16.mxu1 %v4253_v21  ;;  %6616 = vst [vmem:[#allocation14_spill] sm:$0xff] %v4895_v56  ;;  %v4905_v21 = vld [vmem:[%s4836_s15] ss:$8 sps:$4 sm:$0xff]   ;;  %vm5657_vm3 = vmneg %vm1933_vm2 }
 0x136   : > { %3826 = vmatmul.mubr.msk.bf16.gmra.mxu1 %vm6594_vm0, %v934_v42  ;;  %3866 = vmatmul.mubr.msk.bf16.gmra.mxu0 %vm6594_vm0, %v946_v48  ;;  %6604 = vst [vmem:[#allocation2_spill] sm:$0xff] %v4838_v20  ;;  %vm1590_vm4 = vcmp.ne.s16.totalorder %v4838_v20, 0  ;;  %6606 = vst [vmem:[#allocation4_spill] sm:$0xff] %v4846_v19  ;;  %vm1591_vm5 = vcmp.ne.s16.totalorder %v4846_v19, 0  ;;  %v1611_v42 = vsel %vm1610_vm8, 65537, %v6536_v1  ;;  %vm2155_vm8 = vcmask 916480  }
 0x137   : > { %1196 = vmatprep.mubr.bf16.mxu1 %v6536_v1  ;;  %1480 = vmatprep.mubr.bf16.mxu0 %v6536_v1  ;;  %v4851_v28 = vsel %vm1590_vm4, 0, %v4843_v16  ;;  %v4872_v39 = vsel %vm1590_vm4, 0, %v4865_v37  ;;  %v4882_v15 = vsel %vm1591_vm5, 0, %v4875_v38  ;;  %v4892_v29 = vsel %vm1590_vm4, 0, %v4885_v22  ;;  %6618 = vst [vmem:[#allocation16_spill] sm:$0xff] %v4905_v21 }
 0x138   : > { %1291 = vmatpush1.bf16.msra.mxu1 %v4251_v50  ;;  %6607 = vst [vmem:[#allocation5_spill] sm:$0xff] %v4851_v28  ;;  %1666 = vrot.lane.b32.xlu0 %v4851_v28, %s4366_s13  ;;  %6611 = vst [vmem:[#allocation9_spill] sm:$0xff] %v4872_v39  ;;  %v4902_v41 = vsel %vm1591_vm5, 0, %v4895_v56  ;;  %v4912_v26 = vsel %vm1590_vm4, 0, %v4905_v21  ;;  %v4920_v46 = vrot.slane %v1611_v42, %v1584_v0  ;;  %v4925_v48 = vsel %vm1591_vm5, 0, %v4915_v52 }
 0x139   : > { %1292 = vmatprep.subr.bf16.mxu1 %v4256_v51  ;;  %6613 = vst [vmem:[#allocation11_spill] sm:$0xff] %v4882_v15  ;;  %6615 = vst [vmem:[#allocation13_spill] sm:$0xff] %v4892_v29  ;;  %v4930_v49 = vrot.slane %v1611_v42, %v1588_v31 }
 0x13a   : > { %6617 = vst [vmem:[#allocation15_spill] sm:$0xff] %v4902_v41  ;;  %6619 = vst [vmem:[#allocation17_spill] sm:$0xff] %v4912_v26  ;;  %vm1620_vm9 = vcmp.ne.s16.totalorder %v4920_v46, 0 }
 0x13b   : > { %6621 = vst [vmem:[#allocation19_spill] sm:$0xff] %v4920_v46  ;;  %6622 = vst [vmem:[#allocation20_spill] sm:$0xff] %v4925_v48  ;;  %v4935_v50 = vsel %vm1620_vm9, 0, %v4843_v16  ;;  %vm1621_vm10 = vcmp.ne.s16.totalorder %v4930_v49, 0  ;;  %v4954_v54 = vsel %vm1620_vm9, 0, %v4865_v37  ;;  %v4972_v24 = vsel %vm1620_vm9, 0, %v4885_v22 }
 0x13c   : > { %1293 = vmatpush1.bf16.msra.mxu1 %v4254_v33  ;;  %1662 = vrot.lane.b32.xlu0 %v4872_v39, %s4366_s13  ;;  %6623 = vst [vmem:[#allocation21_spill] sm:$0xff] %v4930_v49  ;;  %6624 = vst [vmem:[#allocation22_spill] sm:$0xff] %v4935_v50  ;;  %v4943_v51 = vsel %vm1621_vm10, 0, %v4854_v36  ;;  %v4961_v55 = vsel %vm1621_vm10, 0, %v4875_v38  ;;  %v4979_v40 = vsel %vm1621_vm10, 0, %v4895_v56  ;;  %v4990_v33 = vsel %vm1620_vm9, 0, %v4905_v21 }
 0x13d   : > { %6625 = vst [vmem:[#allocation23_spill] sm:$0xff] %v4943_v51  ;;  %6626 = vst [vmem:[#allocation24_spill] sm:$0xff] %v4954_v54  ;;  %v4997_v58 = vsel %vm1621_vm10, 0, %v4915_v52 }
 0x13e   : > { %3827 = vmatmul.mubr.msk.bf16.gmra.mxu1 %vm6594_vm0, %v935_v14  ;;  %3867 = vmatmul.mubr.msk.bf16.gmra.mxu0 %vm6594_vm0, %v947_v60  ;;  %6627 = vst [vmem:[#allocation25_spill] sm:$0xff] %v4961_v55  ;;  %6628 = vst [vmem:[#allocation26_spill] sm:$0xff] %v4972_v24 }
 0x13f   : > { %1206 = vmatprep.mubr.bf16.mxu1 %v6536_v1  ;;  %1490 = vmatprep.mubr.bf16.mxu0 %v6536_v1  ;;  %6629 = vst [vmem:[#allocation27_spill] sm:$0xff] %v4979_v40  ;;  %6630 = vst [vmem:[#allocation28_spill] sm:$0xff] %v4990_v33 }
 0x140   : > { %1658 = vrot.lane.b32.xlu0 %v4892_v29, %s4366_s13  ;;  %6631 = vst [vmem:[#allocation29_spill] sm:$0xff] %v4997_v58 }
 0x144   : > { %1654 = vrot.lane.b32.xlu0 %v4912_v26, %s4366_s13 }
 0x145   : > { %v6654_v49 = vld [vmem:[#allocation26_spill] sm:$0xff] }
 0x146   : > { %3828 = vmatmul.mubr.msk.bf16.gmra.mxu1 %vm6594_vm0, %v4689_v44  ;;  %3868 = vmatmul.mubr.msk.bf16.gmra.mxu0 %vm6594_vm0, %v948_v17  ;;  %v942_v44 = vpack.c.bf16 %v920_v30, %v919_v9 }
 0x147   : > { %1310 = vmatprep.mubr.bf16.mxu1 %v6536_v1  ;;  %v6655_v46 = vld [vmem:[#allocation29_spill] sm:$0xff] }
 0x148   : > { %1839 = vrot.lane.b32.xlu0 %v4935_v50, %s4367_s17 }
 0x14c   : > { %1749 = vrot.lane.b32.xlu0 %v4843_v16, %s4368_s18 }
 0x14e   : > { %3845 = vmatmul.mubr.msk.bf16.vlgmr.msra.gmra.mxu1 %vm6594_vm0, %v941_v10 }
 0x14f   : > { %1320 = vmatprep.mubr.bf16.mxu1 %v6536_v1 }
 0x150   : > { %1835 = vrot.lane.b32.xlu0 %v4954_v54, %s4367_s17 }
 0x154   : > { %1745 = vrot.lane.b32.xlu0 %v4865_v37, %s4368_s18 }
 0x156   : > { %3846 = vmatmul.mubr.msk.bf16.gmra.mxu1 %vm6594_vm0, %v942_v44 }
 0x157   : > { %1330 = vmatprep.mubr.bf16.mxu1 %v6536_v1 }
 0x158   : > { %1831 = vrot.lane.b32.xlu0 %v4972_v24, %s4367_s17 }
 0x15c   : > { %1741 = vrot.lane.b32.xlu0 %v4885_v22, %s4368_s18 }
 0x15e   : > { %3847 = vmatmul.mubr.msk.bf16.gmra.mxu1 %vm6594_vm0, %v943_v25 }
 0x15f   : > { %1340 = vmatprep.mubr.bf16.mxu1 %v6536_v1 }
 0x160   : > { %1827 = vrot.lane.b32.xlu0 %v4990_v33, %s4367_s17 }
 0x164   : > { %1737 = vrot.lane.b32.xlu0 %v4905_v21, %s4368_s18 }
 0x166   : > { %3848 = vmatmul.mubr.msk.bf16.gmra.mxu1 %vm6594_vm0, %v4753_v18  ;;  %v4862_v18 = vsel %vm1591_vm5, 0, %v4854_v36  ;;  %vm2229_vm0 = vcmask 908288  }
 0x167   : > { %6609 = vst [vmem:[#allocation7_spill] sm:$0xff] %v4862_v18  ;;  %1668 = vrot.lane.b32.xlu1 %v4862_v18, %s4366_s13 }
 0x16b   : > { %1664 = vrot.lane.b32.xlu1 %v4882_v15, %s4366_s13 }
 0x16f   : > { %1660 = vrot.lane.b32.xlu1 %v4902_v41, %s4366_s13 }
 0x173   : > { %1656 = vrot.lane.b32.xlu1 %v4925_v48, %s4366_s13 }
 0x177   : > { %1841 = vrot.lane.b32.xlu1 %v4943_v51, %s4367_s17 }
 0x17b   : > { %1751 = vrot.lane.b32.xlu1 %v4854_v36, %s4368_s18 }
 0x17f   : > { %1837 = vrot.lane.b32.xlu1 %v4961_v55, %s4367_s17 }
 0x183   : > { %1747 = vrot.lane.b32.xlu1 %v4875_v38, %s4368_s18 }
 0x187   : > { %1833 = vrot.lane.b32.xlu1 %v4979_v40, %s4367_s17 }
 0x18b   : > { %1743 = vrot.lane.b32.xlu1 %v4895_v56, %s4368_s18 }
 0x18f   : > { %1829 = vrot.lane.b32.xlu1 %v4997_v58, %s4367_s17 }
 0x193   : > { %1739 = vrot.lane.b32.xlu1 %v4915_v52, %s4368_s18 }
 0x1ce   : > { %v1053_v23 = vpop.f32.mrf.mxu1 }
 0x1d0   : > { %v1055_v34 = vpop.f32.mrf.mxu1 }
 0x1d2   : > { %v1057_v14 = vpop.f32.mrf.mxu1 }
 0x1d4   : > { %v1059_v59 = vpop.f32.mrf.mxu1 }
 0x1d6   : > { %v1063_v60 = vpop.f32.mrf.mxu1 }
 0x1d8   : > { %v1065_v61 = vpop.f32.mrf.mxu1 }
 0x1da   : > { %v1067_v63 = vpop.f32.mrf.mxu1 }
 0x1dc   : > { %v1069_v62 = vpop.f32.mrf.mxu1 }
 0x1de   : > { %v5005_v2 = vpop.f32.mrf.mxu1 }
 0x1e0   : > { %v5007_v3 = vpop.f32.mrf.mxu1 }
 0x1e2   : > { %v5009_v17 = vpop.f32.mrf.mxu1 }
 0x1e4   : > { %v5011_v53 = vpop.f32.mrf.mxu1 }
 0x1e6   : > { %v5013_v4 = vpop.f32.mrf.mxu1 }
 0x1e8   : > { %v5015_v5 = vpop.f32.mrf.mxu1 }
 0x1ea   : > { %v5017_v8 = vpop.f32.mrf.mxu1 }
 0x1ec   : > { %v5019_v10 = vpop.f32.mrf.mxu1 }
 0x1ee   : > { %v1178_v32 = vpop.f32.mrf.mxu1  ;;  %v1462_v9 = vpop.f32.mrf.mxu0 }
 0x1ef   : > { %v1179_v37 = vadd.f32 %v1178_v32, %v1053_v23 }
 0x1f0   : > { %v1180_v30 = vpop.f32.mrf.mxu1  ;;  %v1464_v11 = vpop.f32.mrf.mxu0 }
 0x1f1   : > { %v1181_v36 = vadd.f32 %v1180_v30, %v1055_v34 }
 0x1f2   : > { %v1182_v44 = vpop.f32.mrf.mxu1  ;;  %v1466_v7 = vpop.f32.mrf.mxu0 }
 0x1f3   : > { %v1183_v33 = vadd.f32 %v1182_v44, %v1057_v14 }
 0x1f4   : > { %v1184_v35 = vpop.f32.mrf.mxu1  ;;  %v1468_v13 = vpop.f32.mrf.mxu0 }
 0x1f5   : > { %v1185_v54 = vadd.f32 %v1184_v35, %v1059_v59 }
 0x1f6   : > { %v1188_v47 = vpop.f32.mrf.mxu1  ;;  %v1472_v57 = vpop.f32.mrf.mxu0 }
 0x1f7   : > { %v1189_v28 = vadd.f32 %v1188_v47, %v1063_v60 }
 0x1f8   : > { %v1190_v45 = vpop.f32.mrf.mxu1  ;;  %v1474_v31 = vpop.f32.mrf.mxu0 }
 0x1f9   : > { %v1191_v34 = vadd.f32 %v1190_v45, %v1065_v61 }
 0x1fa   : > { %v1192_v25 = vpop.f32.mrf.mxu1  ;;  %v1476_v52 = vpop.f32.mrf.mxu0 }
 0x1fb   : > { %v1193_v14 = vadd.f32 %v1192_v25, %v1067_v63 }
 0x1fc   : > { %v1194_v12 = vpop.f32.mrf.mxu1  ;;  %v1478_v22 = vpop.f32.mrf.mxu0 }
 0x1fe   : > { %v1198_v27 = vpop.f32.mrf.mxu1  ;;  %v1482_v24 = vpop.f32.mrf.mxu0 }
 0x200   : > { %v1200_v6 = vpop.f32.mrf.mxu1  ;;  %v1484_v39 = vpop.f32.mrf.mxu0 }
 0x201   : > { %v1201_v63 = vadd.f32 %v1200_v6, %v5007_v3 }
 0x202   : > { %v1202_v0 = vpop.f32.mrf.mxu1 }
 0x204   : > { %v5021_v43 = vpop.f32.mrf.mxu1 }
 0x205   : > { %v1205_v35 = vadd.f32 %v5021_v43, %v5011_v53 }
 0x206   : > { %v5023_v42 = vpop.f32.mrf.mxu1 }
 0x208   : > { %v5025_v1 = vpop.f32.mrf.mxu1 }
 0x20a   : > { %v5027_v21 = vpop.f32.mrf.mxu1 }
 0x20b   : > { %v1213_v43 = vadd.f32 %v5027_v21, %v5017_v8 }
 0x20c   : > { %v5029_v56 = vpop.f32.mrf.mxu1 }
 0x20e   : > { %v1312_v38 = vpop.f32.mrf.mxu1 }
 0x20f   : > { %v1351_v58 = vadd.f32 %v1312_v38, %v1179_v37 }
 0x210   : > { %v1314_v16 = vpop.f32.mrf.mxu1 }
 0x211   : > { %v1352_v55 = vadd.f32 %v1314_v16, %v1181_v36  ;;  %v1501_v26 = vadd.f32 %v1462_v9, %v1351_v58  ;;  %v1486_v16 = vpop.f32.mrf.mxu0 }
 0x212   : > { %v1316_v40 = vpop.f32.mrf.mxu1 }
 0x213   : > { %v1353_v50 = vadd.f32 %v1316_v40, %v1183_v33  ;;  %v1502_v15 = vadd.f32 %v1464_v11, %v1352_v55  ;;  %v1199_v33 = vadd.f32 %v1198_v27, %v5005_v2 }
 0x214   : > { %v1318_v51 = vpop.f32.mrf.mxu1 }
 0x215   : > { %v1503_v29 = vadd.f32 %v1466_v7, %v1353_v50  ;;  %v1354_v48 = vadd.f32 %v1318_v51, %v1185_v54  ;;  %v1195_v50 = vadd.f32 %v1194_v12, %v1069_v62  ;;  %v1203_v62 = vadd.f32 %v1202_v0, %v5009_v17 }
 0x216   : > { %v1322_v41 = vpop.f32.mrf.mxu1  ;;  %v1211_v0 = vadd.f32 %v5025_v1, %v5015_v5 }
 0x217   : > { %v5031_v18 = vpack.c.bf16 %v1503_v29, %v1501_v26  ;;  %v1504_v23 = vadd.f32 %v1468_v13, %v1354_v48  ;;  %v1355_v38 = vadd.f32 %v1322_v41, %v1189_v28  ;;  %v1488_v41 = vpop.f32.mrf.mxu0  ;;  %v1209_v13 = vadd.f32 %v5023_v42, %v5013_v4 }
 0x218   : > { %v1324_v32 = vpop.f32.mrf.mxu1 }
 0x219   : > { %v5033_v37 = vpack.c.bf16 %v1504_v23, %v1502_v15  ;;  %1753 = vrot.lane.b32.xlu0 %v5031_v18, %s4368_s18  ;;  %v1356_v51 = vadd.f32 %v1324_v32, %v1191_v34  ;;  %v5042_v26 = vsel %vm1590_vm4, 0, %v5031_v18  ;;  %v1505_v15 = vadd.f32 %v1472_v57, %v1355_v38 }
 0x21a   : > { %v1326_v36 = vpop.f32.mrf.mxu1  ;;  %v5059_v61 = vsel %vm1620_vm9, 0, %v5031_v18  ;;  %v1215_v32 = vadd.f32 %v5029_v56, %v5019_v10 }
 0x21b   : > { %v1357_v54 = vadd.f32 %v1326_v36, %v1193_v14  ;;  %1755 = vrot.lane.b32.xlu1 %v5033_v37, %s4368_s18  ;;  %v5049_v40 = vsel %vm1591_vm5, 0, %v5033_v37  ;;  %v1506_v58 = vadd.f32 %v1474_v31, %v1356_v51  ;;  %v5070_v44 = vsel %vm1621_vm10, 0, %v5033_v37 }
 0x21c   : > { %v1328_v29 = vpop.f32.mrf.mxu1 }
 0x21d   : > { %v1507_v48 = vadd.f32 %v1476_v52, %v1357_v54  ;;  %v1358_v28 = vadd.f32 %v1328_v29, %v1195_v50  ;;  %1670 = vrot.lane.b32.xlu0 %v5042_v26, %s4366_s13 }
 0x21e   : > { %v1332_v55 = vpop.f32.mrf.mxu1 }
 0x21f   : > { %v5052_v59 = vpack.c.bf16 %v1507_v48, %v1505_v15  ;;  %v1508_v60 = vadd.f32 %v1478_v22, %v1358_v28  ;;  %1672 = vrot.lane.b32.xlu1 %v5049_v40, %s4366_s13  ;;  %v1359_v2 = vadd.f32 %v1332_v55, %v1199_v33  ;;  %v1492_v22 = vpop.f32.mrf.mxu0  ;;  %v5156_v28 = vpop.permute.xlu0 %1666 }
 0x220   : > { %v1334_v52 = vpop.f32.mrf.mxu1  ;;  %v5162_v55 = vpop.permute.xlu1 %1668 }
 0x221   : > { %v5063_v30 = vpack.c.bf16 %v1508_v60, %v1506_v58  ;;  %1843 = vrot.lane.b32.xlu0 %v5059_v61, %s4367_s17  ;;  %v1360_v11 = vadd.f32 %v1334_v52, %v1201_v63  ;;  %v1509_v47 = vadd.f32 %v1482_v24, %v1359_v2  ;;  %v1494_v25 = vpop.f32.mrf.mxu0  ;;  %v5087_v24 = vsel %vm1590_vm4, 0, %v5052_v59  ;;  %v6637_v2 = vld [vmem:[#allocation7_spill] sm:$0xff] }
 0x222   : > { %v1336_v9 = vpop.f32.mrf.mxu1  ;;  %v5109_v8 = vsel %vm1620_vm9, 0, %v5052_v59 }
 0x223   : > { %6632 = vst [vmem:[#allocation30_spill] sm:$0xff] %v5063_v30  ;;  %v1361_v3 = vadd.f32 %v1336_v9, %v1203_v62  ;;  %1845 = vrot.lane.b32.xlu1 %v5070_v44, %s4367_s17  ;;  %v1510_v27 = vadd.f32 %v1484_v39, %v1360_v11  ;;  %v1496_v31 = vpop.f32.mrf.mxu0  ;;  %v5100_v23 = vsel %vm1591_vm5, 0, %v5063_v30  ;;  %v5116_v56 = vsel %vm1621_vm10, 0, %v5063_v30  ;;  %v5173_v58 = vpop.permute.xlu0 %1662  ;;  %v6638_v9 = vld [vmem:[#allocation11_spill] sm:$0xff]  ;;  %v6639_v11 = vld [vmem:[#allocation5_spill] sm:$0xff] }
 0x224   : > { %v1338_v17 = vpop.f32.mrf.mxu1  ;;  %v5177_v60 = vpop.permute.xlu1 %1664 }
 0x225   : > { %v1511_v45 = vadd.f32 %v1486_v16, %v1361_v3  ;;  %v1362_v7 = vadd.f32 %v1338_v17, %v1205_v35  ;;  %1757 = vrot.lane.b32.xlu0 %v5052_v59, %s4368_s18  ;;  %v1498_v16 = vpop.f32.mrf.mxu0  ;;  %v6640_v3 = vld [vmem:[#allocation15_spill] sm:$0xff] }
 0x226   : > { %v1342_v12 = vpop.f32.mrf.mxu1 }
 0x227   : > { %v5080_v6 = vpack.c.bf16 %v1511_v45, %v1509_v47  ;;  %v1512_v53 = vadd.f32 %v1488_v41, %v1362_v7  ;;  %1759 = vrot.lane.b32.xlu1 %v5063_v30, %s4368_s18  ;;  %v1363_v39 = vadd.f32 %v1342_v12, %v1209_v13  ;;  %v5188_v63 = vpop.permute.xlu0 %1658  ;;  %v6641_v47 = vld [vmem:[#allocation9_spill] sm:$0xff]  ;;  %v6642_v7 = vld [vmem:[#allocation20_spill] sm:$0xff] }
 0x228   : > { %v1344_v57 = vpop.f32.mrf.mxu1  ;;  %v5191_v62 = vpop.permute.xlu1 %1660 }
 0x229   : > { %6633 = vst [vmem:[#allocation31_spill] sm:$0xff] %v5080_v6  ;;  %v5093_v4 = vpack.c.bf16 %v1512_v53, %v1510_v27  ;;  %1674 = vrot.lane.b32.xlu0 %v5087_v24, %s4366_s13  ;;  %v1364_v1 = vadd.f32 %v1344_v57, %v1211_v0  ;;  %v1513_v34 = vadd.f32 %v1492_v22, %v1363_v39  ;;  %v1604_v54 = vsel %vm1590_vm4, 0, %v5080_v6  ;;  %v6644_v27 = vld [vmem:[#allocation17_spill] sm:$0xff] }
 0x22a   : > { %v1346_v42 = vpop.f32.mrf.mxu1  ;;  %v5139_v15 = vsel %vm1620_vm9, 0, %v5080_v6 }
 0x22b   : > { %6634 = vst [vmem:[#allocation32_spill] sm:$0xff] %v5093_v4  ;;  %v1365_v5 = vadd.f32 %v1346_v42, %v1213_v43  ;;  %1676 = vrot.lane.b32.xlu1 %v5100_v23, %s4366_s13  ;;  %v1514_v10 = vadd.f32 %v1494_v25, %v1364_v1  ;;  %v1605_v29 = vsel %vm1591_vm5, 0, %v5093_v4  ;;  %v5146_v48 = vsel %vm1621_vm10, 0, %v5093_v4  ;;  %v5197_v22 = vpop.permute.xlu0 %1654  ;;  %v6643_v25 = vld [vmem:[#allocation13_spill] sm:$0xff] }
 0x22c   : > { %v1348_v21 = vpop.f32.mrf.mxu1  ;;  %v5201_v35 = vpop.permute.xlu1 %1656 }
 0x22d   : > { %v1515_v14 = vadd.f32 %v1496_v31, %v1365_v5  ;;  %v1366_v38 = vadd.f32 %v1348_v21, %v1215_v32  ;;  %1847 = vrot.lane.b32.xlu0 %v5109_v8, %s4367_s17  ;;  %v4271_v32 = vld [vmem:[%s6531_s5 + $0x4] ss:$36 sps:$4 sm:$0xff]  }
 0x22e   : > { %2575 = vmatprep.mubr.bf16.mxu1 %v4271_v32  ;;  %v6647_v5 = vld [vmem:[#allocation23_spill] sm:$0xff] }
 0x22f   : > { %v5118_v36 = vpack.c.bf16 %v1515_v14, %v1513_v34  ;;  %v1516_v50 = vadd.f32 %v1498_v16, %v1366_v38  ;;  %1849 = vrot.lane.b32.xlu1 %v5116_v56, %s4367_s17  ;;  %v5207_v17 = vpop.permute.xlu0 %1839  ;;  %v6650_v38 = vld [vmem:[#allocation22_spill] sm:$0xff]  ;;  %v6651_v16 = vld [vmem:[#allocation25_spill] sm:$0xff] }
 0x230   : > { %v5211_v45 = vpop.permute.xlu1 %1841 }
 0x231   : > { %6635 = vst [vmem:[#allocation33_spill] sm:$0xff] %v5118_v36  ;;  %v5122_v51 = vpack.c.bf16 %v1516_v50, %v1514_v10  ;;  %1761 = vrot.lane.b32.xlu0 %v5080_v6, %s4368_s18  ;;  %v1606_v41 = vsel %vm1590_vm4, 0, %v5118_v36  ;;  %v5182_v52 = vsel %vm1620_vm9, 0, %v5118_v36 }
 0x233   : > { %6636 = vst [vmem:[#allocation34_spill] sm:$0xff] %v5122_v51  ;;  %1763 = vrot.lane.b32.xlu1 %v5093_v4, %s4368_s18  ;;  %v5167_v33 = vsel %vm1591_vm5, 0, %v5122_v51  ;;  %v5217_v12 = vpop.permute.xlu0 %1749  ;;  %v5227_v53 = vsel %vm1621_vm10, 0, %v5122_v51 }
 0x234   : > { %v5220_v13 = vpop.permute.xlu1 %1751 }
 0x235   : > { %1678 = vrot.lane.b32.xlu0 %v1604_v54, %s4366_s13 }
 0x237   : > { %1680 = vrot.lane.b32.xlu1 %v1605_v29, %s4366_s13  ;;  %v5231_v57 = vpop.permute.xlu0 %1835 }
 0x238   : > { %v5234_v0 = vpop.permute.xlu1 %1837 }
 0x239   : > { %1851 = vrot.lane.b32.xlu0 %v5139_v15, %s4367_s17 }
 0x23b   : > { %1853 = vrot.lane.b32.xlu1 %v5146_v48, %s4367_s17  ;;  %v5240_v43 = vpop.permute.xlu0 %1745 }
 0x23c   : > { %v5244_v39 = vpop.permute.xlu1 %1747 }
 0x23d   : > { %1925 = vrot.lane.b32.xlu0 %v1604_v54, %s4369_s19 }
 0x23f   : > { %1927 = vrot.lane.b32.xlu1 %v1605_v29, %s4369_s19  ;;  %v5249_v31 = vpop.permute.xlu0 %1831 }
 0x240   : > { %v5253_v42 = vpop.permute.xlu1 %1833 }
 0x241   : > { %1765 = vrot.lane.b32.xlu0 %v5118_v36, %s4368_s18 }
 0x243   : > { %1767 = vrot.lane.b32.xlu1 %v5122_v51, %s4368_s18 }
 0x244   : > { %v5266_v1 = vpop.permute.xlu1 %1743 }
 0x245   : > { %1682 = vrot.lane.b32.xlu0 %v1606_v41, %s4366_s13 }
 0x247   : > { %1684 = vrot.lane.b32.xlu1 %v5167_v33, %s4366_s13 }
 0x249   : > { %1921 = vrot.lane.b32.xlu0 %v5087_v24, %s4369_s19 }
 0x24b   : > { %1923 = vrot.lane.b32.xlu1 %v5100_v23, %s4369_s19 }
 0x24d   : > { %1855 = vrot.lane.b32.xlu0 %v5182_v52, %s4367_s17 }
 0x24f   : > { %1919 = vrot.lane.b32.xlu1 %v5049_v40, %s4369_s19 }
 0x251   : > { %1929 = vrot.lane.b32.xlu0 %v1606_v41, %s4369_s19 }
 0x253   : > { %1915 = vrot.lane.b32.xlu1 %v6637_v2, %s4369_s19 }
 0x255   : > { %1917 = vrot.lane.b32.xlu0 %v5042_v26, %s4369_s19 }
 0x257   : > { %1911 = vrot.lane.b32.xlu1 %v6638_v9, %s4369_s19 }
 0x259   : > { %1913 = vrot.lane.b32.xlu0 %v6639_v11, %s4369_s19 }
 0x25b   : > { %1907 = vrot.lane.b32.xlu1 %v6640_v3, %s4369_s19 }
 0x25d   : > { %1909 = vrot.lane.b32.xlu0 %v6641_v47, %s4369_s19 }
 0x25f   : > { %1903 = vrot.lane.b32.xlu1 %v6642_v7, %s4369_s19 }
 0x261   : > { %1905 = vrot.lane.b32.xlu0 %v6643_v25, %s4369_s19 }
 0x263   : > { %2075 = vrot.lane.b32.xlu1 %v1605_v29, %s4370_s20 }
 0x265   : > { %1901 = vrot.lane.b32.xlu0 %v6644_v27, %s4369_s19 }
 0x267   : > { %1857 = vrot.lane.b32.xlu1 %v5227_v53, %s4367_s17 }
 0x269   : > { %2077 = vrot.lane.b32.xlu0 %v1606_v41, %s4370_s20  ;;  %v6652_v41 = vld [vmem:[#allocation24_spill] sm:$0xff] }
 0x26b   : > { %2001 = vrot.lane.b32.xlu1 %v5146_v48, %s4371_s21 }
 0x26d   : > { %2003 = vrot.lane.b32.xlu0 %v5182_v52, %s4371_s21 }
 0x26f   : > { %2071 = vrot.lane.b32.xlu1 %v5100_v23, %s4370_s20  ;;  %v5259_v23 = vpop.permute.xlu0 %1741 }
 0x271   : > { %2073 = vrot.lane.b32.xlu0 %v1604_v54, %s4370_s20 }
 0x273   : > { %1997 = vrot.lane.b32.xlu1 %v5116_v56, %s4371_s21 }
 0x275   : > { %1999 = vrot.lane.b32.xlu0 %v5139_v15, %s4371_s21 }
 0x277   : > { %2067 = vrot.lane.b32.xlu1 %v5049_v40, %s4370_s20  ;;  %v5272_v40 = vpop.permute.xlu0 %1827 }
 0x278   : > { %6645 = vst [vmem:[#allocation7_spill] sm:$0xff] %v5272_v40 }
 0x279   : > { %2069 = vrot.lane.b32.xlu0 %v5087_v24, %s4370_s20  ;;  %v5276_v24 = vpop.permute.xlu1 %1829 }
 0x27a   : > { %6646 = vst [vmem:[#allocation11_spill] sm:$0xff] %v5276_v24 }
 0x27b   : > { %1993 = vrot.lane.b32.xlu1 %v5070_v44, %s4371_s21  ;;  %v5282_v21 = vpop.permute.xlu0 %1737 }
 0x27c   : > { %6648 = vst [vmem:[#allocation5_spill] sm:$0xff] %v5282_v21 }
 0x27d   : > { %1995 = vrot.lane.b32.xlu0 %v5109_v8, %s4371_s21  ;;  %v5286_v34 = vpop.permute.xlu1 %1739 }
 0x27e   : > { %6649 = vst [vmem:[#allocation15_spill] sm:$0xff] %v5286_v34 }
 0x27f   : > { %2063 = vrot.lane.b32.xlu1 %v6637_v2, %s4370_s20  ;;  %v6653_v2 = vld [vmem:[#allocation27_spill] sm:$0xff] }
 0x281   : > { %2065 = vrot.lane.b32.xlu0 %v5042_v26, %s4370_s20 }
 0x283   : > { %1989 = vrot.lane.b32.xlu1 %v6647_v5, %s4371_s21 }
 0x285   : > { %1991 = vrot.lane.b32.xlu0 %v5059_v61, %s4371_s21 }
 0x287   : > { %1931 = vrot.lane.b32.xlu1 %v5167_v33, %s4369_s19 }
 0x289   : > { %2061 = vrot.lane.b32.xlu0 %v6639_v11, %s4370_s20 }
 0x28b   : > { %2059 = vrot.lane.b32.xlu1 %v6638_v9, %s4370_s20  ;;  %v5292_v26 = vpop.permute.xlu0 %1753 }
 0x28d   : > { %v5294_v14 = vpop.permute.xlu1 %1755  ;;  %1987 = vrot.lane.b32.xlu0 %v6650_v38, %s4371_s21 }
 0x28f   : > { %1985 = vrot.lane.b32.xlu1 %v6651_v16, %s4371_s21  ;;  %v5300_v10 = vpop.permute.xlu0 %1670 }
 0x291   : > { %v5302_v50 = vpop.permute.xlu1 %1672  ;;  %2057 = vrot.lane.b32.xlu0 %v6641_v47, %s4370_s20 }
 0x293   : > { %2055 = vrot.lane.b32.xlu1 %v6640_v3, %s4370_s20  ;;  %v5308_v54 = vpop.permute.xlu0 %1843  ;;  %v4283_v3 = vld [vmem:[%s6531_s5 + $0xc] ss:$36 sps:$4 sm:$0xff]  }
 0x294   : > { %2648 = vmatprep.mubr.bf16.mxu0 %v4283_v3  ;;  %v6656_v3 = vld [vmem:[#allocation28_spill] sm:$0xff] }
 0x295   : > { %v5310_v29 = vpop.permute.xlu1 %1845  ;;  %1983 = vrot.lane.b32.xlu0 %v6652_v41, %s4371_s21 }
 0x297   : > { %1981 = vrot.lane.b32.xlu1 %v6653_v2, %s4371_s21  ;;  %v5316_v9 = vpop.permute.xlu0 %1757 }
 0x299   : > { %v5318_v11 = vpop.permute.xlu1 %1759  ;;  %2053 = vrot.lane.b32.xlu0 %v6643_v25, %s4370_s20 }
 0x29b   : > { %2051 = vrot.lane.b32.xlu1 %v6642_v7, %s4370_s20  ;;  %v1675_v47 = vpop.permute.xlu0 %1674 }
 0x29d   : > { %v1677_v32 = vpop.permute.xlu1 %1676  ;;  %1979 = vrot.lane.b32.xlu0 %v6654_v49, %s4371_s21 }
 0x29f   : > { %1977 = vrot.lane.b32.xlu1 %v6655_v46, %s4371_s21  ;;  %v5331_v19 = vpop.permute.xlu0 %1847 }
 0x2a1   : > { %v5333_v20 = vpop.permute.xlu1 %1849  ;;  %2049 = vrot.lane.b32.xlu0 %v6644_v27, %s4370_s20 }
 0x2a3   : > { %2153 = vrot.lane.b32.xlu1 %v5122_v51, %s4372_s25  ;;  %v5339_v7 = vpop.permute.xlu0 %1761 }
 0x2a5   : > { %v5341_v25 = vpop.permute.xlu1 %1763  ;;  %1975 = vrot.lane.b32.xlu0 %v6656_v3, %s4371_s21 }
 0x2a7   : > { %2079 = vrot.lane.b32.xlu1 %v5167_v33, %s4370_s20  ;;  %v1679_v40 = vpop.permute.xlu0 %1678 }
 0x2a9   : > { %v1681_v24 = vpop.permute.xlu1 %1680  ;;  %2151 = vrot.lane.b32.xlu0 %v5118_v36, %s4372_s25 }
 0x2ab   : > { %2005 = vrot.lane.b32.xlu1 %v5227_v53, %s4371_s21  ;;  %v5351_v27 = vpop.permute.xlu0 %1851 }
 0x2ad   : > { %v5353_v51 = vpop.permute.xlu1 %1853  ;;  %2225 = vrot.lane.b32.xlu0 %v5182_v52, %s4373_s26 }
 0x2af   : > { %2149 = vrot.lane.b32.xlu1 %v5093_v4, %s4372_s25  ;;  %v5359_v33 = vpop.permute.xlu0 %1925 }
 0x2b0   : > { %6657 = vst [vmem:[#allocation9_spill] sm:$0xff] %v5359_v33 }
 0x2b1   : > { %v5361_v21 = vpop.permute.xlu1 %1927  ;;  %2147 = vrot.lane.b32.xlu0 %v5080_v6, %s4372_s25  ;;  %v6658_v6 = vmov 0 }
 0x2b2   : > { %v6659_v6 = vsel %vm5378_vm12, 4294967295, %v6658_v6 }
 0x2b3   : > { %2223 = vrot.lane.b32.xlu1 %v5146_v48, %s4373_s26  ;;  %v5367_v36 = vpop.permute.xlu0 %1765  ;;  %6660 = vst [vmem:[#allocation20_spill] sm:$0xff] %v6659_v6 }
 0x2b5   : > { %v5369_v34 = vpop.permute.xlu1 %1767  ;;  %2221 = vrot.lane.b32.xlu0 %v5139_v15, %s4373_s26 }
 0x2b7   : > { %2145 = vrot.lane.b32.xlu1 %v5063_v30, %s4372_s25  ;;  %v1683_v52 = vpop.permute.xlu0 %1682  ;;  %v1693_v30 = vsel %vm1686_vm11, %v1679_v40, %v1681_v24  ;;  %v6661_v24 = vld [vmem:[#allocation6_spill] sm:$0xff] }
 0x2b9   : > { %v1685_v4 = vpop.permute.xlu1 %1684  ;;  %2143 = vrot.lane.b32.xlu0 %v5052_v59, %s4372_s25 }
 0x2ba   : > { %v1694_v48 = vsel %vm1686_vm11, %v1683_v52, %v1685_v4 }
 0x2bb   : > { %2219 = vrot.lane.b32.xlu1 %v5116_v56, %s4373_s26  ;;  %2543 = vmatprep.subr.bf16.mxu1 %v1694_v48  ;;  %v5385_v15 = vpop.permute.xlu0 %1921  ;;  %v1692_v56 = vsel %vm1686_vm11, %v1675_v47, %v1677_v32 }
 0x2bc   : > { %3914 = vmatpush1.bf16.msk.msra.mxu1 %vm5378_vm12, %v1683_v52  ;;  %v6663_v52 = vld [vmem:[#allocation8_spill] sm:$0xff] }
 0x2bd   : > { %v5390_v33 = vpop.permute.xlu1 %1923  ;;  %2217 = vrot.lane.b32.xlu0 %v5109_v8, %s4373_s26  ;;  %2545 = vmatprep.subr.bf16.mxu1 %v1693_v30  ;;  %v1691_v30 = vsel %vm1686_vm11, %v5300_v10, %v5302_v50 }
 0x2bf   : > { %2141 = vrot.lane.b32.xlu1 %v5033_v37, %s4372_s25  ;;  %v1856_v4 = vpop.permute.xlu0 %1855 }
 0x2c0   : > { %3916 = vmatpush1.bf16.msk.msra.mxu1 %vm5378_vm12, %v1679_v40 }
 0x2c1   : > { %v5399_v48 = vpop.permute.xlu1 %1919  ;;  %2139 = vrot.lane.b32.xlu0 %v5031_v18, %s4372_s25  ;;  %2547 = vmatprep.subr.bf16.mxu1 %v1692_v56 }
 0x2c3   : > { %2215 = vrot.lane.b32.xlu1 %v5070_v44, %s4373_s26  ;;  %v5405_v8 = vpop.permute.xlu0 %1929  ;;  %v1690_v44 = vsel %vm1686_vm11, %v5156_v28, %v5162_v55 }
 0x2c4   : > { %3918 = vmatpush1.bf16.msk.msra.mxu1 %vm5378_vm12, %v1675_v47  ;;  %v6662_v47 = vld [vmem:[#allocation3_spill] sm:$0xff] }
 0x2c5   : > { %v5412_v40 = vpop.permute.xlu1 %1915  ;;  %2213 = vrot.lane.b32.xlu0 %v5059_v61, %s4373_s26  ;;  %2549 = vmatprep.subr.bf16.mxu1 %v1691_v30  ;;  %v6669_v30 = vmov 0 }
 0x2c6   : > { %v6670_v30 = vsel %vm5490_vm1, 4294967295, %v6669_v30 }
 0x2c7   : > { %2137 = vrot.lane.b32.xlu1 %v6661_v24, %s4372_s25  ;;  %v5418_v32 = vpop.permute.xlu0 %1917  ;;  %6671 = vst [vmem:[#allocation17_spill] sm:$0xff] %v6670_v30 }
 0x2c8   : > { %3920 = vmatpush1.bf16.msk.msra.mxu1 %vm5378_vm12, %v5300_v10  ;;  %v1689_v10 = vsel %vm1686_vm11, %v5173_v58, %v5177_v60 }
 0x2c9   : > { %v5426_v50 = vpop.permute.xlu1 %1911  ;;  %2135 = vrot.lane.b32.xlu0 %v6662_v47, %s4372_s25  ;;  %2551 = vmatprep.subr.bf16.mxu1 %v1690_v44  ;;  %v1776_v44 = vsel %vm1769_vm13, %v5339_v7, %v5341_v25 }
 0x2cb   : > { %2227 = vrot.lane.b32.xlu1 %v5227_v53, %s4373_s26  ;;  %v5432_v61 = vpop.permute.xlu0 %1913 }
 0x2cc   : > { %3922 = vmatpush1.bf16.msk.msra.mxu1 %vm5378_vm12, %v5156_v28  ;;  %v1688_v28 = vsel %vm1686_vm11, %v5188_v63, %v5191_v62 }
 0x2cd   : > { %v5440_v55 = vpop.permute.xlu1 %1907  ;;  %2209 = vrot.lane.b32.xlu0 %v6650_v38, %s4373_s26  ;;  %2553 = vmatprep.subr.bf16.mxu1 %v1689_v10  ;;  %v6664_v38 = vld [vmem:[#allocation10_spill] sm:$0xff]  ;;  %v1866_v10 = vsel %vm1859_vm14, %v5351_v27, %v5353_v51  ;;  %v6673_v51 = vld [vmem:[#allocation16_spill] sm:$0xff] }
 0x2cf   : > { %2211 = vrot.lane.b32.xlu1 %v6647_v5, %s4373_s26  ;;  %v5446_v53 = vpop.permute.xlu0 %1909 }
 0x2d0   : > { %3924 = vmatpush1.bf16.msk.msra.mxu1 %vm5378_vm12, %v5173_v58  ;;  %v1687_v58 = vsel %vm1686_vm11, %v5197_v22, %v5201_v35  ;;  %v6665_v35 = vmov 0 }
 0x2d1   : > { %v5454_v60 = vpop.permute.xlu1 %1903  ;;  %2131 = vrot.lane.b32.xlu0 %v6663_v52, %s4372_s25  ;;  %2555 = vmatprep.subr.bf16.mxu1 %v1688_v28  ;;  %v6666_v35 = vsel %vm5483_vm15, 4294967295, %v6665_v35 }
 0x2d2   : > { %6667 = vst [vmem:[#allocation13_spill] sm:$0xff] %v6666_v35 }
 0x2d3   : > { %2133 = vrot.lane.b32.xlu1 %v6664_v38, %s4372_s25  ;;  %v5460_v5 = vpop.permute.xlu0 %1905 }
 0x2d4   : > { %3926 = vmatpush1.bf16.msk.msra.mxu1 %vm5378_vm12, %v5188_v63  ;;  %v1777_v63 = vsel %vm1769_vm13, %v5367_v36, %v5369_v34  ;;  %v6672_v34 = vld [vmem:[#allocation14_spill] sm:$0xff] }
 0x2d5   : > { %v5468_v62 = vpop.permute.xlu1 %2075  ;;  %2205 = vrot.lane.b32.xlu0 %v6652_v41, %s4373_s26  ;;  %2557 = vmatprep.subr.bf16.mxu1 %v1687_v58 }
 0x2d7   : > { %2207 = vrot.lane.b32.xlu1 %v6651_v16, %s4373_s26  ;;  %v5474_v56 = vpop.permute.xlu0 %1901  ;;  %v6668_v16 = vld [vmem:[#allocation12_spill] sm:$0xff] }
 0x2d8   : > { %3928 = vmatpush1.bf16.msk.msra.mxu1 %vm5378_vm12, %v5197_v22 }
 0x2d9   : > { %v1858_v41 = vpop.permute.xlu1 %1857  ;;  %2127 = vrot.lane.b32.xlu0 %v6668_v16, %s4372_s25  ;;  %2559 = vmatprep.subr.bf16.mxu1 %v1777_v63  ;;  %v6676_v63 = vld [vmem:[#allocation5_spill] sm:$0xff] }
 0x2da   : > { %v1867_v22 = vsel %vm1859_vm14, %v1856_v4, %v1858_v41  ;;  %v2312_v41 = vld [vmem:[%s6532_s6 + $0x8] sm:$0xff] }
 0x2db   : > { %2129 = vrot.lane.b32.xlu1 %v6672_v34, %s4372_s25  ;;  %2616 = vmatprep.subr.bf16.mxu0 %v1867_v22  ;;  %v5497_v24 = vpop.permute.xlu0 %2077  ;;  %v6677_v22 = vld [vmem:[#allocation11_spill] sm:$0xff] }
 0x2dc   : > { %3930 = vmatpush2.bf16.msk.msra.mxu1 %vm5483_vm15, %v5367_v36  ;;  %3946 = vmatpush1.bf16.msk.msra.mxu0 %vm5490_vm1, %v1856_v4  ;;  %v6678_v34 = vld [vmem:[#allocation7_spill] sm:$0xff] }
 0x2dd   : > { %v5507_v47 = vpop.permute.xlu1 %2001  ;;  %2201 = vrot.lane.b32.xlu0 %v6654_v49, %s4373_s26  ;;  %2561 = vmatprep.subr.bf16.mxu1 %v1776_v44  ;;  %v1775_v49 = vsel %vm1769_vm13, %v5316_v9, %v5318_v11  ;;  %v1774_v11 = vsel %vm1769_vm13, %v5292_v26, %v5294_v14  ;;  %v1773_v14 = vsel %vm1769_vm13, %v5217_v12, %v5220_v13  ;;  %v2316_v13 = vld [vmem:[%s6532_s6 + $0x28] sm:$0xff] }
 0x2de   : > { %2618 = vmatprep.subr.bf16.mxu0 %v1866_v10 }
 0x2df   : > { %2203 = vrot.lane.b32.xlu1 %v6653_v2, %s4373_s26  ;;  %v5516_v36 = vpop.permute.xlu0 %2003  ;;  %v1865_v2 = vsel %vm1859_vm14, %v5331_v19, %v5333_v20  ;;  %v1864_v20 = vsel %vm1859_vm14, %v5308_v54, %v5310_v29  ;;  %v2318_v29 = vld [vmem:[%s6532_s6 + $0x38] sm:$0xff] }
 0x2e0   : > { %3932 = vmatpush2.bf16.msk.msra.mxu1 %vm5483_vm15, %v5339_v7  ;;  %3948 = vmatpush1.bf16.msk.msra.mxu0 %vm5490_vm1, %v5351_v27  ;;  %v6674_v7 = vld [vmem:[#allocation18_spill] sm:$0xff] }
 0x2e1   : > { %v5527_v25 = vpop.permute.xlu1 %2071  ;;  %2123 = vrot.lane.b32.xlu0 %v6673_v51, %s4372_s25  ;;  %2563 = vmatprep.subr.bf16.mxu1 %v1775_v49  ;;  %v6679_v49 = vld [vmem:[#allocation34_spill] sm:$0xff]  ;;  %v6680_v51 = vmov 0 }
 0x2e2   : > { %2620 = vmatprep.subr.bf16.mxu0 %v1865_v2  ;;  %v6681_v51 = vsel %vm5657_vm3, 4294967295, %v6680_v51 }
 0x2e3   : > { %2125 = vrot.lane.b32.xlu1 %v6674_v7, %s4372_s25  ;;  %v5536_v4 = vpop.permute.xlu0 %2073  ;;  %6682 = vst [vmem:[#allocation23_spill] sm:$0xff] %v6681_v51  ;;  %v4272_v7 = vld [vmem:[%s6531_s5 + $0x4c] ss:$36 sps:$4 sm:$0xff]  }
 0x2e4   : > { %3934 = vmatpush2.bf16.msk.msra.mxu1 %vm5483_vm15, %v5316_v9  ;;  %3950 = vmatpush1.bf16.msk.msra.mxu0 %vm5490_vm1, %v5331_v19  ;;  %v2317_v9 = vld [vmem:[%s6532_s6 + $0x30] sm:$0xff] }
 0x2e5   : > { %v5547_v27 = vpop.permute.xlu1 %1997  ;;  %2197 = vrot.lane.b32.xlu0 %v6656_v3, %s4373_s26  ;;  %2565 = vmatprep.subr.bf16.mxu1 %v1774_v11 }
 0x2e6   : > { %2622 = vmatprep.subr.bf16.mxu0 %v1864_v20  ;;  %v6683_v20 = vld [vmem:[#allocation33_spill] sm:$0xff] }
 0x2e7   : > { %2199 = vrot.lane.b32.xlu1 %v6655_v46, %s4373_s26  ;;  %v5559_v19 = vpop.permute.xlu0 %1999  ;;  %v1863_v46 = vsel %vm1859_vm14, %v5207_v17, %v5211_v45  ;;  %v1772_v45 = vsel %vm1769_vm13, %v5240_v43, %v5244_v39  ;;  %v2314_v39 = vld [vmem:[%s6532_s6 + $0x18] sm:$0xff] }
 0x2e8   : > { %3936 = vmatpush2.bf16.msk.msra.mxu1 %vm5483_vm15, %v5292_v26  ;;  %3952 = vmatpush1.bf16.msk.msra.mxu0 %vm5490_vm1, %v5308_v54  ;;  %v2315_v26 = vld [vmem:[%s6532_s6 + $0x20] sm:$0xff] }
 0x2e9   : > { %v5573_v3 = vpop.permute.xlu1 %2067  ;;  %2351 = vperm.xlu0 %4183, %v2317_v9   ;;  %2567 = vmatprep.subr.bf16.mxu1 %v1773_v14  ;;  %v6684_v9 = vld [vmem:[#allocation9_spill] sm:$0xff] }
 0x2ea   : > { %2624 = vmatprep.subr.bf16.mxu0 %v1863_v46  ;;  %v1940_v14 = vsel %vm1933_vm2, %v6684_v9, %v5361_v21  ;;  %v6685_v46 = vld [vmem:[#allocation32_spill] sm:$0xff]  ;;  %v1939_v21 = vsel %vm1933_vm2, %v5385_v15, %v5390_v33  ;;  %v1938_v33 = vsel %vm1933_vm2, %v5418_v32, %v5399_v48  ;;  %v4278_v48 = vld [vmem:[%s6531_s5 + $0xdc] ss:$36 sps:$4 sm:$0xff]  }
 0x2eb   : > { %2356 = vperm.xlu1 %4184, %v2318_v29   ;;  %v5581_v54 = vpop.permute.xlu0 %2069 }
 0x2ec   : > { %3938 = vmatpush2.bf16.msk.msra.mxu1 %vm5483_vm15, %v5217_v12  ;;  %3954 = vmatpush1.bf16.msk.msra.mxu0 %vm5490_vm1, %v5207_v17  ;;  %v1862_v12 = vsel %vm1859_vm14, %v5231_v57, %v5234_v0  ;;  %v2313_v17 = vld [vmem:[%s6532_s6 + $0x10] sm:$0xff]  ;;  %v1771_v0 = vsel %vm1769_vm13, %v5259_v23, %v5266_v1  ;;  %v6675_v1 = vld [vmem:[#allocation15_spill] sm:$0xff] }
 0x2ed   : > { %v5595_v28 = vpop.permute.xlu1 %1993  ;;  %2341 = vperm.xlu0 %4183, %v2315_v26   ;;  %2569 = vmatprep.subr.bf16.mxu1 %v1772_v45  ;;  %v4274_v45 = vld [vmem:[%s6531_s5 + $0x48] ss:$36 sps:$4 sm:$0xff]  }
 0x2ee   : > { %2626 = vmatprep.subr.bf16.mxu0 %v1862_v12  ;;  %v6687_v12 = vld [vmem:[#allocation30_spill] sm:$0xff] }
 0x2ef   : > { %2346 = vperm.xlu1 %4184, %v2316_v13   ;;  %v5603_v52 = vpop.permute.xlu0 %1995 }
 0x2f0   : > { %3940 = vmatpush2.bf16.msk.msra.mxu1 %vm5483_vm15, %v5240_v43  ;;  %3956 = vmatpush1.bf16.msk.msra.mxu0 %vm5490_vm1, %v5231_v57  ;;  %v1861_v43 = vsel %vm1859_vm14, %v5249_v31, %v5253_v42  ;;  %v2311_v57 = vld [vmem:[%s6532_s6] sm:$0xff]  ;;  %v1770_v42 = vsel %vm1769_vm13, %v6676_v63, %v6675_v1 }
 0x2f1   : > { %v5617_v38 = vpop.permute.xlu1 %2063  ;;  %2331 = vperm.xlu0 %4183, %v2313_v17   ;;  %2571 = vmatprep.subr.bf16.mxu1 %v1771_v0  ;;  %v4275_v17 = vld [vmem:[%s6531_s5 + $0x94] ss:$36 sps:$4 sm:$0xff]  }
 0x2f2   : > { %2628 = vmatprep.subr.bf16.mxu0 %v1861_v43 }
 0x2f3   : > { %2336 = vperm.xlu1 %4184, %v2314_v39   ;;  %v5625_v58 = vpop.permute.xlu0 %2065 }
 0x2f4   : > { %3942 = vmatpush2.bf16.msk.msra.mxu1 %vm5483_vm15, %v5259_v23  ;;  %3958 = vmatpush1.bf16.msk.msra.mxu0 %vm5490_vm1, %v5249_v31  ;;  %v1860_v23 = vsel %vm1859_vm14, %v6678_v34, %v6677_v22  ;;  %v4269_v31 = vld [vmem:[%s6531_s5] ss:$36 sps:$4 sm:$0xff]  }
 0x2f5   : > { %v5639_v16 = vpop.permute.xlu1 %1989  ;;  %2321 = vperm.xlu0 %4183, %v2311_v57   ;;  %2573 = vmatprep.subr.bf16.mxu1 %v1770_v42  ;;  %v4277_v57 = vld [vmem:[%s6531_s5 + $0x90] ss:$36 sps:$4 sm:$0xff]  }
 0x2f6   : > { %2630 = vmatprep.subr.bf16.mxu0 %v1860_v23  ;;  %v4295_v23 = vld [vmem:[%s6531_s5 + $0x14] ss:$36 sps:$4 sm:$0xff]  }
 0x2f7   : > { %2326 = vperm.xlu1 %4184, %v2312_v41   ;;  %v5644_v44 = vpop.permute.xlu0 %1991  ;;  %v4352_v41 = vld [vmem:[%s4836_s15 + $0x20] ss:$8 sps:$4 sm:$0xff]  }
 0x2f8   : > { %3944 = vmatpush2.bf16.msk.msra.mxu1 %vm5483_vm15, %v6676_v63  ;;  %3960 = vmatpush1.bf16.msk.msra.mxu0 %vm5490_vm1, %v6678_v34  ;;  %v4351_v63 = vld [vmem:[%s4836_s15 + $0x24] ss:$8 sps:$4 sm:$0xff]   ;;  %v4353_v34 = vld [vmem:[%s4836_s15 + $0x14] ss:$8 sps:$4 sm:$0xff]  }
 0x2f9   : > { %v1932_v10 = vpop.permute.xlu1 %1931  ;;  %2689 = vmatprep.subr.bf16.mxu1 %v6679_v49  ;;  %v4355_v49 = vld [vmem:[%s4836_s15 + $0x4] ss:$8 sps:$4 sm:$0xff]  }
 0x2fa   : > { %v1941_v2 = vsel %vm1933_vm2, %v5405_v8, %v1932_v10 }
 0x2fb   : > { %2576 = vmatmul.mubr.bf16.vlgmr.msra.gmra.mxu1 %v4269_v31  ;;  %2632 = vmatprep.subr.bf16.mxu0 %v1941_v2  ;;  %v5666_v11 = vpop.permute.xlu0 %2061 }
 0x2fc   : > { %3962 = vmatpush2.bf16.msk.msra.mxu0 %vm5657_vm3, %v5405_v8  ;;  %2690 = vmatpush1.bf16.msra.mxu1 %v6683_v20  ;;  %v6686_v8 = vld [vmem:[#allocation31_spill] sm:$0xff] }
 0x2fd   : > { %v5675_v29 = vpop.permute.xlu1 %2059  ;;  %2634 = vmatprep.subr.bf16.mxu0 %v1940_v14  ;;  %2691 = vmatprep.subr.bf16.mxu1 %v6685_v46 }
 0x2fe   : > { %2585 = vmatprep.mubr.bf16.mxu1 %v4272_v7  ;;  %v4281_v7 = vld [vmem:[%s6531_s5 + $0x8] ss:$36 sps:$4 sm:$0xff]  }
 0x2ff   : > { %v5678_v26 = vpop.permute.xlu0 %1987 }
 0x300   : > { %3964 = vmatpush2.bf16.msk.msra.mxu0 %vm5657_vm3, %v6684_v9  ;;  %2692 = vmatpush1.bf16.msra.mxu1 %v6686_v8  ;;  %v4286_v8 = vld [vmem:[%s6531_s5 + $0x50] ss:$36 sps:$4 sm:$0xff]  }
 0x301   : > { %v5690_v13 = vpop.permute.xlu1 %1985  ;;  %2636 = vmatprep.subr.bf16.mxu0 %v1939_v21  ;;  %2693 = vmatprep.subr.bf16.mxu1 %v6687_v12 }
 0x303   : > { %2586 = vmatmul.mubr.bf16.gmra.mxu1 %v4274_v45  ;;  %v5696_v0 = vpop.permute.xlu0 %2057  ;;  %v2088_v45 = vsel %vm2081_vm6, %v5536_v4, %v5468_v62  ;;  %v2087_v4 = vsel %vm2081_vm6, %v5581_v54, %v5527_v25  ;;  %v4289_v54 = vld [vmem:[%s6531_s5 + $0x98] ss:$36 sps:$4 sm:$0xff]  }
 0x304   : > { %3966 = vmatpush2.bf16.msk.msra.mxu0 %vm5657_vm3, %v5385_v15  ;;  %2694 = vmatpush1.bf16.msra.mxu1 %v5052_v59  ;;  %v1937_v59 = vsel %vm1933_vm2, %v5432_v61, %v5412_v40  ;;  %v4349_v15 = vld [vmem:[%s4836_s15 + $0x34] ss:$8 sps:$4 sm:$0xff]   ;;  %v4350_v40 = vld [vmem:[%s4836_s15 + $0x30] ss:$8 sps:$4 sm:$0xff]  }
 0x305   : > { %v5705_v39 = vpop.permute.xlu1 %2055  ;;  %2638 = vmatprep.subr.bf16.mxu0 %v1938_v33  ;;  %2695 = vmatprep.subr.bf16.mxu1 %v5033_v37 }
 0x306   : > { %2595 = vmatprep.mubr.bf16.mxu1 %v4275_v17 }
 0x307   : > { %v5708_v43 = vpop.permute.xlu0 %1983 }
 0x308   : > { %3968 = vmatpush2.bf16.msk.msra.mxu0 %vm5657_vm3, %v5418_v32  ;;  %2696 = vmatpush1.bf16.msra.mxu1 %v5031_v18  ;;  %v1936_v18 = vsel %vm1933_vm2, %v5446_v53, %v5426_v50  ;;  %v1935_v50 = vsel %vm1933_vm2, %v5460_v5, %v5440_v55  ;;  %v1934_v55 = vsel %vm1933_vm2, %v5474_v56, %v5454_v60  ;;  %v4284_v60 = vld [vmem:[%s6531_s5 + $0x54] ss:$36 sps:$4 sm:$0xff]  }
 0x309   : > { %v5720_v37 = vpop.permute.xlu1 %1981  ;;  %2640 = vmatprep.subr.bf16.mxu0 %v1937_v59  ;;  %2697 = vmatprep.subr.bf16.mxu1 %v4349_v15 }
 0x30b   : > { %2596 = vmatmul.mubr.bf16.gmra.mxu1 %v4277_v57  ;;  %v5726_v1 = vpop.permute.xlu0 %2053 }
 0x30c   : > { %3970 = vmatpush2.bf16.msk.msra.mxu0 %vm5657_vm3, %v5432_v61  ;;  %2698 = vmatpush1.bf16.msra.mxu1 %v4350_v40  ;;  %v4280_v61 = vld [vmem:[%s6531_s5 + $0xd8] ss:$36 sps:$4 sm:$0xff]  }
 0x30d   : > { %v5735_v32 = vpop.permute.xlu1 %2051  ;;  %2642 = vmatprep.subr.bf16.mxu0 %v1936_v18  ;;  %2605 = vmatprep.mubr.bf16.mxu1 %v4278_v48 }
 0x30e   : > { %2699 = vmatprep.subr.bf16.mxu1 %v4351_v63 }
 0x30f   : > { %v5738_v42 = vpop.permute.xlu0 %1979 }
 0x310   : > { %3972 = vmatpush2.bf16.msk.msra.mxu0 %vm5657_vm3, %v5446_v53  ;;  %2700 = vmatpush1.bf16.msra.mxu1 %v4352_v41  ;;  %v4354_v53 = vld [vmem:[%s4836_s15 + $0x10] ss:$8 sps:$4 sm:$0xff]  }
 0x311   : > { %v5750_v22 = vpop.permute.xlu1 %1977  ;;  %2644 = vmatprep.subr.bf16.mxu0 %v1935_v50  ;;  %2701 = vmatprep.subr.bf16.mxu1 %v4353_v34  ;;  %v4298_v34 = vld [vmem:[%s6531_s5 + $0x58] ss:$36 sps:$4 sm:$0xff]  }
 0x313   : > { %2606 = vmatmul.mubr.bf16.gmra.mxu1 %v4280_v61  ;;  %v5756_v31 = vpop.permute.xlu0 %2049 }
 0x314   : > { %3974 = vmatpush2.bf16.msk.msra.mxu0 %vm5657_vm3, %v5460_v5  ;;  %2702 = vmatpush1.bf16.msra.mxu1 %v4354_v53  ;;  %v4356_v5 = vld [vmem:[%s4836_s15] ss:$8 sps:$4 sm:$0xff]  }
 0x315   : > { %v5765_v10 = vpop.permute.xlu1 %2153  ;;  %2646 = vmatprep.subr.bf16.mxu0 %v1934_v55  ;;  %2703 = vmatprep.subr.bf16.mxu1 %v4355_v49  ;;  %v4299_v55 = vld [vmem:[%s6531_s5 + $0xa4] ss:$36 sps:$4 sm:$0xff]  }
 0x316   : > { %2721 = vmatprep.mubr.bf16.mxu1 %v4295_v23 }
 0x317   : > { %v5768_v2 = vpop.permute.xlu0 %1975 }
 0x318   : > { %3976 = vmatpush2.bf16.msk.msra.mxu0 %vm5657_vm3, %v5474_v56  ;;  %2704 = vmatpush1.bf16.msra.mxu1 %v4356_v5 }
 0x319   : > { %v2080_v20 = vpop.permute.xlu1 %2079 }
 0x31a   : > { %3985 = vmatprep.subr.msk.bf16.mxu0 %vm2081_vm6, %v2080_v20  ;;  %v2089_v9 = vsel %vm2081_vm6, %v5497_v24, %v2080_v20 }
 0x31b   : > { %2649 = vmatmul.mubr.bf16.vlgmr.msra.gmra.mxu0 %v4281_v7  ;;  %v5783_v14 = vpop.permute.xlu0 %2151 }
 0x31c   : > { %2763 = vmatpush1.bf16.msra.mxu0 %v2089_v9  ;;  %2658 = vmatprep.mubr.bf16.mxu0 %v4284_v60  ;;  %v2163_v18 = vsel %vm2155_vm8, %v5783_v14, %v5765_v10  ;;  %v4301_v60 = vld [vmem:[%s6531_s5 + $0xa0] ss:$36 sps:$4 sm:$0xff]   ;;  %v4302_v14 = vld [vmem:[%s6531_s5 + $0xec] ss:$36 sps:$4 sm:$0xff]  }
 0x31d   : > { %v2006_v56 = vpop.permute.xlu1 %2005  ;;  %3986 = vmatprep.subr.msk.bf16.mxu0 %vm2081_vm6, %v5468_v62  ;;  %v4287_v62 = vld [vmem:[%s6531_s5 + $0x9c] ss:$36 sps:$4 sm:$0xff]  }
 0x31e   : > { %3977 = vmatprep.subr.msk.bf16.mxu1 %vm2007_vm7, %v2006_v56  ;;  %v2015_v46 = vsel %vm2007_vm7, %v5516_v36, %v2006_v56  ;;  %v2014_v36 = vsel %vm2007_vm7, %v5559_v19, %v5507_v47 }
 0x31f   : > { %2706 = vmatpush2.bf16.msra.mxu1 %v2015_v46  ;;  %v5793_v24 = vpop.permute.xlu0 %2225 }
 0x320   : > { %3978 = vmatprep.subr.msk.bf16.mxu1 %vm2007_vm7, %v5507_v47  ;;  %2765 = vmatpush1.bf16.msra.mxu0 %v2088_v45  ;;  %v2013_v47 = vsel %vm2007_vm7, %v5603_v52, %v5547_v27  ;;  %v2085_v52 = vsel %vm2081_vm6, %v5666_v11, %v5617_v38  ;;  %v4292_v11 = vld [vmem:[%s6531_s5 + $0xe0] ss:$36 sps:$4 sm:$0xff]  }
 0x321   : > { %v5800_v21 = vpop.permute.xlu1 %2149  ;;  %3987 = vmatprep.subr.msk.bf16.mxu0 %vm2081_vm6, %v5527_v25  ;;  %v2086_v25 = vsel %vm2081_vm6, %v5625_v58, %v5573_v3 }
 0x323   : > { %2659 = vmatmul.mubr.bf16.gmra.mxu0 %v4286_v8  ;;  %2708 = vmatpush2.bf16.msra.mxu1 %v2014_v36  ;;  %v5813_v12 = vpop.permute.xlu0 %2147 }
 0x324   : > { %3979 = vmatprep.subr.msk.bf16.mxu1 %vm2007_vm7, %v5547_v27  ;;  %2767 = vmatpush1.bf16.msra.mxu0 %v2087_v4  ;;  %v4290_v27 = vld [vmem:[%s6531_s5 + $0xe4] ss:$36 sps:$4 sm:$0xff]   ;;  %v2162_v61 = vsel %vm2155_vm8, %v5813_v12, %v5800_v21 }
 0x325   : > { %v5817_v17 = vpop.permute.xlu1 %2223  ;;  %3988 = vmatprep.subr.msk.bf16.mxu0 %vm2081_vm6, %v5573_v3  ;;  %2668 = vmatprep.mubr.bf16.mxu0 %v4287_v62  ;;  %v2012_v3 = vsel %vm2007_vm7, %v5644_v44, %v5595_v28  ;;  %v4304_v62 = vld [vmem:[%s6531_s5 + $0xe8] ss:$36 sps:$4 sm:$0xff]  }
 0x327   : > { %2710 = vmatpush2.bf16.msra.mxu1 %v2013_v47  ;;  %v5827_v19 = vpop.permute.xlu0 %2221 }
 0x328   : > { %3980 = vmatprep.subr.msk.bf16.mxu1 %vm2007_vm7, %v5595_v28  ;;  %2769 = vmatpush1.bf16.msra.mxu0 %v2086_v25  ;;  %v2011_v28 = vsel %vm2007_vm7, %v5678_v26, %v5639_v16  ;;  %v2083_v26 = vsel %vm2081_vm6, %v5726_v1, %v5705_v39  ;;  %v2008_v1 = vsel %vm2007_vm7, %v5768_v2, %v5750_v22 }
 0x329   : > { %v5834_v33 = vpop.permute.xlu1 %2145  ;;  %3989 = vmatprep.subr.msk.bf16.mxu0 %vm2081_vm6, %v5617_v38  ;;  %v2084_v38 = vsel %vm2081_vm6, %v5696_v0, %v5675_v29 }
 0x32b   : > { %2669 = vmatmul.mubr.bf16.gmra.mxu0 %v4289_v54  ;;  %2712 = vmatpush2.bf16.msra.mxu1 %v2012_v3  ;;  %v2144_v58 = vpop.permute.xlu0 %2143  ;;  %v6688_v54 = vmov 0  }
 0x32c   : > { %3981 = vmatprep.subr.msk.bf16.mxu1 %vm2007_vm7, %v5639_v16  ;;  %2771 = vmatpush1.bf16.msra.mxu0 %v2085_v52  ;;  %v4307_v16 = vld [vmem:[%s6531_s5 + $0x1c] ss:$36 sps:$4 sm:$0xff]   ;;  %v2161_v23 = vsel %vm2155_vm8, %v2144_v58, %v5834_v33 }
 0x32d   : > { %v5849_v57 = vpop.permute.xlu1 %2219  ;;  %3990 = vmatprep.subr.msk.bf16.mxu0 %vm2081_vm6, %v5675_v29  ;;  %2678 = vmatprep.mubr.bf16.mxu0 %v4290_v27  ;;  %v2010_v29 = vsel %vm2007_vm7, %v5708_v43, %v5690_v13  ;;  %v4308_v52 = vld [vmem:[%s6531_s5 + $0x20] ss:$36 sps:$4 sm:$0xff]  }
 0x32e   : > { %v4311_v58 = vld [vmem:[%s6531_s5 + $0x60] ss:$36 sps:$4 sm:$0xff]  }
 0x32f   : > { %2714 = vmatpush2.bf16.msra.mxu1 %v2011_v28  ;;  %v2218_v44 = vpop.permute.xlu0 %2217  ;;  %v4312_v28 = vld [vmem:[%s6531_s5 + $0x68] ss:$36 sps:$4 sm:$0xff]  }
 0x330   : > { %3982 = vmatprep.subr.msk.bf16.mxu1 %vm2007_vm7, %v5690_v13  ;;  %2773 = vmatpush1.bf16.msra.mxu0 %v2084_v38  ;;  %v2009_v13 = vsel %vm2007_vm7, %v5738_v42, %v5720_v37  ;;  %v4315_v38 = vld [vmem:[%s6531_s5 + $0xa8] ss:$36 sps:$4 sm:$0xff]  }
 0x331   : > { %v2142_v59 = vpop.permute.xlu1 %2141  ;;  %3991 = vmatprep.subr.msk.bf16.mxu0 %vm2081_vm6, %v5705_v39  ;;  %v2082_v39 = vsel %vm2081_vm6, %v5756_v31, %v5735_v32 }
 0x333   : > { %2679 = vmatmul.mubr.bf16.gmra.mxu0 %v4292_v11  ;;  %2716 = vmatpush2.bf16.msra.mxu1 %v2010_v29  ;;  %v2140_v0 = vpop.permute.xlu0 %2139  ;;  %v4316_v11 = vld [vmem:[%s6531_s5 + $0xb0] ss:$36 sps:$4 sm:$0xff]  }
 0x334   : > { %3983 = vmatprep.subr.msk.bf16.mxu1 %vm2007_vm7, %v5720_v37  ;;  %2775 = vmatpush1.bf16.msra.mxu0 %v2083_v26  ;;  %v4293_v37 = vld [vmem:[%s6531_s5 + $0x10] ss:$36 sps:$4 sm:$0xff]   ;;  %v2160_v49 = vsel %vm2155_vm8, %v2140_v0, %v2142_v59 }
 0x335   : > { %v2216_v15 = vpop.permute.xlu1 %2215  ;;  %3992 = vmatprep.subr.msk.bf16.mxu0 %vm2081_vm6, %v5735_v32  ;;  %2794 = vmatprep.mubr.bf16.mxu0 %v4307_v16  ;;  %v4296_v32 = vld [vmem:[%s6531_s5 + $0x5c] ss:$36 sps:$4 sm:$0xff]  }
 0x336   : > { %v4320_v16 = vld [vmem:[%s6531_s5 + $0xf8] ss:$36 sps:$4 sm:$0xff]  }
 0x337   : > { %2718 = vmatpush2.bf16.msra.mxu1 %v2009_v13  ;;  %v2214_v43 = vpop.permute.xlu0 %2213 }
 0x338   : > { %3984 = vmatprep.subr.msk.bf16.mxu1 %vm2007_vm7, %v5750_v22  ;;  %2777 = vmatpush1.bf16.msra.mxu0 %v2082_v39  ;;  %v2236_v22 = vsel %vm2229_vm0, %v5827_v19, %v5817_v17  ;;  %v2234_v5 = vsel %vm2229_vm0, %v2214_v43, %v2216_v15  ;;  %v4305_v19 = vld [vmem:[%s6531_s5 + $0x18] ss:$36 sps:$4 sm:$0xff]  }
 0x339   : > { %v2138_v48 = vpop.permute.xlu1 %2137  ;;  %3993 = vmatprep.subr.msk.bf16.mxu0 %vm2155_vm8, %v5765_v10  ;;  %v2235_v10 = vsel %vm2229_vm0, %v2218_v44, %v5849_v57  ;;  %v4317_v44 = vld [vmem:[%s6531_s5 + $0xf4] ss:$36 sps:$4 sm:$0xff]  }
 0x33b   : > { %2720 = vmatpush2.bf16.msra.mxu1 %v2008_v1  ;;  %v2136_v40 = vpop.permute.xlu0 %2135 }
 0x33c   : > { %2779 = vmatpush2.bf16.msra.mxu0 %v2163_v18  ;;  %v2159_v20 = vsel %vm2155_vm8, %v2136_v40, %v2138_v48 }
 0x33d   : > { %v2228_v63 = vpop.permute.xlu1 %2227  ;;  %3994 = vmatprep.subr.msk.bf16.mxu0 %vm2155_vm8, %v5800_v21 }
 0x33e   : > { %v2237_v42 = vsel %vm2229_vm0, %v5793_v24, %v2228_v63  ;;  %2722 = vmatmul.mubr.bf16.vlgmr.msra.gmra.mxu1 %v4293_v37  ;;  %4001 = vmatprep.subr.msk.bf16.mxu1 %vm2229_vm0, %v2228_v63 }
 0x33f   : > { %2836 = vmatpush1.bf16.msra.mxu1 %v2237_v42  ;;  %v2210_v50 = vpop.permute.xlu0 %2209  ;;  %2731 = vmatprep.mubr.bf16.mxu1 %v4296_v32 }
 0x340   : > { %2781 = vmatpush2.bf16.msra.mxu0 %v2162_v61  ;;  %4002 = vmatprep.subr.msk.bf16.mxu1 %vm2229_vm0, %v5817_v17 }
 0x341   : > { %v2212_v41 = vpop.permute.xlu1 %2211  ;;  %3995 = vmatprep.subr.msk.bf16.mxu0 %vm2155_vm8, %v5834_v33  ;;  %v4309_v33 = vld [vmem:[%s6531_s5 + $0x64] ss:$36 sps:$4 sm:$0xff]  }
 0x342   : > { %v2233_v46 = vsel %vm2229_vm0, %v2210_v50, %v2212_v41 }
 0x343   : > { %2838 = vmatpush1.bf16.msra.mxu1 %v2236_v22  ;;  %v2132_v31 = vpop.permute.xlu0 %2131 }
 0x344   : > { %2783 = vmatpush2.bf16.msra.mxu0 %v2161_v23  ;;  %4003 = vmatprep.subr.msk.bf16.mxu1 %vm2229_vm0, %v5849_v57  ;;  %v4313_v57 = vld [vmem:[%s6531_s5 + $0xac] ss:$36 sps:$4 sm:$0xff]  }
 0x345   : > { %v2134_v53 = vpop.permute.xlu1 %2133  ;;  %3996 = vmatprep.subr.msk.bf16.mxu0 %vm2155_vm8, %v2142_v59  ;;  %v4319_v59 = vld [vmem:[%s6531_s5 + $0xf0] ss:$36 sps:$4 sm:$0xff]  }
 0x346   : > { %2732 = vmatmul.mubr.bf16.gmra.mxu1 %v4298_v34  ;;  %v2158_v45 = vsel %vm2155_vm8, %v2132_v31, %v2134_v53 }
 0x347   : > { %2840 = vmatpush1.bf16.msra.mxu1 %v2235_v10  ;;  %v2206_v2 = vpop.permute.xlu0 %2205  ;;  %2741 = vmatprep.mubr.bf16.mxu1 %v4299_v55 }
 0x348   : > { %2785 = vmatpush2.bf16.msra.mxu0 %v2160_v49  ;;  %4004 = vmatprep.subr.msk.bf16.mxu1 %vm2229_vm0, %v2216_v15 }
 0x349   : > { %v2208_v7 = vpop.permute.xlu1 %2207  ;;  %3997 = vmatprep.subr.msk.bf16.mxu0 %vm2155_vm8, %v2138_v48 }
 0x34a   : > { %v2232_v21 = vsel %vm2229_vm0, %v2206_v2, %v2208_v7 }
 0x34b   : > { %2842 = vmatpush1.bf16.msra.mxu1 %v2234_v5  ;;  %v2128_v9 = vpop.permute.xlu0 %2127 }
 0x34c   : > { %2787 = vmatpush2.bf16.msra.mxu0 %v2159_v20  ;;  %4005 = vmatprep.subr.msk.bf16.mxu1 %vm2229_vm0, %v2212_v41 }
 0x34d   : > { %v2130_v56 = vpop.permute.xlu1 %2129  ;;  %3998 = vmatprep.subr.msk.bf16.mxu0 %vm2155_vm8, %v2134_v53 }
 0x34e   : > { %2742 = vmatmul.mubr.bf16.gmra.mxu1 %v4301_v60  ;;  %v2157_v36 = vsel %vm2155_vm8, %v2128_v9, %v2130_v56 }
 0x34f   : > { %2844 = vmatpush1.bf16.msra.mxu1 %v2233_v46  ;;  %v2202_v24 = vpop.permute.xlu0 %2201  ;;  %2751 = vmatprep.mubr.bf16.mxu1 %v4302_v14 }
 0x350   : > { %2789 = vmatpush2.bf16.msra.mxu0 %v2158_v45  ;;  %4006 = vmatprep.subr.msk.bf16.mxu1 %vm2229_vm0, %v2208_v7 }
 0x351   : > { %v2204_v8 = vpop.permute.xlu1 %2203  ;;  %3999 = vmatprep.subr.msk.bf16.mxu0 %vm2155_vm8, %v2130_v56 }
 0x352   : > { %v2231_v17 = vsel %vm2229_vm0, %v2202_v24, %v2204_v8 }
 0x353   : > { %2846 = vmatpush1.bf16.msra.mxu1 %v2232_v21  ;;  %v2124_v4 = vpop.permute.xlu0 %2123 }
 0x354   : > { %2791 = vmatpush2.bf16.msra.mxu0 %v2157_v36  ;;  %4007 = vmatprep.subr.msk.bf16.mxu1 %vm2229_vm0, %v2204_v8 }
 0x355   : > { %v2126_v12 = vpop.permute.xlu1 %2125 }
 0x356   : > { %v2156_v47 = vsel %vm2155_vm8, %v2124_v4, %v2126_v12  ;;  %2752 = vmatmul.mubr.bf16.gmra.mxu1 %v4304_v62  ;;  %4000 = vmatprep.subr.msk.bf16.mxu0 %vm2155_vm8, %v2126_v12 }
 0x357   : > { %2848 = vmatpush1.bf16.msra.mxu1 %v2231_v17  ;;  %v2198_v25 = vpop.permute.xlu0 %2197  ;;  %2867 = vmatprep.mubr.bf16.mxu1 %v6688_v54 }
 0x358   : > { %2793 = vmatpush2.bf16.msra.mxu0 %v2156_v47 }
 0x359   : > { %v2200_v27 = vpop.permute.xlu1 %2199 }
 0x35a   : > { %v2230_v3 = vsel %vm2229_vm0, %v2198_v25, %v2200_v27  ;;  %4008 = vmatprep.subr.msk.bf16.mxu1 %vm2229_vm0, %v2200_v27 }
 0x35b   : > { %2795 = vmatmul.mubr.bf16.vlgmr.msra.gmra.mxu0 %v4305_v19  ;;  %2850 = vmatpush1.bf16.msra.mxu1 %v2230_v3 }
 0x35c   : > { %2804 = vmatprep.mubr.bf16.mxu0 %v4309_v33 }
 0x35e   : > { %2868 = vmatmul.mubr.bf16.vlgmr.msra.gmra.mxu1 %v4308_v52 }
 0x35f   : > { %2877 = vmatprep.mubr.bf16.mxu1 %v6688_v54 }
 0x363   : > { %2805 = vmatmul.mubr.bf16.gmra.mxu0 %v4311_v58 }
 0x364   : > { %2814 = vmatprep.mubr.bf16.mxu0 %v4313_v57  ;;  %v6028_v60 = vpop.permute.xlu0 %2351 }
 0x366   : > { %2878 = vmatmul.mubr.bf16.gmra.mxu1 %v4312_v28  ;;  %v6032_v56 = vpop.permute.xlu1 %2356 }
 0x367   : > { %2887 = vmatprep.mubr.bf16.mxu1 %v6688_v54 }
 0x368   : > { %v6036_v24 = vpop.permute.xlu0 %2341 }
 0x36a   : > { %v6040_v62 = vpop.permute.xlu1 %2346 }
 0x36b   : > { %2815 = vmatmul.mubr.bf16.gmra.mxu0 %v4315_v38 }
 0x36c   : > { %2824 = vmatprep.mubr.bf16.mxu0 %v4317_v44  ;;  %v2332_v12 = vpop.permute.xlu0 %2331 }
 0x36e   : > { %2888 = vmatmul.mubr.bf16.gmra.mxu1 %v4316_v11  ;;  %v2337_v19 = vpop.permute.xlu1 %2336 }
 0x36f   : > { %2897 = vmatprep.mubr.bf16.mxu1 %v6688_v54 }
 0x370   : > { %v2322_v3 = vpop.permute.xlu0 %2321 }
 0x372   : > { %v2327_v28 = vpop.permute.xlu1 %2326 }
 0x373   : > { %2825 = vmatmul.mubr.bf16.gmra.mxu0 %v4319_v59 }
 0x376   : > { %2898 = vmatmul.mubr.bf16.gmra.mxu1 %v4320_v16 }
 0x3bb   : > { %v2577_v29 = vpop.f32.mrf.mxu1 }
 0x3bc   : > { %v2578_v58 = vadd.f32 %v2577_v29, %v2322_v3 }
 0x3bd   : > { %v2579_v26 = vpop.f32.mrf.mxu1 }
 0x3be   : > { %v2580_v38 = vadd.f32 %v2579_v26, %v2322_v3 }
 0x3bf   : > { %v2581_v0 = vpop.f32.mrf.mxu1 }
 0x3c0   : > { %v2582_v59 = vadd.f32 %v2581_v0, %v2327_v28 }
 0x3c1   : > { %v2583_v15 = vpop.f32.mrf.mxu1 }
 0x3c2   : > { %v2584_v6 = vadd.f32 %v2583_v15, %v2327_v28 }
 0x3c3   : > { %v5994_v13 = vpop.f32.mrf.mxu1 }
 0x3c4   : > { %v2588_v26 = vadd.f32 %v5994_v13, %v2332_v12 }
 0x3c5   : > { %v5996_v39 = vpop.f32.mrf.mxu1 }
 0x3c6   : > { %v2590_v0 = vadd.f32 %v5996_v39, %v2332_v12 }
 0x3c7   : > { %v5998_v43 = vpop.f32.mrf.mxu1 }
 0x3c8   : > { %v2592_v28 = vadd.f32 %v5998_v43, %v2337_v19 }
 0x3c9   : > { %v6000_v48 = vpop.f32.mrf.mxu1 }
 0x3cb   : > { %v6002_v37 = vpop.f32.mrf.mxu1 }
 0x3cd   : > { %v6004_v40 = vpop.f32.mrf.mxu1 }
 0x3cf   : > { %v6006_v63 = vpop.f32.mrf.mxu1 }
 0x3d1   : > { %v6008_v61 = vpop.f32.mrf.mxu1 }
 0x3d3   : > { %v6010_v41 = vpop.f32.mrf.mxu1 }
 0x3d5   : > { %v6014_v34 = vpop.f32.mrf.mxu1 }
 0x3d7   : > { %v6018_v31 = vpop.f32.mrf.mxu1 }
 0x3d8   : > { %6689 = vst [vmem:[#allocation22_spill] sm:$0xff] %v6018_v31 }
 0x3d9   : > { %v6022_v53 = vpop.f32.mrf.mxu1 }
 0x3da   : > { %6690 = vst [vmem:[#allocation25_spill] sm:$0xff] %v6022_v53 }
 0x3db   : > { %v2650_v1 = vpop.f32.mrf.mxu0 }
 0x3dc   : > { %v2651_v44 = vadd.f32 %v2650_v1, %v2578_v58 }
 0x3dd   : > { %v2652_v18 = vpop.f32.mrf.mxu0 }
 0x3de   : > { %v2653_v54 = vadd.f32 %v2652_v18, %v2580_v38 }
 0x3df   : > { %v2654_v32 = vpop.f32.mrf.mxu0 }
 0x3e0   : > { %v2655_v35 = vadd.f32 %v2654_v32, %v2582_v59 }
 0x3e1   : > { %v2656_v42 = vpop.f32.mrf.mxu0 }
 0x3e3   : > { %v2660_v50 = vpop.f32.mrf.mxu0 }
 0x3e4   : > { %v2661_v38 = vadd.f32 %v2660_v50, %v2588_v26 }
 0x3e5   : > { %v6012_v22 = vpop.f32.mrf.mxu0 }
 0x3e7   : > { %v6016_v23 = vpop.f32.mrf.mxu0 }
 0x3e8   : > { %v2665_v39 = vadd.f32 %v6016_v23, %v2592_v28 }
 0x3e9   : > { %v6020_v55 = vpop.f32.mrf.mxu0 }
 0x3eb   : > { %v6024_v10 = vpop.f32.mrf.mxu0 }
 0x3ed   : > { %v6026_v7 = vpop.f32.mrf.mxu0 }
 0x3ef   : > { %v6030_v9 = vpop.f32.mrf.mxu0 }
 0x3f1   : > { %v6034_v45 = vpop.f32.mrf.mxu0 }
 0x3f3   : > { %v6042_v36 = vpop.f32.mrf.mxu0 }
 0x3f5   : > { %v6048_v47 = vpop.f32.mrf.mxu0 }
 0x3f6   : > { %6691 = vst [vmem:[#allocation24_spill] sm:$0xff] %v6048_v47  ;;  %v2657_v47 = vadd.f32 %v2656_v42, %v2584_v6 }
 0x3f7   : > { %v6054_v27 = vpop.f32.mrf.mxu0 }
 0x3f8   : > { %6692 = vst [vmem:[#allocation27_spill] sm:$0xff] %v6054_v27 }
 0x3f9   : > { %v6060_v11 = vpop.f32.mrf.mxu0 }
 0x3fe   : > { %v2723_v49 = vpop.f32.mrf.mxu1 }
 0x3ff   : > { %v2724_v30 = vadd.f32 %v2723_v49, %v2651_v44 }
 0x400   : > { %v2725_v2 = vpop.f32.mrf.mxu1 }
 0x401   : > { %v2726_v53 = vadd.f32 %v2725_v2, %v2653_v54 }
 0x402   : > { %v2727_v5 = vpop.f32.mrf.mxu1 }
 0x404   : > { %v2729_v20 = vpop.f32.mrf.mxu1 }
 0x405   : > { %v2730_v58 = vadd.f32 %v2729_v20, %v2657_v47 }
 0x406   : > { %v2733_v14 = vpop.f32.mrf.mxu1 }
 0x408   : > { %v2735_v46 = vpop.f32.mrf.mxu1 }
 0x40a   : > { %v2737_v8 = vpop.f32.mrf.mxu1 }
 0x40c   : > { %v6038_v21 = vpop.f32.mrf.mxu1 }
 0x40e   : > { %v6044_v4 = vpop.f32.mrf.mxu1 }
 0x410   : > { %v6046_v17 = vpop.f32.mrf.mxu1 }
 0x412   : > { %v6050_v25 = vpop.f32.mrf.mxu1 }
 0x414   : > { %v6052_v33 = vpop.f32.mrf.mxu1 }
 0x416   : > { %v6056_v52 = vpop.f32.mrf.mxu1 }
 0x417   : > { %6693 = vst [vmem:[#allocation26_spill] sm:$0xff] %v6056_v52 }
 0x418   : > { %v6058_v57 = vpop.f32.mrf.mxu1 }
 0x419   : > { %6694 = vst [vmem:[#allocation29_spill] sm:$0xff] %v6058_v57  ;;  %v2728_v57 = vadd.f32 %v2727_v5, %v2655_v35  ;;  %v2734_v35 = vadd.f32 %v2733_v14, %v2661_v38  ;;  %v2604_v38 = vadd.f32 %v6008_v61, %v6040_v62 }
 0x41a   : > { %v6062_v16 = vpop.f32.mrf.mxu1 }
 0x41b   : > { %v2796_v51 = vpop.f32.mrf.mxu0 }
 0x41c   : > { %v6064_v27 = vpop.f32.mrf.mxu1  ;;  %v2797_v52 = vadd.f32 %v2796_v51, %v2724_v30  ;;  %v2663_v30 = vadd.f32 %v6012_v22, %v2590_v0  ;;  %v2738_v22 = vadd.f32 %v2737_v8, %v2665_v39  ;;  %v2598_v0 = vadd.f32 %v6002_v37, %v6036_v24 }
 0x41d   : > { %v2798_v29 = vpop.f32.mrf.mxu0 }
 0x41e   : > { %v2869_v31 = vpop.f32.mrf.mxu1  ;;  %v2799_v1 = vadd.f32 %v2798_v29, %v2726_v53  ;;  %v2594_v53 = vadd.f32 %v6000_v48, %v2337_v19  ;;  %v2736_v2 = vadd.f32 %v2735_v46, %v2663_v30 }
 0x41f   : > { %v2800_v3 = vpop.f32.mrf.mxu0  ;;  %v2870_v15 = vadd.f32 %v2869_v31, %v2797_v52 }
 0x420   : > { %v2801_v18 = vadd.f32 %v2800_v3, %v2728_v57  ;;  %v2871_v49 = vpop.f32.mrf.mxu1  ;;  %v2667_v43 = vadd.f32 %v6020_v55, %v2594_v53  ;;  %v2602_v55 = vadd.f32 %v6006_v63, %v6040_v62 }
 0x421   : > { %v2802_v32 = vpop.f32.mrf.mxu0  ;;  %v2872_v54 = vadd.f32 %v2871_v49, %v2799_v1  ;;  %v2908_v20 = vmax.f32 %v2870_v15, 0.0  ;;  %v2600_v49 = vadd.f32 %v6004_v40, %v6036_v24 }
 0x422   : > { %v2803_v51 = vadd.f32 %v2802_v32, %v2730_v58  ;;  %v2873_v6 = vpop.f32.mrf.mxu1  ;;  %v2740_v48 = vadd.f32 %v6038_v21, %v2667_v43  ;;  %v2675_v15 = vadd.f32 %v6030_v9, %v2602_v55  ;;  %v2671_v32 = vadd.f32 %v6024_v10, %v2598_v0  ;;  %v3288_v0 = vld [vmem:[%s6534_s8 + $0x20] sm:$0xff] }
 0x423   : > { %v2874_v42 = vadd.f32 %v2873_v6, %v2801_v18  ;;  %v2806_v13 = vpop.f32.mrf.mxu0  ;;  %v2909_v57 = vmax.f32 %v2872_v54, 0.0  ;;  %v2608_v6 = vadd.f32 %v6010_v41, %v6028_v60  ;;  %v2677_v54 = vadd.f32 %v6034_v45, %v2604_v38 }
 0x424   : > { %v2875_v5 = vpop.f32.mrf.mxu1  ;;  %v2807_v31 = vadd.f32 %v2806_v13, %v2734_v35  ;;  %v2673_v35 = vadd.f32 %v6026_v7, %v2600_v49  ;;  %v2748_v40 = vadd.f32 %v6050_v25, %v2675_v15  ;;  %v2744_v61 = vadd.f32 %v6044_v4, %v2671_v32 }
 0x425   : > { %v2910_v50 = vmax.f32 %v2874_v42, 0.0  ;;  %v2876_v12 = vadd.f32 %v2875_v5, %v2803_v51  ;;  %v2808_v47 = vpop.f32.mrf.mxu0  ;;  %v2610_v13 = vadd.f32 %v6014_v34, %v6028_v60  ;;  %v2750_v53 = vadd.f32 %v6052_v33, %v2677_v54  ;;  %v6695_v5 = vld [vmem:[#allocation22_spill] sm:$0xff]  ;;  %v6696_v60 = vld [vmem:[#allocation24_spill] sm:$0xff] }
 0x426   : > { %v2879_v52 = vpop.f32.mrf.mxu1  ;;  %v2809_v59 = vadd.f32 %v2808_v47, %v2736_v2  ;;  %v2681_v7 = vadd.f32 %v6042_v36, %v2608_v6  ;;  %v2746_v45 = vadd.f32 %v6046_v17, %v2673_v35  ;;  %v6698_v17 = vld [vmem:[#allocation25_spill] sm:$0xff] }
 0x427   : > { %v6073_v14 = vpack.c.bf16 %v2910_v50, %v2908_v20  ;;  %v2911_v44 = vmax.f32 %v2876_v12, 0.0  ;;  %v2810_v29 = vpop.f32.mrf.mxu0  ;;  %v2880_v26 = vadd.f32 %v2879_v52, %v2807_v31  ;;  %v2612_v20 = vadd.f32 %v6695_v5, %v6032_v56  ;;  %v6697_v31 = vld [vmem:[#allocation26_spill] sm:$0xff]  ;;  %v6699_v52 = vld [vmem:[#allocation27_spill] sm:$0xff] }
 0x428   : > { %v2811_v23 = vadd.f32 %v2810_v29, %v2738_v22  ;;  %v2881_v46 = vpop.f32.mrf.mxu1  ;;  %v2683_v33 = vadd.f32 %v6696_v60, %v2610_v13  ;;  %v2754_v12 = vadd.f32 %v6697_v31, %v2681_v7  ;;  %v2614_v22 = vadd.f32 %v6698_v17, %v6032_v56  ;;  %v4323_v17 = vld [vmem:[%s6533_s7 + $0x4] ss:$20 sps:$4 sm:$0xff]  }
 0x429   : > { %v6076_v19 = vpack.c.bf16 %v2911_v44, %v2909_v57  ;;  %v2812_v1 = vpop.f32.mrf.mxu0  ;;  %3000 = vrot.lane.b32.xlu0 %v6073_v14, %s4368_s18  ;;  %v2882_v58 = vadd.f32 %v2881_v46, %v2809_v59  ;;  %v2912_v28 = vmax.f32 %v2880_v26, 0.0  ;;  %v2685_v57 = vadd.f32 %v6699_v52, %v2612_v20  ;;  %3476 = vmatprep.mubr.bf16.mxu0 %v4323_v17 }
 0x42a   : > { %v2813_v8 = vadd.f32 %v2812_v1, %v2740_v48  ;;  %v2883_v3 = vpop.f32.mrf.mxu1  ;;  %v6701_v48 = vld [vmem:[#allocation29_spill] sm:$0xff] }
 0x42b   : > { %v2884_v18 = vadd.f32 %v2883_v3, %v2811_v23  ;;  %v2816_v21 = vpop.f32.mrf.mxu0  ;;  %3002 = vrot.lane.b32.xlu1 %v6076_v19, %s4368_s18  ;;  %v2913_v9 = vmax.f32 %v2882_v58, 0.0  ;;  %v2756_v23 = vadd.f32 %v6701_v48, %v2683_v33  ;;  %v2758_v56 = vadd.f32 %v6062_v16, %v2685_v57 }
 0x42c   : > { %v2885_v63 = vpop.f32.mrf.mxu1  ;;  %v2817_v25 = vadd.f32 %v2816_v21, %v2744_v61  ;;  %v2933_v60 = vsel %vm1591_vm5, 0, %v6076_v19  ;;  %v2941_v31 = vsel %vm1621_vm10, 0, %v6076_v19 }
 0x42d   : > { %v2914_v30 = vmax.f32 %v2884_v18, 0.0  ;;  %v2886_v37 = vadd.f32 %v2885_v63, %v2813_v8  ;;  %v2818_v51 = vpop.f32.mrf.mxu0  ;;  %v2687_v8 = vadd.f32 %v6060_v11, %v2614_v22  ;;  %v4332_v22 = vld [vmem:[%s6533_s7 + $0xc] ss:$20 sps:$4 sm:$0xff]  }
 0x42e   : > { %v2889_v24 = vpop.f32.mrf.mxu1  ;;  %v2819_v47 = vadd.f32 %v2818_v51, %v2746_v45  ;;  %3549 = vmatprep.mubr.bf16.mxu1 %v4332_v22 }
 0x42f   : > { %v6098_v62 = vpack.c.bf16 %v2914_v30, %v2912_v28  ;;  %v2915_v10 = vmax.f32 %v2886_v37, 0.0  ;;  %v2820_v42 = vpop.f32.mrf.mxu0  ;;  %v2890_v46 = vadd.f32 %v2889_v24, %v2817_v25  ;;  %v2760_v15 = vadd.f32 %v6064_v27, %v2687_v8 }
 0x430   : > { %v2821_v41 = vadd.f32 %v2820_v42, %v2748_v40  ;;  %v2891_v39 = vpop.f32.mrf.mxu1 }
 0x431   : > { %v6105_v2 = vpack.c.bf16 %v2915_v10, %v2913_v9  ;;  %v2822_v4 = vpop.f32.mrf.mxu0  ;;  %3004 = vrot.lane.b32.xlu0 %v6098_v62, %s4368_s18  ;;  %v6121_v29 = vsel %vm1590_vm4, 0, %v6098_v62  ;;  %v2892_v18 = vadd.f32 %v2891_v39, %v2819_v47  ;;  %v6139_v16 = vsel %vm1620_vm9, 0, %v6098_v62 }
 0x432   : > { %v2823_v50 = vadd.f32 %v2822_v4, %v2750_v53  ;;  %v2893_v34 = vpop.f32.mrf.mxu1  ;;  %v2916_v28 = vmax.f32 %v2890_v46, 0.0  ;;  %v2940_v47 = vsel %vm1620_vm9, 0, %v6073_v14 }
 0x433   : > { %v2894_v36 = vadd.f32 %v2893_v34, %v2821_v41  ;;  %v2826_v43 = vpop.f32.mrf.mxu0  ;;  %3006 = vrot.lane.b32.xlu1 %v6105_v2, %s4368_s18  ;;  %v6131_v58 = vsel %vm1591_vm5, 0, %v6105_v2  ;;  %v6146_v27 = vsel %vm1621_vm10, 0, %v6105_v2  ;;  %v2917_v40 = vmax.f32 %v2892_v18, 0.0  ;;  %v3289_v18 = vld [vmem:[%s6534_s8 + $0x28] sm:$0xff] }
 0x434   : > { %v2895_v44 = vpop.f32.mrf.mxu1  ;;  %v2827_v26 = vadd.f32 %v2826_v43, %v2754_v12  ;;  %v2932_v34 = vsel %vm1590_vm4, 0, %v6073_v14 }
 0x435   : > { %v2896_v1 = vadd.f32 %v2895_v44, %v2823_v50  ;;  %v2828_v55 = vpop.f32.mrf.mxu0  ;;  %2960 = vrot.lane.b32.xlu0 %v6121_v29, %s4366_s13  ;;  %v2918_v21 = vmax.f32 %v2894_v36, 0.0 }
 0x436   : > { %v2899_v3 = vpop.f32.mrf.mxu1  ;;  %v2829_v49 = vadd.f32 %v2828_v55, %v2756_v23  ;;  %v3284_v23 = vld [vmem:[%s6534_s8] sm:$0xff]  ;;  %v3286_v55 = vld [vmem:[%s6534_s8 + $0x10] sm:$0xff] }
 0x437   : > { %v2830_v38 = vpop.f32.mrf.mxu0  ;;  %2962 = vrot.lane.b32.xlu1 %v6131_v58, %s4366_s13  ;;  %v2919_v30 = vmax.f32 %v2896_v1, 0.0  ;;  %v2900_v37 = vadd.f32 %v2899_v3, %v2827_v26  ;;  %v6148_v24 = vpack.c.bf16 %v2918_v21, %v2916_v28  ;;  %v3285_v26 = vld [vmem:[%s6534_s8 + $0x8] sm:$0xff] }
 0x438   : > { %v2831_v63 = vadd.f32 %v2830_v38, %v2758_v56  ;;  %v2901_v32 = vpop.f32.mrf.mxu1  ;;  %v3287_v56 = vld [vmem:[%s6534_s8 + $0x18] sm:$0xff] }
 0x439   : > { %v2832_v51 = vpop.f32.mrf.mxu0  ;;  %3120 = vrot.lane.b32.xlu0 %v6139_v16, %s4371_s21  ;;  %v2902_v61 = vadd.f32 %v2901_v32, %v2829_v49  ;;  %v6152_v42 = vpack.c.bf16 %v2919_v30, %v2917_v40  ;;  %v2920_v13 = vmax.f32 %v2900_v37, 0.0  ;;  %v2936_v25 = vsel %vm1590_vm4, 0, %v6148_v24  ;;  %v3290_v49 = vld [vmem:[%s6534_s8 + $0x30] sm:$0xff]  ;;  %v4326_v30 = vld [vmem:[%s6533_s7 + $0x28] ss:$20 sps:$4 sm:$0xff]  }
 0x43a   : > { %v2833_v6 = vadd.f32 %v2832_v51, %v2760_v15  ;;  %v2903_v35 = vpop.f32.mrf.mxu1  ;;  %v2944_v20 = vsel %vm1620_vm9, 0, %v6148_v24  ;;  %v3291_v15 = vld [vmem:[%s6534_s8 + $0x38] sm:$0xff] }
 0x43b   : > { %v2904_v9 = vadd.f32 %v2903_v35, %v2831_v63  ;;  %3122 = vrot.lane.b32.xlu1 %v6146_v27, %s4371_s21  ;;  %v2921_v39 = vmax.f32 %v2902_v61, 0.0  ;;  %v2937_v5 = vsel %vm1591_vm5, 0, %v6152_v42  ;;  %v2945_v50 = vsel %vm1621_vm10, 0, %v6152_v42 }
 0x43c   : > { %v2905_v10 = vpop.f32.mrf.mxu1 }
 0x43d   : > { %v2922_v53 = vmax.f32 %v2904_v9, 0.0  ;;  %v2906_v41 = vadd.f32 %v2905_v10, %v2833_v6  ;;  %3008 = vrot.lane.b32.xlu0 %v6148_v24, %s4368_s18 }
 0x43f   : > { %v6156_v7 = vpack.c.bf16 %v2922_v53, %v2920_v13  ;;  %v2923_v45 = vmax.f32 %v2906_v41, 0.0  ;;  %3010 = vrot.lane.b32.xlu1 %v6152_v42, %s4368_s18 }
 0x441   : > { %v6163_v4 = vpack.c.bf16 %v2923_v45, %v2921_v39  ;;  %2964 = vrot.lane.b32.xlu0 %v2936_v25, %s4366_s13  ;;  %v2938_v33 = vsel %vm1590_vm4, 0, %v6156_v7  ;;  %v2946_v12 = vsel %vm1620_vm9, 0, %v6156_v7  ;;  %vm6710_vm4 = vcmask 523264  }
 0x443   : > { %2966 = vrot.lane.b32.xlu1 %v2937_v5, %s4366_s13  ;;  %v2939_v36 = vsel %vm1591_vm5, 0, %v6163_v4  ;;  %v2947_v43 = vsel %vm1621_vm10, 0, %v6163_v4 }
 0x445   : > { %3124 = vrot.lane.b32.xlu0 %v2944_v20, %s4371_s21 }
 0x447   : > { %3126 = vrot.lane.b32.xlu1 %v2945_v50, %s4371_s21 }
 0x449   : > { %3012 = vrot.lane.b32.xlu0 %v6156_v7, %s4368_s18 }
 0x44b   : > { %3014 = vrot.lane.b32.xlu1 %v6163_v4, %s4368_s18 }
 0x44d   : > { %2956 = vrot.lane.b32.xlu0 %v2932_v34, %s4366_s13 }
 0x44f   : > { %2958 = vrot.lane.b32.xlu1 %v2933_v60, %s4366_s13 }
 0x451   : > { %2968 = vrot.lane.b32.xlu0 %v2938_v33, %s4366_s13 }
 0x453   : > { %3118 = vrot.lane.b32.xlu1 %v2941_v31, %s4371_s21 }
 0x455   : > { %3128 = vrot.lane.b32.xlu0 %v2946_v12, %s4371_s21 }
 0x457   : > { %3090 = vrot.lane.b32.xlu1 %v2937_v5, %s4369_s19 }
 0x459   : > { %3116 = vrot.lane.b32.xlu0 %v2940_v47, %s4371_s21 }
 0x45b   : > { %2970 = vrot.lane.b32.xlu1 %v2939_v36, %s4366_s13 }
 0x45d   : > { %3092 = vrot.lane.b32.xlu0 %v2938_v33, %s4369_s19 }
 0x45f   : > { %3130 = vrot.lane.b32.xlu1 %v2947_v43, %s4371_s21 }
 0x461   : > { %3088 = vrot.lane.b32.xlu0 %v2936_v25, %s4369_s19 }
 0x463   : > { %3086 = vrot.lane.b32.xlu1 %v6131_v58, %s4369_s19 }
 0x465   : > { %3084 = vrot.lane.b32.xlu0 %v6121_v29, %s4369_s19 }
 0x467   : > { %3082 = vrot.lane.b32.xlu1 %v2933_v60, %s4369_s19 }
 0x469   : > { %3080 = vrot.lane.b32.xlu0 %v2932_v34, %s4369_s19 }
 0x46b   : > { %3094 = vrot.lane.b32.xlu1 %v2939_v36, %s4369_s19  ;;  %s6490_s19 = scalar_lea.vmem %s6535_s9, %s4085_s16 }
 0x46d   : > { %3056 = vrot.lane.b32.xlu0 %v2946_v12, %s4367_s17 }
 0x46f   : > { %3202 = vrot.lane.b32.xlu1 %v6163_v4, %s4372_s25 }
 0x471   : > { %3200 = vrot.lane.b32.xlu0 %v6156_v7, %s4372_s25 }
 0x473   : > { %3054 = vrot.lane.b32.xlu1 %v2945_v50, %s4367_s17 }
 0x475   : > { %3052 = vrot.lane.b32.xlu0 %v2944_v20, %s4367_s17 }
 0x477   : > { %3198 = vrot.lane.b32.xlu1 %v6152_v42, %s4372_s25 }
 0x479   : > { %3196 = vrot.lane.b32.xlu0 %v6148_v24, %s4372_s25 }
 0x47b   : > { %3058 = vrot.lane.b32.xlu1 %v2947_v43, %s4367_s17 }
 0x47d   : > { %3048 = vrot.lane.b32.xlu0 %v6139_v16, %s4367_s17 }
 0x47f   : > { %3050 = vrot.lane.b32.xlu1 %v6146_v27, %s4367_s17 }
 0x481   : > { %3192 = vrot.lane.b32.xlu0 %v6098_v62, %s4372_s25 }
 0x483   : > { %3194 = vrot.lane.b32.xlu1 %v6105_v2, %s4372_s25 }
 0x485   : > { %3044 = vrot.lane.b32.xlu0 %v2940_v47, %s4367_s17 }
 0x487   : > { %3046 = vrot.lane.b32.xlu1 %v2941_v31, %s4367_s17 }
 0x489   : > { %3188 = vrot.lane.b32.xlu0 %v6073_v14, %s4372_s25 }
 0x48b   : > { %3190 = vrot.lane.b32.xlu1 %v6076_v19, %s4372_s25 }
 0x48d   : > { %3164 = vrot.lane.b32.xlu0 %v2938_v33, %s4370_s20 }
 0x48f   : > { %3166 = vrot.lane.b32.xlu1 %v2939_v36, %s4370_s20 }
 0x491   : > { %3160 = vrot.lane.b32.xlu0 %v2936_v25, %s4370_s20 }
 0x493   : > { %3162 = vrot.lane.b32.xlu1 %v2937_v5, %s4370_s20 }
 0x495   : > { %3156 = vrot.lane.b32.xlu0 %v6121_v29, %s4370_s20 }
 0x497   : > { %3158 = vrot.lane.b32.xlu1 %v6131_v58, %s4370_s20 }
 0x499   : > { %3152 = vrot.lane.b32.xlu0 %v2932_v34, %s4370_s20 }
 0x49b   : > { %3154 = vrot.lane.b32.xlu1 %v2933_v60, %s4370_s20  ;;  %v3001_v52 = vpop.permute.xlu0 %3000 }
 0x49d   : > { %3236 = vrot.lane.b32.xlu0 %v2946_v12, %s4373_s26  ;;  %v3003_v57 = vpop.permute.xlu1 %3002 }
 0x49e   : > { %v3016_v40 = vsel %vm1769_vm13, %v3001_v52, %v3003_v57 }
 0x49f   : > { %3238 = vrot.lane.b32.xlu1 %v2947_v43, %s4373_s26 }
 0x4a1   : > { %3232 = vrot.lane.b32.xlu0 %v2944_v20, %s4373_s26 }
 0x4a3   : > { %3234 = vrot.lane.b32.xlu1 %v2945_v50, %s4373_s26  ;;  %v3005_v44 = vpop.permute.xlu0 %3004 }
 0x4a5   : > { %v3007_v59 = vpop.permute.xlu1 %3006  ;;  %3228 = vrot.lane.b32.xlu0 %v6139_v16, %s4373_s26 }
 0x4a6   : > { %v3017_v35 = vsel %vm1769_vm13, %v3005_v44, %v3007_v59 }
 0x4a7   : > { %3230 = vrot.lane.b32.xlu1 %v6146_v27, %s4373_s26  ;;  %v6274_v29 = vpop.permute.xlu0 %2960 }
 0x4a9   : > { %v6276_v48 = vpop.permute.xlu1 %2962  ;;  %3224 = vrot.lane.b32.xlu0 %v2940_v47, %s4373_s26 }
 0x4aa   : > { %v2973_v20 = vsel %vm1686_vm11, %v6274_v29, %v6276_v48 }
 0x4ab   : > { %3226 = vrot.lane.b32.xlu1 %v2941_v31, %s4373_s26  ;;  %v6283_v46 = vpop.permute.xlu0 %3120 }
 0x4ad   : > { %v6288_v1 = vpop.permute.xlu1 %3122  ;;  %3294 = vperm.xlu0 %4183, %v3284_v23  }
 0x4ae   : > { %v3133_v12 = vsel %vm2007_vm7, %v6283_v46, %v6288_v1 }
 0x4af   : > { %3299 = vperm.xlu1 %4184, %v3285_v26   ;;  %v3009_v8 = vpop.permute.xlu0 %3008 }
 0x4b1   : > { %v3011_v3 = vpop.permute.xlu1 %3010  ;;  %3304 = vperm.xlu0 %4183, %v3286_v55  }
 0x4b2   : > { %v3018_v37 = vsel %vm1769_vm13, %v3009_v8, %v3011_v3 }
 0x4b3   : > { %3309 = vperm.xlu1 %4184, %v3287_v56   ;;  %v2965_v58 = vpop.permute.xlu0 %2964 }
 0x4b5   : > { %v2967_v21 = vpop.permute.xlu1 %2966  ;;  %3314 = vperm.xlu0 %4183, %v3288_v0  }
 0x4b6   : > { %v2974_v39 = vsel %vm1686_vm11, %v2965_v58, %v2967_v21 }
 0x4b7   : > { %3319 = vperm.xlu1 %4184, %v3289_v18   ;;  %v3125_v38 = vpop.permute.xlu0 %3124 }
 0x4b9   : > { %v3127_v63 = vpop.permute.xlu1 %3126  ;;  %3324 = vperm.xlu0 %4183, %v3290_v49   ;;  %v4321_v49 = vld [vmem:[%s6533_s7] ss:$20 sps:$4 sm:$0xff]  }
 0x4ba   : > { %v3134_v34 = vsel %vm2007_vm7, %v3125_v38, %v3127_v63  ;;  %v4324_v38 = vld [vmem:[%s6533_s7 + $0x2c] ss:$20 sps:$4 sm:$0xff]  }
 0x4bb   : > { %3329 = vperm.xlu1 %4184, %v3291_v15   ;;  %v3013_v32 = vpop.permute.xlu0 %3012 }
 0x4bd   : > { %v3015_v11 = vpop.permute.xlu1 %3014 }
 0x4be   : > { %v3019_v16 = vsel %vm1769_vm13, %v3013_v32, %v3015_v11 }
 0x4bf   : > { %3444 = vmatprep.subr.bf16.mxu0 %v3019_v16  ;;  %v2957_v28 = vpop.permute.xlu0 %2956 }
 0x4c0   : > { %4030 = vmatpush1.bf16.msk.msra.mxu0 %vm5483_vm15, %v3013_v32 }
 0x4c1   : > { %v2959_v51 = vpop.permute.xlu1 %2958  ;;  %3446 = vmatprep.subr.bf16.mxu0 %v3018_v37  ;;  %v4327_v37 = vld [vmem:[%s6533_s7 + $0x54] ss:$20 sps:$4 sm:$0xff]  }
 0x4c2   : > { %v2972_v33 = vsel %vm1686_vm11, %v2957_v28, %v2959_v51 }
 0x4c3   : > { %v2969_v6 = vpop.permute.xlu0 %2968 }
 0x4c4   : > { %4032 = vmatpush1.bf16.msk.msra.mxu0 %vm5483_vm15, %v3009_v8 }
 0x4c5   : > { %v3119_v54 = vpop.permute.xlu1 %3118  ;;  %3448 = vmatprep.subr.bf16.mxu0 %v3017_v35 }
 0x4c7   : > { %v3129_v27 = vpop.permute.xlu0 %3128 }
 0x4c8   : > { %4034 = vmatpush1.bf16.msk.msra.mxu0 %vm5483_vm15, %v3005_v44 }
 0x4c9   : > { %v3091_v61 = vpop.permute.xlu1 %3090  ;;  %3450 = vmatprep.subr.bf16.mxu0 %v3016_v40 }
 0x4cb   : > { %v3117_v9 = vpop.permute.xlu0 %3116 }
 0x4cc   : > { %4036 = vmatpush1.bf16.msk.msra.mxu0 %vm5483_vm15, %v3001_v52  ;;  %v3132_v43 = vsel %vm2007_vm7, %v3117_v9, %v3119_v54  ;;  %v4333_v9 = vld [vmem:[%s6533_s7 + $0x7c] ss:$20 sps:$4 sm:$0xff]   ;;  %v4341_v52 = vld [vmem:[%s6533_s7 + $0x58] ss:$20 sps:$4 sm:$0xff]  }
 0x4cd   : > { %v2971_v10 = vpop.permute.xlu1 %2970 }
 0x4ce   : > { %v2975_v13 = vsel %vm1686_vm11, %v2969_v6, %v2971_v10 }
 0x4cf   : > { %3452 = vmatprep.subr.bf16.mxu0 %v2975_v13  ;;  %v3093_v53 = vpop.permute.xlu0 %3092 }
 0x4d0   : > { %4038 = vmatpush1.bf16.msk.msra.mxu0 %vm5378_vm12, %v2969_v6 }
 0x4d1   : > { %v3131_v45 = vpop.permute.xlu1 %3130  ;;  %3454 = vmatprep.subr.bf16.mxu0 %v2974_v39  ;;  %v4336_v39 = vld [vmem:[%s6533_s7 + $0x34] ss:$20 sps:$4 sm:$0xff]  }
 0x4d2   : > { %v3135_v25 = vsel %vm2007_vm7, %v3129_v27, %v3131_v45  ;;  %4061 = vmatprep.subr.msk.bf16.mxu1 %vm2007_vm7, %v3131_v45 }
 0x4d3   : > { %3518 = vmatpush1.bf16.msra.mxu1 %v3135_v25  ;;  %v3089_v5 = vpop.permute.xlu0 %3088 }
 0x4d4   : > { %4040 = vmatpush1.bf16.msk.msra.mxu0 %vm5378_vm12, %v2965_v58  ;;  %4062 = vmatprep.subr.msk.bf16.mxu1 %vm2007_vm7, %v3127_v63  ;;  %v3098_v57 = vsel %vm1933_vm2, %v3089_v5, %v3091_v61  ;;  %v4329_v61 = vld [vmem:[%s6533_s7 + $0x50] ss:$20 sps:$4 sm:$0xff]  }
 0x4d5   : > { %v3087_v50 = vpop.permute.xlu1 %3086  ;;  %3456 = vmatprep.subr.bf16.mxu0 %v2973_v20  ;;  %v4335_v20 = vld [vmem:[%s6533_s7 + $0x78] ss:$20 sps:$4 sm:$0xff]  }
 0x4d7   : > { %3520 = vmatpush1.bf16.msra.mxu1 %v3134_v34  ;;  %v3085_v60 = vpop.permute.xlu0 %3084 }
 0x4d8   : > { %4042 = vmatpush1.bf16.msk.msra.mxu0 %vm5378_vm12, %v6274_v29  ;;  %4063 = vmatprep.subr.msk.bf16.mxu1 %vm2007_vm7, %v6288_v1  ;;  %v3097_v29 = vsel %vm1933_vm2, %v3085_v60, %v3087_v50 }
 0x4d9   : > { %v3083_v31 = vpop.permute.xlu1 %3082  ;;  %3458 = vmatprep.subr.bf16.mxu0 %v2972_v33 }
 0x4db   : > { %3522 = vmatpush1.bf16.msra.mxu1 %v3133_v12  ;;  %v3081_v47 = vpop.permute.xlu0 %3080 }
 0x4dc   : > { %4044 = vmatpush1.bf16.msk.msra.mxu0 %vm5378_vm12, %v2957_v28  ;;  %4064 = vmatprep.subr.msk.bf16.mxu1 %vm2007_vm7, %v3119_v54 }
 0x4dd   : > { %v3095_v36 = vpop.permute.xlu1 %3094 }
 0x4de   : > { %v3099_v17 = vsel %vm1933_vm2, %v3093_v53, %v3095_v36 }
 0x4df   : > { %3460 = vmatprep.subr.bf16.mxu0 %v3099_v17  ;;  %3524 = vmatpush1.bf16.msra.mxu1 %v3132_v43  ;;  %v3057_v22 = vpop.permute.xlu0 %3056 }
 0x4e0   : > { %4046 = vmatpush2.bf16.msk.msra.mxu0 %vm5657_vm3, %v3093_v53  ;;  %3525 = vmatprep.subr.bf16.mxu1 %v6163_v4  ;;  %v4330_v53 = vld [vmem:[%s6533_s7 + $0x8] ss:$20 sps:$4 sm:$0xff]  }
 0x4e1   : > { %v3203_v44 = vpop.permute.xlu1 %3202  ;;  %3462 = vmatprep.subr.bf16.mxu0 %v3098_v57  ;;  %v4342_v57 = vld [vmem:[%s6533_s7 + $0x10] ss:$20 sps:$4 sm:$0xff]  }
 0x4e3   : > { %3526 = vmatpush1.bf16.msra.mxu1 %v6156_v7  ;;  %v3201_v59 = vpop.permute.xlu0 %3200  ;;  %v3096_v7 = vsel %vm1933_vm2, %v3081_v47, %v3083_v31  ;;  %v4339_v31 = vld [vmem:[%s6533_s7 + $0x5c] ss:$20 sps:$4 sm:$0xff]  }
 0x4e4   : > { %4048 = vmatpush2.bf16.msk.msra.mxu0 %vm5657_vm3, %v3089_v5  ;;  %3527 = vmatprep.subr.bf16.mxu1 %v6152_v42  ;;  %v3207_v55 = vsel %vm2155_vm8, %v3201_v59, %v3203_v44  ;;  %v4345_v59 = vld [vmem:[%s6533_s7 + $0x80] ss:$20 sps:$4 sm:$0xff]  }
 0x4e5   : > { %v3055_v48 = vpop.permute.xlu1 %3054  ;;  %3464 = vmatprep.subr.bf16.mxu0 %v3097_v29  ;;  %v4346_v29 = vld [vmem:[%s6533_s7 + $0x38] ss:$20 sps:$4 sm:$0xff]  }
 0x4e7   : > { %3528 = vmatpush1.bf16.msra.mxu1 %v6148_v24  ;;  %v3053_v23 = vpop.permute.xlu0 %3052 }
 0x4e8   : > { %4050 = vmatpush2.bf16.msk.msra.mxu0 %vm5657_vm3, %v3085_v60  ;;  %3529 = vmatprep.subr.bf16.mxu1 %v6105_v2  ;;  %v4338_v60 = vld [vmem:[%s6533_s7 + $0x30] ss:$20 sps:$4 sm:$0xff]  }
 0x4e9   : > { %v3199_v4 = vpop.permute.xlu1 %3198  ;;  %3466 = vmatprep.subr.bf16.mxu0 %v3096_v7 }
 0x4eb   : > { %3530 = vmatpush1.bf16.msra.mxu1 %v6098_v62  ;;  %v3197_v46 = vpop.permute.xlu0 %3196  ;;  %v3062_v62 = vsel %vm1859_vm14, %v3053_v23, %v3055_v48  ;;  %v4348_v48 = vld [vmem:[%s6533_s7 + $0x88] ss:$20 sps:$4 sm:$0xff]  }
 0x4ec   : > { %4052 = vmatpush2.bf16.msk.msra.mxu0 %vm5657_vm3, %v3081_v47  ;;  %3531 = vmatprep.subr.bf16.mxu1 %v6076_v19  ;;  %v3206_v56 = vsel %vm2155_vm8, %v3197_v46, %v3199_v4  ;;  %v6709_v47 = vmov 0  }
 0x4ed   : > { %v3059_v42 = vpop.permute.xlu1 %3058 }
 0x4ee   : > { %v3063_v24 = vsel %vm1859_vm14, %v3057_v22, %v3059_v42 }
 0x4ef   : > { %3468 = vmatprep.subr.bf16.mxu0 %v3063_v24  ;;  %3532 = vmatpush1.bf16.msra.mxu1 %v6073_v14  ;;  %v3049_v26 = vpop.permute.xlu0 %3048 }
 0x4f0   : > { %4054 = vmatpush2.bf16.msk.msra.mxu0 %vm5490_vm1, %v3057_v22  ;;  %4065 = vmatprep.subr.msk.bf16.mxu1 %vm2155_vm8, %v3203_v44  ;;  %v4343_v44 = vld [vmem:[%s6533_s7 + $0x84] ss:$20 sps:$4 sm:$0xff]  }
 0x4f1   : > { %v3051_v1 = vpop.permute.xlu1 %3050  ;;  %3470 = vmatprep.subr.bf16.mxu0 %v3062_v62 }
 0x4f2   : > { %v3061_v14 = vsel %vm1859_vm14, %v3049_v26, %v3051_v1 }
 0x4f3   : > { %3534 = vmatpush2.bf16.msra.mxu1 %v3207_v55  ;;  %v3193_v19 = vpop.permute.xlu0 %3192 }
 0x4f4   : > { %4056 = vmatpush2.bf16.msk.msra.mxu0 %vm5490_vm1, %v3053_v23  ;;  %4066 = vmatprep.subr.msk.bf16.mxu1 %vm2155_vm8, %v3199_v4  ;;  %v4347_v23 = vld [vmem:[%s6533_s7 + $0x60] ss:$20 sps:$4 sm:$0xff]  }
 0x4f5   : > { %v3195_v8 = vpop.permute.xlu1 %3194  ;;  %3472 = vmatprep.subr.bf16.mxu0 %v3061_v14 }
 0x4f6   : > { %v3205_v58 = vsel %vm2155_vm8, %v3193_v19, %v3195_v8 }
 0x4f7   : > { %3536 = vmatpush2.bf16.msra.mxu1 %v3206_v56  ;;  %v3045_v3 = vpop.permute.xlu0 %3044 }
 0x4f8   : > { %4058 = vmatpush2.bf16.msk.msra.mxu0 %vm5490_vm1, %v3049_v26  ;;  %4067 = vmatprep.subr.msk.bf16.mxu1 %vm2155_vm8, %v3195_v8 }
 0x4f9   : > { %v3047_v0 = vpop.permute.xlu1 %3046 }
 0x4fa   : > { %v3060_v18 = vsel %vm1859_vm14, %v3045_v3, %v3047_v0 }
 0x4fb   : > { %3474 = vmatprep.subr.bf16.mxu0 %v3060_v18  ;;  %3538 = vmatpush2.bf16.msra.mxu1 %v3205_v58  ;;  %v3189_v21 = vpop.permute.xlu0 %3188 }
 0x4fc   : > { %4060 = vmatpush2.bf16.msk.msra.mxu0 %vm5490_vm1, %v3045_v3 }
 0x4fd   : > { %v3191_v15 = vpop.permute.xlu1 %3190 }
 0x4fe   : > { %v3204_v63 = vsel %vm2155_vm8, %v3189_v21, %v3191_v15  ;;  %4068 = vmatprep.subr.msk.bf16.mxu1 %vm2155_vm8, %v3191_v15 }
 0x4ff   : > { %3477 = vmatmul.mubr.bf16.vlgmr.msra.gmra.mxu0 %v4321_v49  ;;  %3540 = vmatpush2.bf16.msra.mxu1 %v3204_v63  ;;  %v3165_v32 = vpop.permute.xlu0 %3164 }
 0x500   : > { %3486 = vmatprep.mubr.bf16.mxu0 %v4324_v38 }
 0x501   : > { %v3167_v11 = vpop.permute.xlu1 %3166 }
 0x502   : > { %v3171_v16 = vsel %vm2081_vm6, %v3165_v32, %v3167_v11  ;;  %4069 = vmatprep.subr.msk.bf16.mxu1 %vm2081_vm6, %v3167_v11 }
 0x503   : > { %3542 = vmatpush2.bf16.msra.mxu1 %v3171_v16  ;;  %v3161_v28 = vpop.permute.xlu0 %3160 }
 0x505   : > { %v3163_v51 = vpop.permute.xlu1 %3162 }
 0x506   : > { %v3170_v6 = vsel %vm2081_vm6, %v3161_v28, %v3163_v51  ;;  %4070 = vmatprep.subr.msk.bf16.mxu1 %vm2081_vm6, %v3163_v51 }
 0x507   : > { %3487 = vmatmul.mubr.bf16.gmra.mxu0 %v4326_v30  ;;  %3544 = vmatpush2.bf16.msra.mxu1 %v3170_v6  ;;  %v3157_v35 = vpop.permute.xlu0 %3156 }
 0x508   : > { %3496 = vmatprep.mubr.bf16.mxu0 %v4327_v37 }
 0x509   : > { %v3159_v54 = vpop.permute.xlu1 %3158 }
 0x50a   : > { %v3169_v27 = vsel %vm2081_vm6, %v3157_v35, %v3159_v54  ;;  %4071 = vmatprep.subr.msk.bf16.mxu1 %vm2081_vm6, %v3159_v54 }
 0x50b   : > { %3546 = vmatpush2.bf16.msra.mxu1 %v3169_v27  ;;  %v3153_v40 = vpop.permute.xlu0 %3152 }
 0x50d   : > { %v3155_v10 = vpop.permute.xlu1 %3154 }
 0x50e   : > { %v3168_v13 = vsel %vm2081_vm6, %v3153_v40, %v3155_v10  ;;  %4072 = vmatprep.subr.msk.bf16.mxu1 %vm2081_vm6, %v3155_v10 }
 0x50f   : > { %3497 = vmatmul.mubr.bf16.gmra.mxu0 %v4329_v61  ;;  %3548 = vmatpush2.bf16.msra.mxu1 %v3168_v13  ;;  %v3237_v41 = vpop.permute.xlu0 %3236 }
 0x510   : > { %3506 = vmatprep.mubr.bf16.mxu0 %v4333_v9 }
 0x511   : > { %v3239_v45 = vpop.permute.xlu1 %3238 }
 0x512   : > { %3550 = vmatmul.mubr.bf16.vlgmr.msra.gmra.mxu1 %v4330_v53  ;;  %4073 = vmatprep.subr.msk.bf16.mxu0 %vm2229_vm0, %v3239_v45  ;;  %v3243_v25 = vsel %vm2229_vm0, %v3237_v41, %v3239_v45 }
 0x513   : > { %4158 = vmatprep.subr.msk.bf16.mxu1 %vm2229_vm0, %v3239_v45  ;;  %3599 = vmatpush1.bf16.msra.mxu0 %v3243_v25  ;;  %v3233_v5 = vpop.permute.xlu0 %3232 }
 0x514   : > { %4162 = vmatpush1.bf16.msra.mxu1 %v3243_v25  ;;  %3559 = vmatprep.mubr.bf16.mxu1 %v4336_v39 }
 0x515   : > { %v3235_v50 = vpop.permute.xlu1 %3234 }
 0x516   : > { %4074 = vmatprep.subr.msk.bf16.mxu0 %vm2229_vm0, %v3235_v50  ;;  %4159 = vmatprep.subr.msk.bf16.mxu1 %vm2229_vm0, %v3235_v50  ;;  %v3242_v34 = vsel %vm2229_vm0, %v3233_v5, %v3235_v50 }
 0x517   : > { %3507 = vmatmul.mubr.bf16.gmra.mxu0 %v4335_v20  ;;  %v3229_v33 = vpop.permute.xlu0 %3228 }
 0x518   : > { %3601 = vmatpush1.bf16.msra.mxu0 %v3242_v34  ;;  %4163 = vmatpush1.bf16.msra.mxu1 %v3242_v34 }
 0x519   : > { %v3231_v12 = vpop.permute.xlu1 %3230  ;;  %3622 = vmatprep.mubr.bf16.mxu0 %v6709_v47 }
 0x51a   : > { %3560 = vmatmul.mubr.bf16.gmra.mxu1 %v4338_v60  ;;  %4075 = vmatprep.subr.msk.bf16.mxu0 %vm2229_vm0, %v3231_v12  ;;  %v3241_v36 = vsel %vm2229_vm0, %v3229_v33, %v3231_v12 }
 0x51b   : > { %4160 = vmatprep.subr.msk.bf16.mxu1 %vm2229_vm0, %v3231_v12  ;;  %3569 = vmatprep.mubr.bf16.mxu1 %v4339_v31  ;;  %v3225_v43 = vpop.permute.xlu0 %3224 }
 0x51c   : > { %3603 = vmatpush1.bf16.msra.mxu0 %v3241_v36  ;;  %4164 = vmatpush1.bf16.msra.mxu1 %v3241_v36 }
 0x51d   : > { %v3227_v17 = vpop.permute.xlu1 %3226 }
 0x51e   : > { %4076 = vmatprep.subr.msk.bf16.mxu0 %vm2229_vm0, %v3227_v17  ;;  %4161 = vmatprep.subr.msk.bf16.mxu1 %vm2229_vm0, %v3227_v17  ;;  %v3240_v22 = vsel %vm2229_vm0, %v3225_v43, %v3227_v17  ;;  %vm6711_vm0 = vmmov %vm6710_vm4 }
 0x51f   : > { %vm6712_vm5 = vmmov %vm6711_vm0 }
 0x520   : > { %3605 = vmatpush1.bf16.msra.mxu0 %v3240_v22  ;;  %4165 = vmatpush1.bf16.msra.mxu1 %v3240_v22  ;;  %vm6713_vm9 = vmmov %vm6711_vm0 }
 0x522   : > { %3570 = vmatmul.mubr.bf16.gmra.mxu1 %v4341_v52 }
 0x523   : > { %4077 = vmatmul.mubr.msk.bf16.vlgmr.msra.gmra.mxu0 %vm6710_vm4, %v4342_v57  ;;  %3579 = vmatprep.mubr.bf16.mxu1 %v4343_v44 }
 0x524   : > { %3632 = vmatprep.mubr.bf16.mxu0 %v6709_v47 }
 0x528   : > { %v3295_v49 = vpop.permute.xlu0 %3294 }
 0x52a   : > { %3580 = vmatmul.mubr.bf16.gmra.mxu1 %v4345_v59  ;;  %v3300_v32 = vpop.permute.xlu1 %3299 }
 0x52b   : > { %4078 = vmatmul.mubr.msk.bf16.gmra.mxu0 %vm6711_vm0, %v4346_v29  ;;  %3652 = vmatprep.mubr.bf16.mxu1 %v6709_v47 }
 0x52c   : > { %3642 = vmatprep.mubr.bf16.mxu0 %v6709_v47  ;;  %v3305_v30 = vpop.permute.xlu0 %3304 }
 0x52e   : > { %v3310_v10 = vpop.permute.xlu1 %3309 }
 0x530   : > { %v3315_v5 = vpop.permute.xlu0 %3314 }
 0x532   : > { %4080 = vmatmul.mubr.msk.bf16.vlgmr.msra.gmra.mxu1 %vm6712_vm5, %v4348_v48  ;;  %v3320_v52 = vpop.permute.xlu1 %3319 }
 0x533   : > { %4079 = vmatmul.mubr.msk.bf16.gmra.mxu0 %vm6713_vm9, %v4347_v23 }
 0x5bf   : > { %v3478_v7 = vpop.f32.mrf.mxu0 }
 0x5c0   : > { %v3479_v11 = vadd.f32 %v3478_v7, %v3295_v49  ;;  %v3325_v7 = vpop.permute.xlu0 %3324 }
 0x5c1   : > { %v3480_v4 = vpop.f32.mrf.mxu0 }
 0x5c2   : > { %v3481_v37 = vadd.f32 %v3480_v4, %v3295_v49 }
 0x5c3   : > { %v3482_v46 = vpop.f32.mrf.mxu0 }
 0x5c4   : > { %v3483_v54 = vadd.f32 %v3482_v46, %v3300_v32 }
 0x5c5   : > { %v3484_v42 = vpop.f32.mrf.mxu0 }
 0x5c6   : > { %v3485_v13 = vadd.f32 %v3484_v42, %v3300_v32 }
 0x5c7   : > { %v3488_v24 = vpop.f32.mrf.mxu0 }
 0x5c8   : > { %v3489_v20 = vadd.f32 %v3488_v24, %v3305_v30 }
 0x5c9   : > { %v3490_v26 = vpop.f32.mrf.mxu0 }
 0x5ca   : > { %v3491_v12 = vadd.f32 %v3490_v26, %v3305_v30 }
 0x5cb   : > { %v3492_v2 = vpop.f32.mrf.mxu0 }
 0x5cc   : > { %v3493_v57 = vadd.f32 %v3492_v2, %v3310_v10 }
 0x5cd   : > { %v6468_v62 = vpop.f32.mrf.mxu0 }
 0x5ce   : > { %v3495_v4 = vadd.f32 %v6468_v62, %v3310_v10 }
 0x5cf   : > { %v6470_v1 = vpop.f32.mrf.mxu0 }
 0x5d0   : > { %v3499_v2 = vadd.f32 %v6470_v1, %v3315_v5 }
 0x5d1   : > { %v6472_v55 = vpop.f32.mrf.mxu0 }
 0x5d2   : > { %v3551_v19 = vpop.f32.mrf.mxu1 }
 0x5d3   : > { %v6474_v14 = vpop.f32.mrf.mxu0  ;;  %v3552_v51 = vadd.f32 %v3551_v19, %v3479_v11  ;;  %v3501_v11 = vadd.f32 %v6472_v55, %v3315_v5 }
 0x5d4   : > { %v3553_v8 = vpop.f32.mrf.mxu1 }
 0x5d5   : > { %v6476_v56 = vpop.f32.mrf.mxu0  ;;  %v3554_v27 = vadd.f32 %v3553_v8, %v3481_v37 }
 0x5d6   : > { %v3555_v3 = vpop.f32.mrf.mxu1 }
 0x5d7   : > { %v3508_v0 = vpop.f32.mrf.mxu0  ;;  %v3556_v53 = vadd.f32 %v3555_v3, %v3483_v54 }
 0x5d8   : > { %v3557_v58 = vpop.f32.mrf.mxu1  ;;  %v3509_v19 = vadd.f32 %v3508_v0, %v3325_v7 }
 0x5d9   : > { %v6478_v18 = vpop.f32.mrf.mxu0  ;;  %v3558_v50 = vadd.f32 %v3557_v58, %v3485_v13 }
 0x5da   : > { %v3561_v21 = vpop.f32.mrf.mxu1 }
 0x5db   : > { %v6480_v15 = vpop.f32.mrf.mxu0  ;;  %v3562_v47 = vadd.f32 %v3561_v21, %v3489_v20 }
 0x5dc   : > { %v3563_v38 = vpop.f32.mrf.mxu1 }
 0x5dd   : > { %v6482_v28 = vpop.f32.mrf.mxu0  ;;  %v3564_v44 = vadd.f32 %v3563_v38, %v3491_v12  ;;  %v3511_v38 = vadd.f32 %v6478_v18, %v3325_v7 }
 0x5de   : > { %v3565_v63 = vpop.f32.mrf.mxu1 }
 0x5df   : > { %v3566_v46 = vadd.f32 %v3565_v63, %v3493_v57  ;;  %v3330_v63 = vpop.permute.xlu1 %3329 }
 0x5e0   : > { %v3567_v16 = vpop.f32.mrf.mxu1  ;;  %v3513_v1 = vadd.f32 %v6480_v15, %v3330_v63 }
 0x5e1   : > { %v3568_v3 = vadd.f32 %v3567_v16, %v3495_v4 }
 0x5e2   : > { %v3571_v6 = vpop.f32.mrf.mxu1 }
 0x5e3   : > { %v3624_v35 = vpop.f32.mrf.mxu0  ;;  %v3572_v30 = vadd.f32 %v3571_v6, %v3499_v2  ;;  %v3515_v6 = vadd.f32 %v6482_v28, %v3330_v63 }
 0x5e4   : > { %v3625_v40 = vadd.f32 %v3624_v35, %v3552_v51  ;;  %v6485_v61 = vpop.f32.mrf.mxu1 }
 0x5e5   : > { %v3626_v9 = vpop.f32.mrf.mxu0  ;;  %v3574_v18 = vadd.f32 %v6485_v61, %v3501_v11 }
 0x5e6   : > { %v3663_v41 = vmax.f32 %v3625_v40, 0.0  ;;  %v3627_v39 = vadd.f32 %v3626_v9, %v3554_v27  ;;  %v6492_v45 = vpop.f32.mrf.mxu1  ;;  %v3503_v27 = vadd.f32 %v6474_v14, %v3320_v52 }
 0x5e7   : > { %v3628_v25 = vpop.f32.mrf.mxu0 }
 0x5e8   : > { %3679 = vst [vmem:[%s6490_s19] sm:$0xff] %v3663_v41  ;;  %v3664_v34 = vmax.f32 %v3627_v39, 0.0  ;;  %v3629_v60 = vadd.f32 %v3628_v25, %v3556_v53  ;;  %v6495_v33 = vpop.f32.mrf.mxu1  ;;  %v3505_v41 = vadd.f32 %v6476_v56, %v3320_v52  ;;  %v3576_v39 = vadd.f32 %v6492_v45, %v3503_v27 }
 0x5e9   : > { %v3630_v31 = vpop.f32.mrf.mxu0 }
 0x5ea   : > { %3680 = vst [vmem:[%s6490_s19 + $0x8] sm:$0xff] %v3664_v34  ;;  %v3665_v36 = vmax.f32 %v3629_v60, 0.0  ;;  %v3631_v43 = vadd.f32 %v3630_v31, %v3558_v50  ;;  %v3581_v17 = vpop.f32.mrf.mxu1  ;;  %v3578_v34 = vadd.f32 %v6495_v33, %v3505_v41 }
 0x5eb   : > { %v3634_v22 = vpop.f32.mrf.mxu0  ;;  %v3582_v32 = vadd.f32 %v3581_v17, %v3509_v19 }
 0x5ec   : > { %3681 = vst [vmem:[%s6490_s19 + $0x10] sm:$0xff] %v3665_v36  ;;  %v3666_v59 = vmax.f32 %v3631_v43, 0.0  ;;  %v3635_v29 = vadd.f32 %v3634_v22, %v3562_v47  ;;  %v3583_v48 = vpop.f32.mrf.mxu1 }
 0x5ed   : > { %v3636_v23 = vpop.f32.mrf.mxu0  ;;  %v3584_v16 = vadd.f32 %v3583_v48, %v3511_v38 }
 0x5ee   : > { %3682 = vst [vmem:[%s6490_s19 + $0x18] sm:$0xff] %v3666_v59  ;;  %v3667_v42 = vmax.f32 %v3635_v29, 0.0  ;;  %v3637_v24 = vadd.f32 %v3636_v23, %v3564_v44  ;;  %v3585_v26 = vpop.f32.mrf.mxu1 }
 0x5ef   : > { %v3638_v8 = vpop.f32.mrf.mxu0  ;;  %v3586_v10 = vadd.f32 %v3585_v26, %v3513_v1 }
 0x5f0   : > { %3683 = vst [vmem:[%s6490_s19 + $0x20] sm:$0xff] %v3667_v42  ;;  %v3668_v58 = vmax.f32 %v3637_v24, 0.0  ;;  %v3639_v21 = vadd.f32 %v3638_v8, %v3566_v46  ;;  %v3587_v49 = vpop.f32.mrf.mxu1 }
 0x5f1   : > { %v3640_v62 = vpop.f32.mrf.mxu0  ;;  %v3588_v5 = vadd.f32 %v3587_v49, %v3515_v6 }
 0x5f2   : > { %3684 = vst [vmem:[%s6490_s19 + $0x28] sm:$0xff] %v3668_v58  ;;  %v3669_v37 = vmax.f32 %v3639_v21, 0.0  ;;  %v3641_v0 = vadd.f32 %v3640_v62, %v3568_v3  ;;  %v3654_v51 = vpop.f32.mrf.mxu1 }
 0x5f3   : > { %v3644_v35 = vpop.f32.mrf.mxu0  ;;  %v3655_v54 = vadd.f32 %v3654_v51, %v3582_v32 }
 0x5f4   : > { %3685 = vst [vmem:[%s6490_s19 + $0x30] sm:$0xff] %v3669_v37  ;;  %v3670_v40 = vmax.f32 %v3641_v0, 0.0  ;;  %v3645_v9 = vadd.f32 %v3644_v35, %v3572_v30  ;;  %v3656_v55 = vpop.f32.mrf.mxu1 }
 0x5f5   : > { %v3675_v13 = vmax.f32 %v3655_v54, 0.0  ;;  %v3646_v53 = vpop.f32.mrf.mxu0  ;;  %v3657_v15 = vadd.f32 %v3656_v55, %v3584_v16 }
 0x5f6   : > { %3686 = vst [vmem:[%s6490_s19 + $0x38] sm:$0xff] %v3670_v40  ;;  %v3671_v14 = vmax.f32 %v3645_v9, 0.0  ;;  %v3647_v61 = vadd.f32 %v3646_v53, %v3574_v18  ;;  %v3658_v25 = vpop.f32.mrf.mxu1 }
 0x5f7   : > { %3691 = vst [vmem:[%s6490_s19 + $0x60] sm:$0xff] %v3675_v13  ;;  %v3676_v20 = vmax.f32 %v3657_v15, 0.0  ;;  %v3648_v28 = vpop.f32.mrf.mxu0  ;;  %v3659_v50 = vadd.f32 %v3658_v25, %v3586_v10 }
 0x5f8   : > { %3687 = vst [vmem:[%s6490_s19 + $0x40] sm:$0xff] %v3671_v14  ;;  %v3672_v56 = vmax.f32 %v3647_v61, 0.0  ;;  %v3649_v60 = vadd.f32 %v3648_v28, %v3576_v39  ;;  %v3660_v45 = vpop.f32.mrf.mxu1 }
 0x5f9   : > { %3692 = vst [vmem:[%s6490_s19 + $0x68] sm:$0xff] %v3676_v20  ;;  %v3677_v31 = vmax.f32 %v3659_v50, 0.0  ;;  %v3650_v12 = vpop.f32.mrf.mxu0  ;;  %v3661_v47 = vadd.f32 %v3660_v45, %v3588_v5 }
 0x5fa   : > { %3688 = vst [vmem:[%s6490_s19 + $0x48] sm:$0xff] %v3672_v56  ;;  %v3673_v36 = vmax.f32 %v3649_v60, 0.0  ;;  %v3651_v43 = vadd.f32 %v3650_v12, %v3578_v34 }
 0x5fb   : > { %3693 = vst [vmem:[%s6490_s19 + $0x70] sm:$0xff] %v3677_v31  ;;  %v3678_v17 = vmax.f32 %v3661_v47, 0.0 }
 0x5fc   : > { %3689 = vst [vmem:[%s6490_s19 + $0x50] sm:$0xff] %v3673_v36  ;;  %v3674_v22 = vmax.f32 %v3651_v43, 0.0 }
 0x5fd   : > { %3694 = vst [vmem:[%s6490_s19 + $0x78] sm:$0xff] %v3678_v17 }
 0x5fe   : > { %3690 = vst [vmem:[%s6490_s19 + $0x58] sm:$0xff] %v3674_v22 }
 0x5ff PF: > { %s19_s30 = sadd.s32 1, %s4363_s30  }
 0x600   : > { %p16_p4 = scmp.ge.s32.totalorder %s19_s30, 6  }
 0x602   :  { %18 = sbr.rel (!%p16_p4) target bundleno = 1 (0x1), region = 92 }

</bundles_post_ra>
